<compile_context>
chip_gen: v6e
topology: v6e:2x2x1
jax: 0.10.0
libtpu: 0.0.40
codegen_flags: <defaults>
</compile_context>

<pallas_src>
import numpy as np
import jax
import jax.numpy as jnp
from jax.experimental import pallas as pl
from jax.experimental.pallas import tpu as pltpu

QUBITS = 4
DIM = 2 ** QUBITS            # 16 = Hilbert-space dim of a 2x2 patch
SIZE = 8                     # QuantumConv2d spatial size
KS = 2                       # QuantumConv2d kernel size
NPATCH = (SIZE // KS) ** 2   # 16 quantum patches per image
IMG = 28
FEAT_IN = IMG * IMG          # 784 raw pixels
N_C1 = NPATCH * DIM          # 256 conv1 outputs (hierarchically ordered)
N_C2 = NPATCH * KS * KS      # 64 conv2 outputs == quantum-circuit inputs
N_TH = NPATCH * 2 * DIM      # 512 stacked [cos | sin] angle slots

# ---------------------------------------------------------------------------
# Host-side (numpy) quantum-circuit builders: literal translations of the
# torch helpers in QuantumConv2d.
# ---------------------------------------------------------------------------
_H = np.array([[1., 1.], [1., -1.]]) / np.sqrt(2.0)
_X = np.array([[0., 1.], [1., 0.]])
_I = np.eye(2)


def _bin_list(num, length):
    return [int(b) for b in format(num, "0{}b".format(length))]


def _get_static_RZ(q):
    ba = np.array([_bin_list(x, q) for x in range(2 ** q)], dtype=np.float64)
    ba = ba[:, ::-1]                              # torch.flip(..., dims=(-1,))
    return -np.ones((2 ** q, q)) + 2.0 * ba       # (16, 4) sign matrix


def _get_states(q):
    return np.array([_bin_list(x, q) for x in range(2 ** q)], dtype=np.float64)


def _get_all_H(q):
    u = _H
    for _ in range(1, q):
        u = np.kron(u, _H)
    return u


def _get_CNOT(control, target, qubits):
    swap = True
    if control > target:
        swap = False
        control, target = target, control
    diff = target - control
    if diff > 1:
        scaler = np.eye(2 ** (diff - 1))
        upper = np.kron(scaler, _I)
        lower = np.kron(scaler, _X)
    else:
        upper, lower = _I, _X
    unitary = (np.kron(np.array([[1., 0.], [0., 0.]]), upper)
               + np.kron(np.array([[0., 0.], [0., 1.]]), lower))
    if swap:
        swap_m = _H
        for _ in range(1, diff + 1):
            swap_m = np.kron(swap_m, _H)
        unitary = swap_m @ unitary @ swap_m
    if qubits > diff + 1:
        bits_before = int(control - 1)
        bits_after = int(qubits - target)
        unitary = np.kron(np.eye(2 ** bits_after),
                          np.kron(unitary, np.eye(2 ** bits_before)))
    return unitary


def _get_CNOT_ring(n):
    u = _get_CNOT(1, 2, n)
    for i in range(2, n):
        u = _get_CNOT(i, i + 1, n) @ u
    u = _get_CNOT(n, 1, n) @ u
    return u


def _get_RX(rotations, qubits):
    def rx(t):
        c, s = np.cos(t / 2.0), np.sin(t / 2.0)
        return np.array([[c, -1j * s], [-1j * s, c]], dtype=np.complex128)
    u = rx(rotations[0])
    for i in range(1, qubits):
        u = np.kron(rx(rotations[i]), u)
    return u


def _literal_RZZ(rotation):
    # Literal translation of QuantumConv2d.get_RZZ.  The reference overrides
    # its per-pair qubit argument with the full tuple table, so every pairwise
    # RZZ uses control=1, target=4; only the rotation angle differs per pair.
    b1 = np.exp(1j * rotation / 2.0)
    b2 = np.exp(-1j * rotation / 2.0)
    core = np.diag(np.array([b2, b1, b1, b2]))          # kron(core, eye(1))
    upper = np.kron(np.eye(4), core[:2, :2])
    lower = np.kron(np.eye(4), core[2:, 2:])
    return (np.kron(np.array([[1., 0.], [0., 0.]]), upper)
            + np.kron(np.array([[0., 0.], [0., 1.]]), lower))


# The RZZ interconnection is a product of 6 copies of the diagonal operator
# above (angles = pairwise products x_i*x_j), i.e. diag(exp(i*s_k*rot/2)) with
# rot = sum_{i<j} x_i x_j.  Read the sign pattern s_k straight off the literal
# operator so the kernel constant is tied to the reference construction.
_RZZ_SIGN = np.round(np.angle(np.diag(_literal_RZZ(2.0))))        # (16,) of +-1


# ---------------------------------------------------------------------------
# The single fused Pallas kernel (one grid step = one batch block).
# Layout: rows (sublanes) = images in the block, columns (lanes) = features.
# ---------------------------------------------------------------------------
def _qcnn_kernel(x_ref,      # (B_blk, 784)  raw image raster
                 w1_ref,     # (784, 256)    conv1 (pad=2) + patch hierarchy folded
                 b1_ref,     # (1, 1) SMEM   conv1 bias
                 w2_ref,     # (256, 64)     conv2 as block-diagonal matmul
                 b2_ref,     # (1, 1) SMEM   conv2 bias
                 sp_ref,     # (64, 16)      per-patch sum operator
                 rz2_ref,    # (64, 512)     stacked RZ sign matrix (per patch)
                 sz2_ref,    # (16, 512)     stacked RZZ sign diagonal (per patch)
                 off2_ref,   # (1, 512)      [0]*16 + [-pi/2]*16 per patch (cos->sin)
                 u2_ref,     # (512, 512)    block-diag [[Re U, -Im U],[Im U, Re U]]^T
                 wfc_ref,    # (512, 10)     measurement + perm_back + 1/16 + fc1 folded
                 fcb_ref,    # (1, 10)       fc1 bias
                 out_ref):   # (B_blk, 10)   softmax probabilities
    f32 = jnp.float32
    x = x_ref[...]                                                     # (B, 784)
    b1 = b1_ref[0, 0]
    b2 = b2_ref[0, 0]

    # conv1 (2x2 / stride 2 / pad 2) + ReLU.  Padding + the hierarchical patch
    # extraction are baked into w1 -> one MXU push, no XLA-side slab / HBM
    # round trip.  (TODO(synk): if a bundle dump ever shows MXU saturating,
    # this ~99%-zero matmul can move to strided VPU FMAs.)
    y1 = jnp.maximum(jnp.dot(x, w1_ref[...], preferred_element_type=f32) + b1, 0.0)   # (B,256)
    # conv2 (2x2 / stride 2) + ReLU as block-diagonal matmul.
    y2 = jnp.maximum(jnp.dot(y1, w2_ref[...], preferred_element_type=f32) + b2, 0.0)  # (B,64)

    # --- QuantumConv2d: |psi> = RZZ*RZ*H|0000> = 0.25*exp(i*theta) ----------
    # rot_p = sum_{i<j} x_i x_j = 0.5*((sum x)^2 - sum x^2) per patch.
    s = jnp.dot(y2, sp_ref[...], preferred_element_type=f32)            # (B, 16)
    ss = jnp.dot(y2 * y2, sp_ref[...], preferred_element_type=f32)      # (B, 16)
    rot = 0.5 * (s * s - ss)                                            # (B, 16)
    # theta2 holds [theta_k, theta_k - pi/2] per patch so one cos() gives
    # [cos(theta) | sin(theta)] -> single merged MXU push for the unitary.
    theta2 = (jnp.dot(y2, rz2_ref[...], preferred_element_type=f32)
              + jnp.dot(rot, sz2_ref[...], preferred_element_type=f32)
              + off2_ref[...])                                          # (B, 512)
    c2 = jnp.cos(theta2)                                                # [cos | sin]

    # (CNOT @ RX) |psi> collapsed to one real block-diagonal matmul:
    # columns [4*Re(amp) | 4*Im(amp)] per patch.
    z = jnp.dot(c2, u2_ref[...], preferred_element_type=f32)            # (B, 512)
    zz = z * z                                                          # 16*|amp|^2

    # fc1 (+ measurement projection |amp|^2 @ states, 1/16 scale, output
    # back-permutation and the exactly-no-op ReLU, all folded into wfc)
    # + softmax over classes.
    logits = jnp.dot(zz, wfc_ref[...], preferred_element_type=f32) + fcb_ref[...]     # (B, 10)
    m = jnp.max(logits, axis=-1, keepdims=True)
    e = jnp.exp(logits - m)
    out_ref[...] = e / jnp.sum(e, axis=-1, keepdims=True)


# ---------------------------------------------------------------------------
# Model
# ---------------------------------------------------------------------------
class QuantumConvNetPallas:
    """Pallas-TPU translation of QuantumConvNet (inference forward pass)."""

    def __init__(self, key):
        k = jax.random.split(key, 6)
        # Parameters mirroring QuantumConvNet's modules.
        self.conv1_w = jax.random.normal(k[0], (2, 2), jnp.float32) * 0.5
        self.conv1_b = jax.random.normal(k[1], (1,), jnp.float32) * 0.1
        self.conv2_w = jax.random.normal(k[2], (2, 2), jnp.float32) * 0.5
        self.conv2_b = jax.random.normal(k[3], (1,), jnp.float32) * 0.1
        self.q_weight = jax.random.normal(k[4], (2, 2), jnp.float32)
        self.fc_w = jax.random.normal(k[5], (10, 64), jnp.float32) * 0.1
        self.fc_b = jnp.zeros((10,), jnp.float32)

        self._build_constants()
        self._forward = jax.jit(self._forward_impl)

    # -----------------------------------------------------------------------
    def _build_constants(self):
        # TODO(synk): constants are baked at __init__ (inference translation);
        # if q_weight / conv / fc params are trained they must be rebuilt and
        # no gradients flow through the baked circuit unitaries.
        w1 = np.asarray(self.conv1_w, np.float64)                    # (2, 2)
        w2f = np.asarray(self.conv2_w, np.float64).reshape(-1)       # (4,)

        # conv1 (pad=2) + hierarchical patch extraction folded into (784, 256).
        # Column m = 16*p + 4*e2 + e1 with p = 4r+c the quantum patch, e2 the
        # patch element (conv2 output), e1 the conv1 output inside its conv2
        # window; the padded pixel feeding it via conv1 weight w1[u0, v0] is
        # (8r+4u2+2u1+u0, 8c+4v2+2v1+v0); out-of-image (padding) pixels drop.
        W1 = np.zeros((FEAT_IN, N_C1), np.float64)
        for p in range(NPATCH):
            r, c = divmod(p, 4)
            for e2 in range(4):
                u2, v2 = divmod(e2, 2)
                for e1 in range(4):
                    u1, v1 = divmod(e1, 2)
                    m = 16 * p + 4 * e2 + e1
                    for e0 in range(4):
                        u0, v0 = divmod(e0, 2)
                        ii = 8 * r + 4 * u2 + 2 * u1 + u0 - 2        # -2 = pad
                        jj = 8 * c + 4 * v2 + 2 * v1 + v0 - 2
                        if 0 <= ii < IMG and 0 <= jj < IMG:
                            W1[IMG * ii + jj, m] = w1[u0, v0]
        self.W1 = jnp.asarray(W1, jnp.float32)                       # (784, 256)

        self.W2 = jnp.asarray(np.kron(np.eye(N_C2), w2f.reshape(4, 1)),
                              jnp.float32)                           # (256, 64)
        self.B1 = jnp.asarray(np.asarray(self.conv1_b).reshape(1, 1), jnp.float32)
        self.B2 = jnp.asarray(np.asarray(self.conv2_b).reshape(1, 1), jnp.float32)

        # Per-patch sum operator (for rot = 0.5*((sum x)^2 - sum x^2)).
        self.SP = jnp.asarray(np.kron(np.eye(NPATCH), np.ones((4, 1))),
                              jnp.float32)                           # (64, 16)

        # Stacked angle operators: columns 32p+m, m<16 -> theta_k, m>=16 ->
        # theta_k - pi/2 (so cos gives sin).
        rzh = -0.5 * _get_static_RZ(QUBITS)                          # (16, 4)
        rzh2 = np.concatenate([rzh, rzh], axis=0)                    # (32, 4)
        self.RZ2 = jnp.asarray(np.kron(np.eye(NPATCH), rzh2.T), jnp.float32)   # (64, 512)

        srzz = 0.5 * _RZZ_SIGN                                       # (16,)
        srzz2 = np.concatenate([srzz, srzz])[None, :]                # (1, 32)
        self.SZ2 = jnp.asarray(np.kron(np.eye(NPATCH), srzz2), jnp.float32)    # (16, 512)

        off2 = np.concatenate([np.zeros(DIM), -0.5 * np.pi * np.ones(DIM)])
        self.OFF2 = jnp.asarray(np.tile(off2, NPATCH)[None, :], jnp.float32)   # (1, 512)

        # U = CNOT @ RX; merged real operator acting on [cos(theta) | sin(theta)]
        # producing [4*Re(amp) | 4*Im(amp)], block-diagonal over patches.
        cnot = _get_CNOT_ring(QUBITS)
        rx = _get_RX(np.asarray(self.q_weight, np.float64).reshape(-1), QUBITS)
        u = cnot @ rx                                                # 16x16 complex
        ure, uim = np.real(u), np.imag(u)
        uc = np.concatenate([ure, uim], axis=0)                      # (32, 16) * cos
        us = np.concatenate([-uim, ure], axis=0)                     # (32, 16) * sin
        u2 = np.concatenate([uc, us], axis=1)                        # (32, 32)
        self.U2 = jnp.asarray(np.kron(np.eye(NPATCH), u2.T), jnp.float32)       # (512, 512)

        # Fold |amp|^2 @ states, the 1/16 normalisation, the QuantumConv2d
        # back-permutation (patch (r,c), element (u,v) -> spatial (2r+u,2c+v)),
        # the no-op ReLU and fc1 into one (512, 10) matrix; Re^2 and Im^2
        # columns of zz share the same weight.
        states = _get_states(QUBITS)                                 # (16, 4)
        fc_w = np.asarray(self.fc_w, np.float64)                     # (10, 64)
        p_ar = np.arange(NPATCH)
        e_ar = np.arange(KS * KS)
        r, c = p_ar // 4, p_ar % 4
        uu, vv = e_ar // 2, e_ar % 2
        fidx = (2 * r[:, None] + uu[None, :]) * SIZE + (2 * c[:, None] + vv[None, :])  # (16, 4)
        wpe = fc_w[:, fidx]                                          # (10, 16, 4)
        wfc = np.einsum("ope,ke->opk", wpe, states / float(DIM))     # (10, 16, 16)
        wfc_dup = np.concatenate([wfc, wfc], axis=2)                 # (10, 16, 32)
        self.WFC = jnp.asarray(wfc_dup.transpose(1, 2, 0).reshape(N_TH, 10),
                               jnp.float32)                          # (512, 10)
        self.FCB = jnp.asarray(np.asarray(self.fc_b).reshape(1, 10), jnp.float32)

    # -----------------------------------------------------------------------
    def _forward_impl(self, x_nchw):
        B = x_nchw.shape[0]
        # Raw raster, no pad / transpose / HBM round trip: (B, 1, 28, 28) -> (B, 784).
        x = x_nchw.reshape(B, -1).astype(jnp.float32)

        # Batch block: multiple of 8 sublanes, capped at 128 per grid step
        # (keeps per-block VMEM small for v7x and lets the "parallel" grid
        # axis split larger batches across both v7x TensorCores).
        b_blk = min(128, ((B + 7) // 8) * 8)
        b_pad = ((B + b_blk - 1) // b_blk) * b_blk
        if b_pad != B:
            x = jnp.pad(x, ((0, b_pad - B), (0, 0)))
        grid = (b_pad // b_blk,)

        const = lambda i: (0, 0)   # constants stay resident across grid steps
        # TODO(synk): default matmul precision matched the f64 reference at
        # 2e-2; pass precision=HIGHEST inside the kernel if tighter agreement
        # is ever required.  pipeline_mode=pl.Buffered(3) on the x spec is a
        # further option if xprof shows the per-step input DMA exposed.
        out = pl.pallas_call(
            _qcnn_kernel,
            out_shape=jax.ShapeDtypeStruct((b_pad, 10), jnp.float32),
            grid=grid,
            in_specs=[
                pl.BlockSpec((b_blk, FEAT_IN), lambda i: (i, 0)),            # x block
                pl.BlockSpec((FEAT_IN, N_C1), const),                        # W1
                pl.BlockSpec(memory_space=pltpu.MemorySpace.SMEM),           # b1 scalar
                pl.BlockSpec((N_C1, N_C2), const),                           # W2
                pl.BlockSpec(memory_space=pltpu.MemorySpace.SMEM),           # b2 scalar
                pl.BlockSpec((N_C2, NPATCH), const),                         # SP
                pl.BlockSpec((N_C2, N_TH), const),                           # RZ2
                pl.BlockSpec((NPATCH, N_TH), const),                         # SZ2
                pl.BlockSpec((1, N_TH), const),                              # OFF2
                pl.BlockSpec((N_TH, N_TH), const),                           # U2
                pl.BlockSpec((N_TH, 10), const),                             # WFC
                pl.BlockSpec((1, 10), const),                                # FCB
            ],
            out_specs=pl.BlockSpec((b_blk, 10), lambda i: (i, 0)),
            compiler_params=pltpu.CompilerParams(
                dimension_semantics=("parallel",)),
        )(x, self.W1, self.B1, self.W2, self.B2, self.SP, self.RZ2,
          self.SZ2, self.OFF2, self.U2, self.WFC, self.FCB)
        return out[:B]                                                # (B, 10)

    def __call__(self, x_nchw):
        return self._forward(x_nchw)


# ---------------------------------------------------------------------------
# Literal float64 numpy reference (mirrors the PyTorch module op-for-op,
# including the original permutations and the per-pair RZZ operator products)
# used to validate the fused kernel numerically.
# ---------------------------------------------------------------------------
def _reference_forward(model, x_nchw):
    x = np.asarray(x_nchw, np.float64)[:, 0]                    # (B, 28, 28)
    B = x.shape[0]

    def conv2x2(a, w, b, pad):
        if pad:
            a = np.pad(a, ((0, 0), (pad, pad), (pad, pad)))
        out = np.zeros((B, a.shape[1] // 2, a.shape[2] // 2))
        for u in range(2):
            for v in range(2):
                out = out + w[u, v] * a[:, u::2, v::2]
        return np.maximum(out + b, 0.0)

    y = conv2x2(x, np.asarray(model.conv1_w, np.float64),
                float(np.asarray(model.conv1_b)[0]), 2)          # (B, 16, 16)
    y = conv2x2(y, np.asarray(model.conv2_w, np.float64),
                float(np.asarray(model.conv2_b)[0]), 0)          # (B, 8, 8)

    idx = np.arange(SIZE * SIZE // KS)
    sub_perm = ((idx % SIZE) * (SIZE // KS) + idx // SIZE).astype(int)
    div = SIZE // KS
    perm_back = ((idx % div) * SIZE + idx // div).astype(int)

    h4 = _get_all_H(QUBITS)
    sign = _get_static_RZ(QUBITS)
    states = _get_states(QUBITS)
    cnot = _get_CNOT_ring(QUBITS)
    rx = _get_RX(np.asarray(model.q_weight, np.float64).reshape(-1), QUBITS)

    def sub_forward(patch):                                      # (2, 2)
        xv = patch.reshape(-1)
        rz = np.diag(np.exp(np.sum(sign * (xv / 2j), axis=-1)))
        rot_mul = np.outer(xv, xv).reshape(-1)[[1, 2, 3, 6, 7, 11]]
        ops = [_literal_RZZ(rr) for rr in rot_mul]
        rzz = ops[-1]
        for i in range(len(ops) - 1):
            rzz = rzz @ ops[len(ops) - 2 - i]
        final = cnot @ rx @ rzz @ rz @ h4
        return (np.abs(final[:, 0]) ** 2) @ states               # (4,)

    out = y.reshape(B, SIZE * SIZE // 2, 1, 2)
    out = out[:, sub_perm].reshape(B, SIZE * SIZE // (KS * KS), 2, 2)
    out = out.reshape(B * NPATCH, 2, 2)
    res = np.stack([sub_forward(out[i]) for i in range(out.shape[0])])
    res = res.reshape(B, 2 * NPATCH, 2)
    res = res[:, perm_back, :].reshape(B, SIZE, SIZE)
    res = np.maximum(res, 0.0)

    feats = res.reshape(B, SIZE * SIZE)
    logits = feats @ np.asarray(model.fc_w, np.float64).T + np.asarray(model.fc_b, np.float64)
    ez = np.exp(logits - logits.max(axis=-1, keepdims=True))
    return ez / ez.sum(axis=-1, keepdims=True)


if __name__ == "__main__":
    key = jax.random.PRNGKey(0)
    k_param, k_in = jax.random.split(key)
    model = QuantumConvNetPallas(k_param)
    x = jax.random.normal(k_in, (2, 1, 28, 28), jnp.float32)     # MNIST-like, batch=2
    out = jax.block_until_ready(model(x))

    assert out.shape == (2, 10)
    assert bool(jnp.all(jnp.isfinite(out)))
    assert bool(jnp.allclose(jnp.sum(out, axis=-1), 1.0, atol=1e-5))

    # Numerical validation against the literal float64 reference.
    ref = _reference_forward(model, np.asarray(x))
    np.testing.assert_allclose(np.asarray(out), ref, rtol=2e-2, atol=2e-2)

    print("KERNEL_OK")
</pallas_src>

<mosaic_0001>
module attributes {stable_mosaic.version = 11 : i64} {
  func.func @_qcnn_kernel(%arg0: i32, %arg1: memref<8x784xf32, #tpu.memory_space<vmem>>, %arg2: memref<784x256xf32, #tpu.memory_space<vmem>>, %arg3: memref<1x1xf32, #tpu.memory_space<smem>>, %arg4: memref<256x64xf32, #tpu.memory_space<vmem>>, %arg5: memref<1x1xf32, #tpu.memory_space<smem>>, %arg6: memref<64x16xf32, #tpu.memory_space<vmem>>, %arg7: memref<64x512xf32, #tpu.memory_space<vmem>>, %arg8: memref<16x512xf32, #tpu.memory_space<vmem>>, %arg9: memref<1x512xf32, #tpu.memory_space<vmem>>, %arg10: memref<512x512xf32, #tpu.memory_space<vmem>>, %arg11: memref<512x10xf32, #tpu.memory_space<vmem>>, %arg12: memref<1x10xf32, #tpu.memory_space<vmem>>, %arg13: memref<8x10xf32, #tpu.memory_space<vmem>>) attributes {dimension_semantics = [#tpu.dimension_semantics<parallel>], iteration_bounds = array<i64: 1>, scalar_prefetch = 0 : i64, scratch_operands = 0 : i64, tpu.core_type = #tpu.core_type<tc>, window_params = [{transform_indices = @transform_0, window_bounds = array<i64: 8, 784>}, {pipeline_mode = #tpu.pipeline_mode<synchronous>, transform_indices = @transform_1, window_bounds = array<i64: 784, 256>}, {transform_indices = @transform_2, window_bounds = array<i64: 1, 1>}, {pipeline_mode = #tpu.pipeline_mode<synchronous>, transform_indices = @transform_3, window_bounds = array<i64: 256, 64>}, {transform_indices = @transform_4, window_bounds = array<i64: 1, 1>}, {pipeline_mode = #tpu.pipeline_mode<synchronous>, transform_indices = @transform_5, window_bounds = array<i64: 64, 16>}, {pipeline_mode = #tpu.pipeline_mode<synchronous>, transform_indices = @transform_6, window_bounds = array<i64: 64, 512>}, {pipeline_mode = #tpu.pipeline_mode<synchronous>, transform_indices = @transform_7, window_bounds = array<i64: 16, 512>}, {pipeline_mode = #tpu.pipeline_mode<synchronous>, transform_indices = @transform_8, window_bounds = array<i64: 1, 512>}, {pipeline_mode = #tpu.pipeline_mode<synchronous>, transform_indices = @transform_9, window_bounds = array<i64: 512, 512>}, {pipeline_mode = #tpu.pipeline_mode<synchronous>, transform_indices = @transform_10, window_bounds = array<i64: 512, 10>}, {pipeline_mode = #tpu.pipeline_mode<synchronous>, transform_indices = @transform_11, window_bounds = array<i64: 1, 10>}, {transform_indices = @transform_12, window_bounds = array<i64: 8, 10>}]} {
    %c0 = arith.constant 0 : index
    %c0_0 = arith.constant 0 : index
    %0 = vector.load %arg1[%c0, %c0_0] : memref<8x784xf32, #tpu.memory_space<vmem>>, vector<8x784xf32>
    %c0_1 = arith.constant 0 : index
    %c0_2 = arith.constant 0 : index
    %1 = memref.load %arg3[%c0_1, %c0_2] : memref<1x1xf32, #tpu.memory_space<smem>>
    %c0_3 = arith.constant 0 : index
    %c0_4 = arith.constant 0 : index
    %2 = memref.load %arg5[%c0_3, %c0_4] : memref<1x1xf32, #tpu.memory_space<smem>>
    %c0_5 = arith.constant 0 : index
    %c0_6 = arith.constant 0 : index
    %3 = vector.load %arg2[%c0_5, %c0_6] : memref<784x256xf32, #tpu.memory_space<vmem>>, vector<784x256xf32>
    %cst = arith.constant dense<0.000000e+00> : vector<8x256xf32>
    %4 = tpu.matmul %0, %3, %cst {dimension_numbers = #tpu.dot_dimension_numbers<[1], [0], [0], [1], [0, 0, 1, 1], [], []>} : vector<8x784xf32>, vector<784x256xf32>, vector<8x256xf32> -> vector<8x256xf32>
    %5 = vector.broadcast %1 : f32 to vector<8x256xf32>
    %6 = arith.addf %4, %5 : vector<8x256xf32>
    %cst_7 = arith.constant 0.000000e+00 : f32
    %7 = vector.broadcast %cst_7 : f32 to vector<8x256xf32>
    %8 = arith.maximumf %6, %7 : vector<8x256xf32>
    %c0_8 = arith.constant 0 : index
    %c0_9 = arith.constant 0 : index
    %9 = vector.load %arg4[%c0_8, %c0_9] : memref<256x64xf32, #tpu.memory_space<vmem>>, vector<256x64xf32>
    %cst_10 = arith.constant dense<0.000000e+00> : vector<8x64xf32>
    %10 = tpu.matmul %8, %9, %cst_10 {dimension_numbers = #tpu.dot_dimension_numbers<[1], [0], [0], [1], [0, 0, 1, 1], [], []>} : vector<8x256xf32>, vector<256x64xf32>, vector<8x64xf32> -> vector<8x64xf32>
    %11 = vector.broadcast %2 : f32 to vector<8x64xf32>
    %12 = arith.addf %10, %11 : vector<8x64xf32>
    %cst_11 = arith.constant 0.000000e+00 : f32
    %13 = vector.broadcast %cst_11 : f32 to vector<8x64xf32>
    %14 = arith.maximumf %12, %13 : vector<8x64xf32>
    %c0_12 = arith.constant 0 : index
    %c0_13 = arith.constant 0 : index
    %15 = vector.load %arg6[%c0_12, %c0_13] : memref<64x16xf32, #tpu.memory_space<vmem>>, vector<64x16xf32>
    %cst_14 = arith.constant dense<0.000000e+00> : vector<8x16xf32>
    %16 = tpu.matmul %14, %15, %cst_14 {dimension_numbers = #tpu.dot_dimension_numbers<[1], [0], [0], [1], [0, 0, 1, 1], [], []>} : vector<8x64xf32>, vector<64x16xf32>, vector<8x16xf32> -> vector<8x16xf32>
    %17 = arith.mulf %14, %14 : vector<8x64xf32>
    %c0_15 = arith.constant 0 : index
    %c0_16 = arith.constant 0 : index
    %18 = vector.load %arg6[%c0_15, %c0_16] : memref<64x16xf32, #tpu.memory_space<vmem>>, vector<64x16xf32>
    %cst_17 = arith.constant dense<0.000000e+00> : vector<8x16xf32>
    %19 = tpu.matmul %17, %18, %cst_17 {dimension_numbers = #tpu.dot_dimension_numbers<[1], [0], [0], [1], [0, 0, 1, 1], [], []>} : vector<8x64xf32>, vector<64x16xf32>, vector<8x16xf32> -> vector<8x16xf32>
    %20 = arith.mulf %16, %16 : vector<8x16xf32>
    %21 = arith.subf %20, %19 : vector<8x16xf32>
    %cst_18 = arith.constant 5.000000e-01 : f32
    %22 = vector.broadcast %cst_18 : f32 to vector<8x16xf32>
    %23 = arith.mulf %22, %21 : vector<8x16xf32>
    %c0_19 = arith.constant 0 : index
    %c0_20 = arith.constant 0 : index
    %24 = vector.load %arg7[%c0_19, %c0_20] : memref<64x512xf32, #tpu.memory_space<vmem>>, vector<64x512xf32>
    %cst_21 = arith.constant dense<0.000000e+00> : vector<8x512xf32>
    %25 = tpu.matmul %14, %24, %cst_21 {dimension_numbers = #tpu.dot_dimension_numbers<[1], [0], [0], [1], [0, 0, 1, 1], [], []>} : vector<8x64xf32>, vector<64x512xf32>, vector<8x512xf32> -> vector<8x512xf32>
    %c0_22 = arith.constant 0 : index
    %c0_23 = arith.constant 0 : index
    %26 = vector.load %arg8[%c0_22, %c0_23] : memref<16x512xf32, #tpu.memory_space<vmem>>, vector<16x512xf32>
    %cst_24 = arith.constant dense<0.000000e+00> : vector<8x512xf32>
    %27 = tpu.matmul %23, %26, %cst_24 {dimension_numbers = #tpu.dot_dimension_numbers<[1], [0], [0], [1], [0, 0, 1, 1], [], []>} : vector<8x16xf32>, vector<16x512xf32>, vector<8x512xf32> -> vector<8x512xf32>
    %28 = arith.addf %25, %27 : vector<8x512xf32>
    %c0_25 = arith.constant 0 : index
    %c0_26 = arith.constant 0 : index
    %29 = vector.load %arg9[%c0_25, %c0_26] : memref<1x512xf32, #tpu.memory_space<vmem>>, vector<1x512xf32>
    %30 = vector.broadcast %29 : vector<1x512xf32> to vector<8x512xf32>
    %31 = arith.addf %28, %30 : vector<8x512xf32>
    %32 = math.cos %31 : vector<8x512xf32>
    %c0_27 = arith.constant 0 : index
    %c0_28 = arith.constant 0 : index
    %33 = vector.load %arg10[%c0_27, %c0_28] : memref<512x512xf32, #tpu.memory_space<vmem>>, vector<512x512xf32>
    %cst_29 = arith.constant dense<0.000000e+00> : vector<8x512xf32>
    %34 = tpu.matmul %32, %33, %cst_29 {dimension_numbers = #tpu.dot_dimension_numbers<[1], [0], [0], [1], [0, 0, 1, 1], [], []>} : vector<8x512xf32>, vector<512x512xf32>, vector<8x512xf32> -> vector<8x512xf32>
    %35 = arith.mulf %34, %34 : vector<8x512xf32>
    %c0_30 = arith.constant 0 : index
    %c0_31 = arith.constant 0 : index
    %36 = vector.load %arg11[%c0_30, %c0_31] : memref<512x10xf32, #tpu.memory_space<vmem>>, vector<512x10xf32>
    %cst_32 = arith.constant dense<0.000000e+00> : vector<8x10xf32>
    %37 = tpu.matmul %35, %36, %cst_32 {dimension_numbers = #tpu.dot_dimension_numbers<[1], [0], [0], [1], [0, 0, 1, 1], [], []>} : vector<8x512xf32>, vector<512x10xf32>, vector<8x10xf32> -> vector<8x10xf32>
    %c0_33 = arith.constant 0 : index
    %c0_34 = arith.constant 0 : index
    %38 = vector.load %arg12[%c0_33, %c0_34] : memref<1x10xf32, #tpu.memory_space<vmem>>, vector<1x10xf32>
    %39 = vector.broadcast %38 : vector<1x10xf32> to vector<8x10xf32>
    %40 = arith.addf %37, %39 : vector<8x10xf32>
    %cst_35 = arith.constant dense<0xFF800000> : vector<8xf32>
    %41 = vector.multi_reduction <maximumf>, %40, %cst_35 [1] : vector<8x10xf32> to vector<8xf32>
    %42 = vector.shape_cast %41 : vector<8xf32> to vector<8x1xf32>
    %43 = vector.broadcast %42 : vector<8x1xf32> to vector<8x10xf32>
    %44 = arith.subf %40, %43 : vector<8x10xf32>
    %45 = math.exp %44 : vector<8x10xf32>
    %cst_36 = arith.constant dense<0.000000e+00> : vector<8xf32>
    %46 = vector.multi_reduction <add>, %45, %cst_36 [1] : vector<8x10xf32> to vector<8xf32>
    %47 = vector.shape_cast %46 : vector<8xf32> to vector<8x1xf32>
    %48 = vector.broadcast %47 : vector<8x1xf32> to vector<8x10xf32>
    %49 = arith.divf %45, %48 : vector<8x10xf32>
    %c0_37 = arith.constant 0 : index
    %c0_38 = arith.constant 0 : index
    %50 = vector.load %arg13[%c0_37, %c0_38] : memref<8x10xf32, #tpu.memory_space<vmem>>, vector<8x10xf32>
    tpu.vector_store %arg13[%c0_37, %c0_38], %49 {strides = array<i32>} : memref<8x10xf32, #tpu.memory_space<vmem>>, vector<8x10xf32>,
    return
  }
  func.func @transform_0(%arg0: i32) -> (i32, i32) {
    %c0_i32 = arith.constant 0 : i32
    %c0_i32_0 = arith.constant 0 : i32
    return %arg0, %c0_i32 : i32, i32
  }
  func.func @transform_1(%arg0: i32) -> (i32, i32) {
    %c0_i32 = arith.constant 0 : i32
    %c0_i32_0 = arith.constant 0 : i32
    %c0_i32_1 = arith.constant 0 : i32
    return %c0_i32, %c0_i32_0 : i32, i32
  }
  func.func @transform_2(%arg0: i32) -> (i32, i32) {
    %c0_i32 = arith.constant 0 : i32
    %c0_i32_0 = arith.constant 0 : i32
    %c0_i32_1 = arith.constant 0 : i32
    return %c0_i32, %c0_i32_0 : i32, i32
  }
  func.func @transform_3(%arg0: i32) -> (i32, i32) {
    %c0_i32 = arith.constant 0 : i32
    %c0_i32_0 = arith.constant 0 : i32
    %c0_i32_1 = arith.constant 0 : i32
    return %c0_i32, %c0_i32_0 : i32, i32
  }
  func.func @transform_4(%arg0: i32) -> (i32, i32) {
    %c0_i32 = arith.constant 0 : i32
    %c0_i32_0 = arith.constant 0 : i32
    %c0_i32_1 = arith.constant 0 : i32
    return %c0_i32, %c0_i32_0 : i32, i32
  }
  func.func @transform_5(%arg0: i32) -> (i32, i32) {
    %c0_i32 = arith.constant 0 : i32
    %c0_i32_0 = arith.constant 0 : i32
    %c0_i32_1 = arith.constant 0 : i32
    return %c0_i32, %c0_i32_0 : i32, i32
  }
  func.func @transform_6(%arg0: i32) -> (i32, i32) {
    %c0_i32 = arith.constant 0 : i32
    %c0_i32_0 = arith.constant 0 : i32
    %c0_i32_1 = arith.constant 0 : i32
    return %c0_i32, %c0_i32_0 : i32, i32
  }
  func.func @transform_7(%arg0: i32) -> (i32, i32) {
    %c0_i32 = arith.constant 0 : i32
    %c0_i32_0 = arith.constant 0 : i32
    %c0_i32_1 = arith.constant 0 : i32
    return %c0_i32, %c0_i32_0 : i32, i32
  }
  func.func @transform_8(%arg0: i32) -> (i32, i32) {
    %c0_i32 = arith.constant 0 : i32
    %c0_i32_0 = arith.constant 0 : i32
    %c0_i32_1 = arith.constant 0 : i32
    return %c0_i32, %c0_i32_0 : i32, i32
  }
  func.func @transform_9(%arg0: i32) -> (i32, i32) {
    %c0_i32 = arith.constant 0 : i32
    %c0_i32_0 = arith.constant 0 : i32
    %c0_i32_1 = arith.constant 0 : i32
    return %c0_i32, %c0_i32_0 : i32, i32
  }
  func.func @transform_10(%arg0: i32) -> (i32, i32) {
    %c0_i32 = arith.constant 0 : i32
    %c0_i32_0 = arith.constant 0 : i32
    %c0_i32_1 = arith.constant 0 : i32
    return %c0_i32, %c0_i32_0 : i32, i32
  }
  func.func @transform_11(%arg0: i32) -> (i32, i32) {
    %c0_i32 = arith.constant 0 : i32
    %c0_i32_0 = arith.constant 0 : i32
    %c0_i32_1 = arith.constant 0 : i32
    return %c0_i32, %c0_i32_0 : i32, i32
  }
  func.func @transform_12(%arg0: i32) -> (i32, i32) {
    %c0_i32 = arith.constant 0 : i32
    %c0_i32_0 = arith.constant 0 : i32
    return %arg0, %c0_i32 : i32, i32
  }
}

</mosaic_0001>

<bundles_post_ra>
// kernel: _forward_impl.1
= control target key start
LH: loop header
LB: loop body
LE: loop exit
PB: predicated region body
PF: predicated region fallthrough
CT: control target
= control target key end

     0   :  { %19 = vsyncpa [#allocation5], 0  ;;  %s3450_s0 = inlined_call_operand.vmem [shape: f32[8,784], index: 0, kind: input, shape index: {}]   ;;  %s3451_s1 = inlined_call_operand.hbm [shape: f32[784,256], index: 1, kind: input, shape index: {}]   ;;  %s3452_s2 = inlined_call_operand.<no memory space> [shape: f32[1,1], index: 2, kind: input, shape index: {}]   ;;  %s3453_s3 = inlined_call_operand.vmem [shape: f32[256,64], index: 3, kind: input, shape index: {}]   ;;  %s3454_s4 = inlined_call_operand.<no memory space> [shape: f32[1,1], index: 4, kind: input, shape index: {}]   ;;  %s3455_s5 = inlined_call_operand.hbm [shape: f32[64,16], index: 5, kind: input, shape index: {}]   ;;  %s3456_s6 = inlined_call_operand.hbm [shape: f32[64,512], index: 6, kind: input, shape index: {}]   ;;  %s3457_s7 = inlined_call_operand.hbm [shape: f32[16,512], index: 7, kind: input, shape index: {}]   ;;  %s3458_s8 = inlined_call_operand.vmem [shape: f32[1,512], index: 8, kind: input, shape index: {}]   ;;  %s3459_s9 = inlined_call_operand.hbm [shape: f32[512,512], index: 9, kind: input, shape index: {}]   ;;  %s3460_s10 = inlined_call_operand.hbm [shape: f32[512,10], index: 10, kind: input, shape index: {}]   ;;  %s3461_s11 = inlined_call_operand.vmem [shape: f32[1,10], index: 11, kind: input, shape index: {}]   ;;  %s3462_s12 = inlined_call_operand.vmem [shape: f32[8,10], index: 12, kind: output, shape index: {}]  }
   0x1   :  { %20 = vsyncpa [#allocation7], 0 }
   0x2   :  { %21 = vsyncpa [#allocation10], 0 }
   0x3   :  { %22 = vsyncpa [#allocation13], 0  ;;  %s2794_s21 = smov [#allocation6]  }
   0x4   :  { %s48_s22 = sshll.u32 %s2794_s21, 4  ;;  %s49_s22 = int_to_ptr.vmem [resolvable:$true] %s48_s22 }
   0x5   :  { %s2674_s23 = scalar_lea.vmem %s49_s22, 1024  ;;  %p2679_p1 = scmp.lt.s32.totalorder %s49_s22, %s49_s22 }
   0x6   :  { %p2675_p0 = scmp.ne.s32.totalorder %s49_s22, %s2674_s23  ;;  %p2680_p2 = scmp.lt.s32.totalorder %s2674_s23, %s2674_s23 }
   0x8   :  { %p2681_p3 = por %p2680_p2, %p2679_p1 }
   0xa   :  { %p2682_p4 = pnand %p2681_p3, %p2675_p0 }
   0xc   :  { %2685 = shalt.err (!%p2682_p4)
}
   0xd   :  { %s2795_s24 = smov 128   ;;  %s2796_s25 = smov 8  }
   0xe   :  { %54 = dma.hbm_to_vmem [thread:$0]  %s3455_s5, 1024, %s49_s22, [#allocation7], %s2795_s24, %s2795_s24, %s2796_s25  }
   0xf   :  { %s2797_s28 = smov [#allocation9]   ;;  %s2798_s30 = smov [#allocation4]  }
  0x10   :  { %s72_s29 = sshll.u32 %s2797_s28, 4  ;;  %s30_s13 = sshll.u32 %s2798_s30, 4  ;;  %s73_s29 = int_to_ptr.vmem [resolvable:$true] %s72_s29  ;;  %s31_s13 = int_to_ptr.vmem [resolvable:$true] %s30_s13 }
  0x11   :  { %s2694_s14 = scalar_lea.vmem %s73_s29, 1024  ;;  %p2699_p6 = scmp.lt.s32.totalorder %s73_s29, %s73_s29 }
  0x12   :  { %p2695_p5 = scmp.ne.s32.totalorder %s73_s29, %s2694_s14  ;;  %p2700_p7 = scmp.lt.s32.totalorder %s2694_s14, %s2694_s14 }
  0x14   :  { %p2701_p8 = por %p2700_p7, %p2699_p6 }
  0x16   :  { %p2702_p9 = pnand %p2701_p8, %p2695_p5 }
  0x18   :  { %2705 = shalt.err (!%p2702_p9)
}
  0x19   :  { %s2799_s15 = smov 512   ;;  %s2800_s16 = smov 32  }
  0x1a   :  { %78 = dma.hbm_to_vmem [thread:$0]  %s3457_s7, 1024, %s73_s29, [#allocation10], %s2799_s15, %s2799_s15, %s2800_s16  }
  0x1b   :  { %s2714_s5 = scalar_lea.vmem %s31_s13, 25088  ;;  %p2719_p11 = scmp.lt.s32.totalorder %s31_s13, %s31_s13 }
  0x1c   :  { %p2715_p10 = scmp.ne.s32.totalorder %s31_s13, %s2714_s5  ;;  %p2720_p12 = scmp.lt.s32.totalorder %s2714_s5, %s2714_s5 }
  0x1e   :  { %p2721_p13 = por %p2720_p12, %p2719_p11 }
  0x20   :  { %p2722_p0 = pnand %p2721_p13, %p2715_p10 }
  0x22   :  { %2725 = shalt.err (!%p2722_p0)
}
  0x23   :  { %s2801_s19 = smov 256   ;;  %s2802_s20 = smov 16  }
  0x24   :  { %36 = dma.hbm_to_vmem [thread:$0]  %s3451_s1, 25088, %s31_s13, [#allocation5], %s2801_s19, %s2801_s19, %s2802_s20  }
  0x25   :  { %s2803_s23 = smov [#allocation8]   ;;  %s2804_s27 = smov [#allocation11]  }
  0x26   :  { %s60_s26 = sshll.u32 %s2803_s23, 4  ;;  %s86_s28 = sshll.u32 %s2804_s27, 4  ;;  %s61_s26 = int_to_ptr.vmem [resolvable:$true] %s60_s26  ;;  %s87_s28 = int_to_ptr.vmem [resolvable:$true] %s86_s28 }
  0x27   :  { %s2734_s7 = scalar_lea.vmem %s61_s26, 4096  ;;  %p2739_p2 = scmp.lt.s32.totalorder %s61_s26, %s61_s26 }
  0x28   :  { %p2735_p1 = scmp.ne.s32.totalorder %s61_s26, %s2734_s7  ;;  %p2740_p3 = scmp.lt.s32.totalorder %s2734_s7, %s2734_s7 }
  0x2a   :  { %p2741_p4 = por %p2740_p3, %p2739_p2 }
  0x2c   :  { %p2742_p5 = pnand %p2741_p4, %p2735_p1 }
  0x2e   :  { %2745 = shalt.err (!%p2742_p5)
}
  0x2f   :  { %66 = dma.hbm_to_vmem [thread:$0]  %s3456_s6, 4096, %s61_s26, [#allocation7], %s2799_s15, %s2799_s15, %s2800_s16  }
  0x30   :  { %s2754_s1 = scalar_lea.vmem %s87_s28, 32768  ;;  %p2759_p7 = scmp.lt.s32.totalorder %s87_s28, %s87_s28 }
  0x31   :  { %p2755_p6 = scmp.ne.s32.totalorder %s87_s28, %s2754_s1  ;;  %p2760_p8 = scmp.lt.s32.totalorder %s2754_s1, %s2754_s1 }
  0x33   :  { %p2761_p9 = por %p2760_p8, %p2759_p7 }
  0x35   :  { %p2762_p10 = pnand %p2761_p9, %p2755_p6 }
  0x37   :  { %2765 = shalt.err (!%p2762_p10)
}
  0x38   :  { %92 = dma.hbm_to_vmem [thread:$0]  %s3459_s9, 32768, %s87_s28, [#allocation10], %s2799_s15, %s2799_s15, %s2800_s16  }
  0x39   :  { %s2805_s17 = smov [#allocation12]  }
  0x3a   :  { %s98_s18 = sshll.u32 %s2805_s17, 4  ;;  %s99_s18 = int_to_ptr.vmem [resolvable:$true] %s98_s18 }
  0x3b   :  { %s2774_s5 = scalar_lea.vmem %s99_s18, 8192  ;;  %p2779_p12 = scmp.lt.s32.totalorder %s99_s18, %s99_s18 }
  0x3c   :  { %p2775_p11 = scmp.ne.s32.totalorder %s99_s18, %s2774_s5  ;;  %p2780_p13 = scmp.lt.s32.totalorder %s2774_s5, %s2774_s5 }
  0x3e   :  { %p2781_p0 = por %p2780_p13, %p2779_p12 }
  0x40   :  { %p2782_p1 = pnand %p2781_p0, %p2775_p11 }
  0x42   :  { %2785 = shalt.err (!%p2782_p1)
}
  0x43   :  { %104 = dma.hbm_to_vmem [thread:$0]  %s3460_s10, 8192, %s99_s18, [#allocation13], %s2795_s24, %s2795_s24, %s2796_s25  }
  0x44   :  { %2786 = dma.done.wait [#allocation5], 25088  }
  0x45   :  { %2787 = vsyncadd [#allocation5], 4294942208 }
  0x46   :  { %2788 = dma.done.wait [#allocation7], 5120  }
  0x47   :  { %2789 = vsyncadd [#allocation7], 4294962176 }
  0x48   :  { %2790 = dma.done.wait [#allocation10], 33792  }
  0x49   :  { %2791 = vsyncadd [#allocation10], 4294933504 }
  0x4a   :  { %2792 = dma.done.wait [#allocation13], 8192  }
  0x4b   :  { %2793 = vsyncadd [#allocation13], 4294959104  ;;  %v165_v0 = vld [vmem:[#allocation4 + $0xf8] sm:$0xff]  ;;  %v164_v1 = vld [vmem:[#allocation4 + $0xf0] sm:$0xff]  ;;  %vm331_vm0 = vcmask 130048   ;;  %vm2807_vm1 = vmmov 0  }
  0x4c   :  { %v163_v2 = vld [vmem:[#allocation4 + $0xe8] sm:$0xff]  ;;  %335 = vmatprep.subr.mxu0 %v165_v0  ;;  %v229_v3 = vld [vmem:[#allocation4 + $0x2f8] sm:$0xff]  ;;  %v162_v4 = vld [vmem:[#allocation4 + $0xe0] sm:$0xff]  ;;  %vm733_vm2 = vcmask 523264  }
  0x4d   :  { %v228_v5 = vld [vmem:[#allocation4 + $0x2f0] sm:$0xff]  ;;  %336 = vmatpush1.msra.mxu0 %v164_v1  ;;  %406 = vmatprep.subr.mxu1 %v229_v3  ;;  %v161_v6 = vld [vmem:[#allocation4 + $0xd8] sm:$0xff]  ;;  %v227_v7 = vld [vmem:[#allocation4 + $0x2e8] sm:$0xff] }
  0x4e   :  { %337 = vmatprep.subr.mxu0 %v163_v2  ;;  %407 = vmatpush1.msra.mxu1 %v228_v5  ;;  %v160_v8 = vld [vmem:[#allocation4 + $0xd0] sm:$0xff]  ;;  %v226_v9 = vld [vmem:[#allocation4 + $0x2e0] sm:$0xff]  ;;  %v225_v10 = vld [vmem:[#allocation4 + $0x2d8] sm:$0xff] }
  0x4f   :  { %338 = vmatpush1.msra.mxu0 %v162_v4  ;;  %408 = vmatprep.subr.mxu1 %v227_v7  ;;  %v159_v11 = vld [vmem:[#allocation4 + $0xc8] sm:$0xff]  ;;  %v224_v12 = vld [vmem:[#allocation4 + $0x2d0] sm:$0xff]  ;;  %v158_v13 = vld [vmem:[#allocation4 + $0xc0] sm:$0xff] }
  0x50   :  { %339 = vmatprep.subr.mxu0 %v161_v6  ;;  %409 = vmatpush1.msra.mxu1 %v226_v9  ;;  %v223_v14 = vld [vmem:[#allocation4 + $0x2c8] sm:$0xff]  ;;  %v157_v15 = vld [vmem:[#allocation4 + $0xb8] sm:$0xff]  ;;  %v222_v16 = vld [vmem:[#allocation4 + $0x2c0] sm:$0xff] }
  0x51   :  { %340 = vmatpush1.msra.mxu0 %v160_v8  ;;  %410 = vmatprep.subr.mxu1 %v225_v10  ;;  %v156_v17 = vld [vmem:[#allocation4 + $0xb0] sm:$0xff]  ;;  %v221_v18 = vld [vmem:[#allocation4 + $0x2b8] sm:$0xff]  ;;  %v155_v19 = vld [vmem:[#allocation4 + $0xa8] sm:$0xff] }
  0x52   :  { %341 = vmatprep.subr.mxu0 %v159_v11  ;;  %411 = vmatpush1.msra.mxu1 %v224_v12  ;;  %v220_v20 = vld [vmem:[#allocation4 + $0x2b0] sm:$0xff]  ;;  %v154_v21 = vld [vmem:[#allocation4 + $0xa0] sm:$0xff]  ;;  %v219_v22 = vld [vmem:[#allocation4 + $0x2a8] sm:$0xff] }
  0x53   :  { %342 = vmatpush1.msra.mxu0 %v158_v13  ;;  %412 = vmatprep.subr.mxu1 %v223_v14  ;;  %v153_v23 = vld [vmem:[#allocation4 + $0x98] sm:$0xff]  ;;  %v218_v24 = vld [vmem:[#allocation4 + $0x2a0] sm:$0xff]  ;;  %v152_v25 = vld [vmem:[#allocation4 + $0x90] sm:$0xff] }
  0x54   :  { %343 = vmatprep.subr.mxu0 %v157_v15  ;;  %413 = vmatpush1.msra.mxu1 %v222_v16  ;;  %v217_v26 = vld [vmem:[#allocation4 + $0x298] sm:$0xff]  ;;  %v151_v27 = vld [vmem:[#allocation4 + $0x88] sm:$0xff]  ;;  %v216_v28 = vld [vmem:[#allocation4 + $0x290] sm:$0xff] }
  0x55   :  { %344 = vmatpush1.msra.mxu0 %v156_v17  ;;  %414 = vmatprep.subr.mxu1 %v221_v18  ;;  %v150_v29 = vld [vmem:[#allocation4 + $0x80] sm:$0xff]  ;;  %v215_v30 = vld [vmem:[#allocation4 + $0x288] sm:$0xff]  ;;  %v149_v31 = vld [vmem:[#allocation4 + $0x78] sm:$0xff] }
  0x56   :  { %345 = vmatprep.subr.mxu0 %v155_v19  ;;  %415 = vmatpush1.msra.mxu1 %v220_v20  ;;  %v214_v32 = vld [vmem:[#allocation4 + $0x280] sm:$0xff]  ;;  %v148_v33 = vld [vmem:[#allocation4 + $0x70] sm:$0xff]  ;;  %v213_v34 = vld [vmem:[#allocation4 + $0x278] sm:$0xff] }
  0x57   :  { %346 = vmatpush1.msra.mxu0 %v154_v21  ;;  %416 = vmatprep.subr.mxu1 %v219_v22  ;;  %v147_v35 = vld [vmem:[#allocation4 + $0x68] sm:$0xff]  ;;  %v212_v36 = vld [vmem:[#allocation4 + $0x270] sm:$0xff]  ;;  %v146_v37 = vld [vmem:[#allocation4 + $0x60] sm:$0xff] }
  0x58   :  { %347 = vmatprep.subr.mxu0 %v153_v23  ;;  %417 = vmatpush1.msra.mxu1 %v218_v24  ;;  %v211_v38 = vld [vmem:[#allocation4 + $0x268] sm:$0xff]  ;;  %v145_v39 = vld [vmem:[#allocation4 + $0x58] sm:$0xff]  ;;  %v210_v40 = vld [vmem:[#allocation4 + $0x260] sm:$0xff] }
  0x59   :  { %348 = vmatpush1.msra.mxu0 %v152_v25  ;;  %418 = vmatprep.subr.mxu1 %v217_v26  ;;  %v144_v41 = vld [vmem:[#allocation4 + $0x50] sm:$0xff]  ;;  %v209_v42 = vld [vmem:[#allocation4 + $0x258] sm:$0xff]  ;;  %v143_v43 = vld [vmem:[#allocation4 + $0x48] sm:$0xff] }
  0x5a   :  { %349 = vmatprep.subr.mxu0 %v151_v27  ;;  %419 = vmatpush1.msra.mxu1 %v216_v28  ;;  %v208_v44 = vld [vmem:[#allocation4 + $0x250] sm:$0xff]  ;;  %v142_v45 = vld [vmem:[#allocation4 + $0x40] sm:$0xff]  ;;  %v207_v46 = vld [vmem:[#allocation4 + $0x248] sm:$0xff] }
  0x5b   :  { %350 = vmatpush1.msra.mxu0 %v150_v29  ;;  %420 = vmatprep.subr.mxu1 %v215_v30  ;;  %v141_v47 = vld [vmem:[#allocation4 + $0x38] sm:$0xff]  ;;  %v206_v48 = vld [vmem:[#allocation4 + $0x240] sm:$0xff]  ;;  %v140_v49 = vld [vmem:[#allocation4 + $0x30] sm:$0xff] }
  0x5c   :  { %351 = vmatprep.subr.mxu0 %v149_v31  ;;  %421 = vmatpush1.msra.mxu1 %v214_v32  ;;  %v205_v50 = vld [vmem:[#allocation4 + $0x238] sm:$0xff]  ;;  %v139_v51 = vld [vmem:[#allocation4 + $0x28] sm:$0xff]  ;;  %v204_v52 = vld [vmem:[#allocation4 + $0x230] sm:$0xff] }
  0x5d   :  { %352 = vmatpush1.msra.mxu0 %v148_v33  ;;  %422 = vmatprep.subr.mxu1 %v213_v34  ;;  %v138_v53 = vld [vmem:[#allocation4 + $0x20] sm:$0xff]  ;;  %v203_v54 = vld [vmem:[#allocation4 + $0x228] sm:$0xff]  ;;  %v137_v55 = vld [vmem:[#allocation4 + $0x18] sm:$0xff] }
  0x5e   :  { %353 = vmatprep.subr.mxu0 %v147_v35  ;;  %423 = vmatpush1.msra.mxu1 %v212_v36  ;;  %v202_v56 = vld [vmem:[#allocation4 + $0x220] sm:$0xff]  ;;  %v136_v57 = vld [vmem:[#allocation4 + $0x10] sm:$0xff]  ;;  %v201_v58 = vld [vmem:[#allocation4 + $0x218] sm:$0xff] }
  0x5f   :  { %354 = vmatpush1.msra.mxu0 %v146_v37  ;;  %424 = vmatprep.subr.mxu1 %v211_v38  ;;  %v135_v59 = vld [vmem:[#allocation4 + $0x8] sm:$0xff]  ;;  %v200_v60 = vld [vmem:[#allocation4 + $0x210] sm:$0xff]  ;;  %v134_v61 = vld [vmem:[#allocation4] sm:$0xff] }
  0x60   :  { %355 = vmatprep.subr.mxu0 %v145_v39  ;;  %425 = vmatpush1.msra.mxu1 %v210_v40  ;;  %v199_v62 = vld [vmem:[#allocation4 + $0x208] sm:$0xff]  ;;  %v197_v63 = vld [vmem:[#allocation4 + $0x1f8] sm:$0xff]  ;;  %v198_v0 = vld [vmem:[#allocation4 + $0x200] sm:$0xff] }
  0x61   :  { %356 = vmatpush1.msra.mxu0 %v144_v41  ;;  %426 = vmatprep.subr.mxu1 %v209_v42  ;;  %v196_v1 = vld [vmem:[#allocation4 + $0x1f0] sm:$0xff]  ;;  %v261_v2 = vld [vmem:[#allocation4 + $0x3f8] sm:$0xff]  ;;  %v195_v3 = vld [vmem:[#allocation4 + $0x1e8] sm:$0xff] }
  0x62   :  { %357 = vmatprep.subr.mxu0 %v143_v43  ;;  %427 = vmatpush1.msra.mxu1 %v208_v44  ;;  %v260_v4 = vld [vmem:[#allocation4 + $0x3f0] sm:$0xff]  ;;  %v194_v5 = vld [vmem:[#allocation4 + $0x1e0] sm:$0xff]  ;;  %v259_v6 = vld [vmem:[#allocation4 + $0x3e8] sm:$0xff] }
  0x63   :  { %358 = vmatpush1.msra.mxu0 %v142_v45  ;;  %428 = vmatprep.subr.mxu1 %v207_v46  ;;  %v193_v7 = vld [vmem:[#allocation4 + $0x1d8] sm:$0xff]  ;;  %v258_v8 = vld [vmem:[#allocation4 + $0x3e0] sm:$0xff]  ;;  %v192_v9 = vld [vmem:[#allocation4 + $0x1d0] sm:$0xff] }
  0x64   :  { %359 = vmatprep.subr.mxu0 %v141_v47  ;;  %429 = vmatpush1.msra.mxu1 %v206_v48  ;;  %v257_v10 = vld [vmem:[#allocation4 + $0x3d8] sm:$0xff]  ;;  %v191_v11 = vld [vmem:[#allocation4 + $0x1c8] sm:$0xff]  ;;  %v256_v12 = vld [vmem:[#allocation4 + $0x3d0] sm:$0xff] }
  0x65   :  { %360 = vmatpush1.msra.mxu0 %v140_v49  ;;  %430 = vmatprep.subr.mxu1 %v205_v50  ;;  %v190_v13 = vld [vmem:[#allocation4 + $0x1c0] sm:$0xff]  ;;  %v255_v14 = vld [vmem:[#allocation4 + $0x3c8] sm:$0xff]  ;;  %v189_v15 = vld [vmem:[#allocation4 + $0x1b8] sm:$0xff] }
  0x66   :  { %361 = vmatprep.subr.mxu0 %v139_v51  ;;  %431 = vmatpush1.msra.mxu1 %v204_v52  ;;  %v254_v16 = vld [vmem:[#allocation4 + $0x3c0] sm:$0xff]  ;;  %v188_v17 = vld [vmem:[#allocation4 + $0x1b0] sm:$0xff]  ;;  %v253_v18 = vld [vmem:[#allocation4 + $0x3b8] sm:$0xff] }
  0x67   :  { %362 = vmatpush1.msra.mxu0 %v138_v53  ;;  %432 = vmatprep.subr.mxu1 %v203_v54  ;;  %v187_v19 = vld [vmem:[#allocation4 + $0x1a8] sm:$0xff]  ;;  %v252_v20 = vld [vmem:[#allocation4 + $0x3b0] sm:$0xff]  ;;  %v186_v21 = vld [vmem:[#allocation4 + $0x1a0] sm:$0xff] }
  0x68   :  { %363 = vmatprep.subr.mxu0 %v137_v55  ;;  %433 = vmatpush1.msra.mxu1 %v202_v56  ;;  %v251_v22 = vld [vmem:[#allocation4 + $0x3a8] sm:$0xff]  ;;  %v185_v23 = vld [vmem:[#allocation4 + $0x198] sm:$0xff]  ;;  %v250_v24 = vld [vmem:[#allocation4 + $0x3a0] sm:$0xff] }
  0x69   :  { %364 = vmatpush1.msra.mxu0 %v136_v57  ;;  %434 = vmatprep.subr.mxu1 %v201_v58  ;;  %v184_v25 = vld [vmem:[#allocation4 + $0x190] sm:$0xff]  ;;  %v249_v26 = vld [vmem:[#allocation4 + $0x398] sm:$0xff]  ;;  %v183_v27 = vld [vmem:[#allocation4 + $0x188] sm:$0xff] }
  0x6a   :  { %365 = vmatprep.subr.mxu0 %v135_v59  ;;  %435 = vmatpush1.msra.mxu1 %v200_v60  ;;  %v248_v28 = vld [vmem:[#allocation4 + $0x390] sm:$0xff]  ;;  %v182_v29 = vld [vmem:[#allocation4 + $0x180] sm:$0xff]  ;;  %v247_v30 = vld [vmem:[#allocation4 + $0x388] sm:$0xff] }
  0x6b   :  { %366 = vmatpush1.msra.mxu0 %v134_v61  ;;  %436 = vmatprep.subr.mxu1 %v199_v62  ;;  %v181_v31 = vld [vmem:[#allocation4 + $0x178] sm:$0xff]  ;;  %v246_v32 = vld [vmem:[#allocation4 + $0x380] sm:$0xff]  ;;  %v180_v33 = vld [vmem:[#allocation4 + $0x170] sm:$0xff] }
  0x6c   :  { %367 = vmatprep.subr.mxu0 %v197_v63  ;;  %437 = vmatpush1.msra.mxu1 %v198_v0  ;;  %v245_v34 = vld [vmem:[#allocation4 + $0x378] sm:$0xff]  ;;  %v179_v35 = vld [vmem:[#allocation4 + $0x168] sm:$0xff]  ;;  %v244_v36 = vld [vmem:[#allocation4 + $0x370] sm:$0xff] }
  0x6d   :  { %368 = vmatpush2.msra.mxu0 %v196_v1  ;;  %438 = vmatprep.subr.mxu1 %v261_v2  ;;  %v178_v37 = vld [vmem:[#allocation4 + $0x160] sm:$0xff]  ;;  %v243_v38 = vld [vmem:[#allocation4 + $0x368] sm:$0xff]  ;;  %v177_v39 = vld [vmem:[#allocation4 + $0x158] sm:$0xff] }
  0x6e   :  { %369 = vmatprep.subr.mxu0 %v195_v3  ;;  %439 = vmatpush2.msra.mxu1 %v260_v4  ;;  %v242_v40 = vld [vmem:[#allocation4 + $0x360] sm:$0xff]  ;;  %v176_v41 = vld [vmem:[#allocation4 + $0x150] sm:$0xff]  ;;  %v241_v42 = vld [vmem:[#allocation4 + $0x358] sm:$0xff] }
  0x6f   :  { %370 = vmatpush2.msra.mxu0 %v194_v5  ;;  %440 = vmatprep.subr.mxu1 %v259_v6  ;;  %v175_v43 = vld [vmem:[#allocation4 + $0x148] sm:$0xff]  ;;  %v240_v44 = vld [vmem:[#allocation4 + $0x350] sm:$0xff]  ;;  %v174_v45 = vld [vmem:[#allocation4 + $0x140] sm:$0xff] }
  0x70   :  { %371 = vmatprep.subr.mxu0 %v193_v7  ;;  %441 = vmatpush2.msra.mxu1 %v258_v8  ;;  %v239_v46 = vld [vmem:[#allocation4 + $0x348] sm:$0xff]  ;;  %v173_v47 = vld [vmem:[#allocation4 + $0x138] sm:$0xff]  ;;  %v238_v48 = vld [vmem:[#allocation4 + $0x340] sm:$0xff] }
  0x71   :  { %372 = vmatpush2.msra.mxu0 %v192_v9  ;;  %442 = vmatprep.subr.mxu1 %v257_v10  ;;  %v172_v49 = vld [vmem:[#allocation4 + $0x130] sm:$0xff]  ;;  %v237_v50 = vld [vmem:[#allocation4 + $0x338] sm:$0xff]  ;;  %v171_v51 = vld [vmem:[#allocation4 + $0x128] sm:$0xff] }
  0x72   :  { %373 = vmatprep.subr.mxu0 %v191_v11  ;;  %443 = vmatpush2.msra.mxu1 %v256_v12  ;;  %v236_v52 = vld [vmem:[#allocation4 + $0x330] sm:$0xff]  ;;  %v170_v53 = vld [vmem:[#allocation4 + $0x120] sm:$0xff]  ;;  %v235_v54 = vld [vmem:[#allocation4 + $0x328] sm:$0xff] }
  0x73   :  { %374 = vmatpush2.msra.mxu0 %v190_v13  ;;  %444 = vmatprep.subr.mxu1 %v255_v14  ;;  %v169_v55 = vld [vmem:[#allocation4 + $0x118] sm:$0xff]  ;;  %v234_v56 = vld [vmem:[#allocation4 + $0x320] sm:$0xff]  ;;  %v168_v57 = vld [vmem:[#allocation4 + $0x110] sm:$0xff] }
  0x74   :  { %375 = vmatprep.subr.mxu0 %v189_v15  ;;  %445 = vmatpush2.msra.mxu1 %v254_v16  ;;  %v233_v58 = vld [vmem:[#allocation4 + $0x318] sm:$0xff]  ;;  %v167_v59 = vld [vmem:[#allocation4 + $0x108] sm:$0xff]  ;;  %v166_v61 = vld [vmem:[#allocation4 + $0x100] sm:$0xff] }
  0x75   :  { %376 = vmatpush2.msra.mxu0 %v188_v17  ;;  %446 = vmatprep.subr.mxu1 %v253_v18  ;;  %v126_v60 = vld [vmem:[%s3450_s0 + $0x8] sm:$0xff]  ;;  %v232_v62 = vld [vmem:[#allocation4 + $0x310] sm:$0xff]  ;;  %v125_v63 = vld [vmem:[%s3450_s0] sm:$0xff] }
  0x76   :  { %377 = vmatprep.subr.mxu0 %v187_v19  ;;  %447 = vmatpush2.msra.mxu1 %v252_v20  ;;  %v231_v0 = vld [vmem:[#allocation4 + $0x308] sm:$0xff]  ;;  %v293_v1 = vld [vmem:[#allocation4 + $0x4f8] sm:$0xff]  ;;  %v230_v2 = vld [vmem:[#allocation4 + $0x300] sm:$0xff] }
  0x77   :  { %378 = vmatpush2.msra.mxu0 %v186_v21  ;;  %448 = vmatprep.subr.mxu1 %v251_v22  ;;  %v128_v3 = vld [vmem:[%s3450_s0 + $0x18] sm:$0xff]  ;;  %v292_v4 = vld [vmem:[#allocation4 + $0x4f0] sm:$0xff]  ;;  %v291_v6 = vld [vmem:[#allocation4 + $0x4e8] sm:$0xff]  ;;  %v2806_v22 = vmov 0.0  }
  0x78   :  { %379 = vmatprep.subr.mxu0 %v185_v23  ;;  %449 = vmatpush2.msra.mxu1 %v250_v24  ;;  %v127_v5 = vld [vmem:[%s3450_s0 + $0x10] sm:$0xff]  ;;  %v290_v7 = vld [vmem:[#allocation4 + $0x4e0] sm:$0xff]  ;;  %v329_v8 = vld [vmem:[#allocation4 + $0x618] sm:$0xff] }
  0x79   :  { %380 = vmatpush2.msra.mxu0 %v184_v25  ;;  %450 = vmatprep.subr.mxu1 %v249_v26  ;;  %v289_v9 = vld [vmem:[#allocation4 + $0x4d8] sm:$0xff]  ;;  %v328_v10 = vld [vmem:[#allocation4 + $0x610] sm:$0xff]  ;;  %v327_v12 = vld [vmem:[#allocation4 + $0x608] sm:$0xff] }
  0x7a   :  { %381 = vmatprep.subr.mxu0 %v183_v27  ;;  %451 = vmatpush2.msra.mxu1 %v248_v28  ;;  %v288_v11 = vld [vmem:[#allocation4 + $0x4d0] sm:$0xff]  ;;  %v287_v13 = vld [vmem:[#allocation4 + $0x4c8] sm:$0xff]  ;;  %v286_v15 = vld [vmem:[#allocation4 + $0x4c0] sm:$0xff] }
  0x7b   :  { %382 = vmatpush2.msra.mxu0 %v182_v29  ;;  %452 = vmatprep.subr.mxu1 %v247_v30  ;;  %v130_v14 = vld [vmem:[%s3450_s0 + $0x28] sm:$0xff]  ;;  %v326_v16 = vld [vmem:[#allocation4 + $0x600] sm:$0xff]  ;;  %v285_v17 = vld [vmem:[#allocation4 + $0x4b8] sm:$0xff] }
  0x7c   :  { %383 = vmatprep.subr.mxu0 %v181_v31  ;;  %453 = vmatpush2.msra.mxu1 %v246_v32  ;;  %v284_v18 = vld [vmem:[#allocation4 + $0x4b0] sm:$0xff]  ;;  %v283_v20 = vld [vmem:[#allocation4 + $0x4a8] sm:$0xff]  ;;  %v282_v21 = vld [vmem:[#allocation4 + $0x4a0] sm:$0xff] }
  0x7d   :  { %384 = vmatpush2.msra.mxu0 %v180_v33  ;;  %454 = vmatprep.subr.mxu1 %v245_v34  ;;  %v131_v19 = vld [vmem:[%s3450_s0 + $0x30] sm:$0xff]  ;;  %v281_v23 = vld [vmem:[#allocation4 + $0x498] sm:$0xff]  ;;  %v279_v25 = vld [vmem:[#allocation4 + $0x488] sm:$0xff] }
  0x7e   :  { %385 = vmatprep.subr.mxu0 %v179_v35  ;;  %455 = vmatpush2.msra.mxu1 %v244_v36  ;;  %v280_v24 = vld [vmem:[#allocation4 + $0x490] sm:$0xff]  ;;  %v278_v26 = vld [vmem:[#allocation4 + $0x480] sm:$0xff]  ;;  %v277_v27 = vld [vmem:[#allocation4 + $0x478] sm:$0xff] }
  0x7f   :  { %386 = vmatpush2.msra.mxu0 %v178_v37  ;;  %456 = vmatprep.subr.mxu1 %v243_v38  ;;  %v276_v28 = vld [vmem:[#allocation4 + $0x470] sm:$0xff]  ;;  %v275_v29 = vld [vmem:[#allocation4 + $0x468] sm:$0xff]  ;;  %v274_v30 = vld [vmem:[#allocation4 + $0x460] sm:$0xff] }
  0x80   :  { %387 = vmatprep.subr.mxu0 %v177_v39  ;;  %457 = vmatpush2.msra.mxu1 %v242_v40  ;;  %v273_v31 = vld [vmem:[#allocation4 + $0x458] sm:$0xff]  ;;  %v272_v32 = vld [vmem:[#allocation4 + $0x450] sm:$0xff]  ;;  %v271_v33 = vld [vmem:[#allocation4 + $0x448] sm:$0xff] }
  0x81   :  { %388 = vmatpush2.msra.mxu0 %v176_v41  ;;  %458 = vmatprep.subr.mxu1 %v241_v42  ;;  %v270_v34 = vld [vmem:[#allocation4 + $0x440] sm:$0xff]  ;;  %v269_v35 = vld [vmem:[#allocation4 + $0x438] sm:$0xff]  ;;  %v268_v36 = vld [vmem:[#allocation4 + $0x430] sm:$0xff] }
  0x82   :  { %389 = vmatprep.subr.mxu0 %v175_v43  ;;  %459 = vmatpush2.msra.mxu1 %v240_v44  ;;  %v267_v37 = vld [vmem:[#allocation4 + $0x428] sm:$0xff]  ;;  %v266_v38 = vld [vmem:[#allocation4 + $0x420] sm:$0xff]  ;;  %v265_v39 = vld [vmem:[#allocation4 + $0x418] sm:$0xff] }
  0x83   :  { %390 = vmatpush2.msra.mxu0 %v174_v45  ;;  %460 = vmatprep.subr.mxu1 %v239_v46  ;;  %v264_v40 = vld [vmem:[#allocation4 + $0x410] sm:$0xff]  ;;  %v263_v41 = vld [vmem:[#allocation4 + $0x408] sm:$0xff]  ;;  %v262_v42 = vld [vmem:[#allocation4 + $0x400] sm:$0xff] }
  0x84   :  { %391 = vmatprep.subr.mxu0 %v173_v47  ;;  %461 = vmatpush2.msra.mxu1 %v238_v48  ;;  %v325_v43 = vld [vmem:[#allocation4 + $0x5f8] sm:$0xff]  ;;  %v324_v44 = vld [vmem:[#allocation4 + $0x5f0] sm:$0xff]  ;;  %v323_v45 = vld [vmem:[#allocation4 + $0x5e8] sm:$0xff] }
  0x85   :  { %392 = vmatpush2.msra.mxu0 %v172_v49  ;;  %462 = vmatprep.subr.mxu1 %v237_v50  ;;  %v322_v46 = vld [vmem:[#allocation4 + $0x5e0] sm:$0xff]  ;;  %v321_v47 = vld [vmem:[#allocation4 + $0x5d8] sm:$0xff]  ;;  %v320_v48 = vld [vmem:[#allocation4 + $0x5d0] sm:$0xff] }
  0x86   :  { %393 = vmatprep.subr.mxu0 %v171_v51  ;;  %463 = vmatpush2.msra.mxu1 %v236_v52  ;;  %v319_v49 = vld [vmem:[#allocation4 + $0x5c8] sm:$0xff]  ;;  %v318_v50 = vld [vmem:[#allocation4 + $0x5c0] sm:$0xff]  ;;  %v317_v51 = vld [vmem:[#allocation4 + $0x5b8] sm:$0xff] }
  0x87   :  { %394 = vmatpush2.msra.mxu0 %v170_v53  ;;  %464 = vmatprep.subr.mxu1 %v235_v54  ;;  %v316_v52 = vld [vmem:[#allocation4 + $0x5b0] sm:$0xff]  ;;  %v315_v53 = vld [vmem:[#allocation4 + $0x5a8] sm:$0xff]  ;;  %v314_v54 = vld [vmem:[#allocation4 + $0x5a0] sm:$0xff] }
  0x88   :  { %395 = vmatprep.subr.mxu0 %v169_v55  ;;  %465 = vmatpush2.msra.mxu1 %v234_v56  ;;  %v313_v55 = vld [vmem:[#allocation4 + $0x598] sm:$0xff]  ;;  %v312_v56 = vld [vmem:[#allocation4 + $0x590] sm:$0xff] }
  0x89   :  { %396 = vmatpush2.msra.mxu0 %v168_v57  ;;  %466 = vmatprep.subr.mxu1 %v233_v58  ;;  %v311_v57 = vld [vmem:[#allocation4 + $0x588] sm:$0xff]  ;;  %v310_v58 = vld [vmem:[#allocation4 + $0x580] sm:$0xff] }
  0x8a   :  { %397 = vmatprep.subr.mxu0 %v167_v59  ;;  %399 = vmatprep.mubr.f32.mxu0 %v126_v60  ;;  %v309_v59 = vld [vmem:[#allocation4 + $0x578] sm:$0xff]  ;;  %v308_v60 = vld [vmem:[#allocation4 + $0x570] sm:$0xff] }
  0x8b   :  { %398 = vmatpush2.msra.mxu0 %v166_v61  ;;  %467 = vmatpush2.msra.mxu1 %v232_v62  ;;  %v307_v61 = vld [vmem:[#allocation4 + $0x568] sm:$0xff]  ;;  %v306_v62 = vld [vmem:[#allocation4 + $0x560] sm:$0xff] }
  0x8c   :  { %400 = vmatmul.mubr.f32.vlgmr.msra.gmra.mxu0 %v125_v63  ;;  %468 = vmatprep.subr.mxu1 %v231_v0  ;;  %v305_v63 = vld [vmem:[#allocation4 + $0x558] sm:$0xff]  ;;  %v304_v0 = vld [vmem:[#allocation4 + $0x550] sm:$0xff] }
  0x8d   :  { %477 = vmatprep.subr.mxu0 %v293_v1  ;;  %469 = vmatpush2.msra.mxu1 %v230_v2  ;;  %v303_v1 = vld [vmem:[#allocation4 + $0x548] sm:$0xff]  ;;  %v302_v2 = vld [vmem:[#allocation4 + $0x540] sm:$0xff] }
  0x8e   :  { %470 = vmatprep.mubr.f32.mxu1 %v128_v3  ;;  %478 = vmatpush1.msra.mxu0 %v292_v4  ;;  %v301_v3 = vld [vmem:[#allocation4 + $0x538] sm:$0xff]  ;;  %v300_v4 = vld [vmem:[#allocation4 + $0x530] sm:$0xff] }
  0x8f   :  { %471 = vmatmul.mubr.f32.vlgmr.msra.gmra.mxu1 %v127_v5  ;;  %479 = vmatprep.subr.mxu0 %v291_v6  ;;  %v299_v5 = vld [vmem:[#allocation4 + $0x528] sm:$0xff]  ;;  %v298_v6 = vld [vmem:[#allocation4 + $0x520] sm:$0xff] }
  0x90   :  { %480 = vmatpush1.msra.mxu0 %v290_v7  ;;  %576 = vmatprep.subr.mxu1 %v329_v8  ;;  %v297_v7 = vld [vmem:[#allocation4 + $0x518] sm:$0xff]  ;;  %v296_v8 = vld [vmem:[#allocation4 + $0x510] sm:$0xff] }
  0x91   :  { %481 = vmatprep.subr.mxu0 %v289_v9  ;;  %577 = vmatpush1.msra.mxu1 %v328_v10  ;;  %v295_v9 = vld [vmem:[#allocation4 + $0x508] sm:$0xff]  ;;  %v294_v10 = vld [vmem:[#allocation4 + $0x500] sm:$0xff] }
  0x92   :  { %482 = vmatpush1.msra.mxu0 %v288_v11  ;;  %578 = vmatprep.subr.mxu1 %v327_v12  ;;  %v129_v11 = vld [vmem:[%s3450_s0 + $0x20] sm:$0xff]  ;;  %v652_v12 = vld [vmem:[%s3453_s3 + $0xf8] sm:$0xff] }
  0x93   :  { %483 = vmatprep.subr.mxu0 %v287_v13  ;;  %541 = vmatprep.mubr.f32.mxu0 %v130_v14  ;;  %v636_v13 = vld [vmem:[%s3453_s3 + $0x78] sm:$0xff]  ;;  %v651_v14 = vld [vmem:[%s3453_s3 + $0xf0] sm:$0xff] }
  0x94   :  { %484 = vmatpush1.msra.mxu0 %v286_v15  ;;  %579 = vmatpush1.msra.mxu1 %v326_v16  ;;  %v635_v15 = vld [vmem:[%s3453_s3 + $0x70] sm:$0xff]  ;;  %v650_v16 = vld [vmem:[%s3453_s3 + $0xe8] sm:$0xff] }
  0x95   :  { %485 = vmatprep.subr.mxu0 %v285_v17  ;;  %612 = vmatprep.mubr.f32.mxu1 %v2806_v22  ;;  %v634_v17 = vld [vmem:[%s3453_s3 + $0x68] sm:$0xff] }
  0x96   :  { %486 = vmatpush1.msra.mxu0 %v284_v18  ;;  %2425 = vmatmul.mubr.msk.f32.vlgmr.msra.gmra.mxu1 %vm331_vm0, %v131_v19  ;;  %v649_v18 = vld [vmem:[%s3453_s3 + $0xe0] sm:$0xff] }
  0x97   :  { %487 = vmatprep.subr.mxu0 %v283_v20  ;;  %2449 = vmatprep.subr.mxu1 %v652_v12  ;;  %v633_v19 = vld [vmem:[%s3453_s3 + $0x60] sm:$0xff]  ;;  %v648_v20 = vld [vmem:[%s3453_s3 + $0xd8] sm:$0xff] }
  0x98   :  { %488 = vmatpush1.msra.mxu0 %v282_v21  ;;  %2450 = vmatpush3.msra.mxu1 %v636_v13  ;;  %v632_v21 = vld [vmem:[%s3453_s3 + $0x58] sm:$0xff] }
  0x99   :  { %489 = vmatprep.subr.mxu0 %v281_v23  ;;  %2451 = vmatprep.subr.mxu1 %v651_v14  ;;  %v647_v23 = vld [vmem:[%s3453_s3 + $0xd0] sm:$0xff]  ;;  %v913_v14 = vld [vmem:[#allocation8 + $0xe8] sm:$0xff] }
  0x9a   :  { %490 = vmatpush1.msra.mxu0 %v280_v24  ;;  %2452 = vmatpush3.msra.mxu1 %v635_v15  ;;  %v631_v24 = vld [vmem:[%s3453_s3 + $0x50] sm:$0xff] }
  0x9b   :  { %491 = vmatprep.subr.mxu0 %v279_v25  ;;  %2453 = vmatprep.subr.mxu1 %v650_v16  ;;  %v646_v25 = vld [vmem:[%s3453_s3 + $0xc8] sm:$0xff]  ;;  %v912_v16 = vld [vmem:[#allocation8 + $0xe0] sm:$0xff] }
  0x9c   :  { %492 = vmatpush1.msra.mxu0 %v278_v26  ;;  %2454 = vmatpush3.msra.mxu1 %v634_v17  ;;  %v630_v26 = vld [vmem:[%s3453_s3 + $0x48] sm:$0xff] }
  0x9d   :  { %493 = vmatprep.subr.mxu0 %v277_v27  ;;  %2455 = vmatprep.subr.mxu1 %v649_v18  ;;  %v645_v27 = vld [vmem:[%s3453_s3 + $0xc0] sm:$0xff]  ;;  %v909_v17 = vld [vmem:[#allocation8 + $0xc8] sm:$0xff] }
  0x9e   :  { %494 = vmatpush1.msra.mxu0 %v276_v28  ;;  %2456 = vmatpush3.msra.mxu1 %v633_v19  ;;  %v629_v28 = vld [vmem:[%s3453_s3 + $0x40] sm:$0xff]  ;;  %v905_v19 = vld [vmem:[#allocation8 + $0xa8] sm:$0xff] }
  0x9f   :  { %495 = vmatprep.subr.mxu0 %v275_v29  ;;  %2457 = vmatprep.subr.mxu1 %v648_v20  ;;  %v644_v29 = vld [vmem:[%s3453_s3 + $0xb8] sm:$0xff]  ;;  %v908_v18 = vld [vmem:[#allocation8 + $0xc0] sm:$0xff] }
  0xa0   :  { %496 = vmatpush1.msra.mxu0 %v274_v30  ;;  %2458 = vmatpush3.msra.mxu1 %v632_v21  ;;  %v628_v30 = vld [vmem:[%s3453_s3 + $0x38] sm:$0xff]  ;;  %v904_v20 = vld [vmem:[#allocation8 + $0xa0] sm:$0xff]  ;;  %v901_v21 = vld [vmem:[#allocation8 + $0x88] sm:$0xff] }
  0xa1   :  { %497 = vmatprep.subr.mxu0 %v273_v31  ;;  %2459 = vmatprep.subr.mxu1 %v647_v23  ;;  %v643_v31 = vld [vmem:[%s3453_s3 + $0xb0] sm:$0xff]  ;;  %v900_v23 = vld [vmem:[#allocation8 + $0x80] sm:$0xff] }
  0xa2   :  { %498 = vmatpush1.msra.mxu0 %v272_v32  ;;  %2460 = vmatpush3.msra.mxu1 %v631_v24  ;;  %v627_v32 = vld [vmem:[%s3453_s3 + $0x30] sm:$0xff]  ;;  %v897_v24 = vld [vmem:[#allocation8 + $0x68] sm:$0xff] }
  0xa3   :  { %499 = vmatprep.subr.mxu0 %v271_v33  ;;  %2461 = vmatprep.subr.mxu1 %v646_v25  ;;  %v642_v33 = vld [vmem:[%s3453_s3 + $0xa8] sm:$0xff]  ;;  %v896_v25 = vld [vmem:[#allocation8 + $0x60] sm:$0xff] }
  0xa4   :  { %500 = vmatpush1.msra.mxu0 %v270_v34  ;;  %2462 = vmatpush3.msra.mxu1 %v630_v26  ;;  %v626_v34 = vld [vmem:[%s3453_s3 + $0x28] sm:$0xff] }
  0xa5   :  { %501 = vmatprep.subr.mxu0 %v269_v35  ;;  %2463 = vmatprep.subr.mxu1 %v645_v27  ;;  %v641_v35 = vld [vmem:[%s3453_s3 + $0xa0] sm:$0xff]  ;;  %v893_v26 = vld [vmem:[#allocation8 + $0x48] sm:$0xff] }
  0xa6   :  { %502 = vmatpush1.msra.mxu0 %v268_v36  ;;  %2464 = vmatpush3.msra.mxu1 %v629_v28  ;;  %v625_v36 = vld [vmem:[%s3453_s3 + $0x20] sm:$0xff]  ;;  %v889_v28 = vld [vmem:[#allocation8 + $0x28] sm:$0xff] }
  0xa7   :  { %503 = vmatprep.subr.mxu0 %v267_v37  ;;  %2465 = vmatprep.subr.mxu1 %v644_v29  ;;  %v640_v37 = vld [vmem:[%s3453_s3 + $0x98] sm:$0xff]  ;;  %v892_v27 = vld [vmem:[#allocation8 + $0x40] sm:$0xff] }
  0xa8   :  { %504 = vmatpush1.msra.mxu0 %v266_v38  ;;  %2466 = vmatpush3.msra.mxu1 %v628_v30  ;;  %v624_v38 = vld [vmem:[%s3453_s3 + $0x18] sm:$0xff]  ;;  %v888_v29 = vld [vmem:[#allocation8 + $0x20] sm:$0xff]  ;;  %v885_v30 = vld [vmem:[#allocation8 + $0x8] sm:$0xff] }
  0xa9   :  { %505 = vmatprep.subr.mxu0 %v265_v39  ;;  %2467 = vmatprep.subr.mxu1 %v643_v31  ;;  %v639_v39 = vld [vmem:[%s3453_s3 + $0x90] sm:$0xff]  ;;  %v884_v31 = vld [vmem:[#allocation8] sm:$0xff] }
  0xaa   :  { %506 = vmatpush1.msra.mxu0 %v264_v40  ;;  %2468 = vmatpush3.msra.mxu1 %v627_v32  ;;  %v623_v40 = vld [vmem:[%s3453_s3 + $0x10] sm:$0xff]  ;;  %v921_v32 = vld [vmem:[#allocation9 + $0x28] sm:$0xff] }
  0xab   :  { %507 = vmatprep.subr.mxu0 %v263_v41  ;;  %2469 = vmatprep.subr.mxu1 %v642_v33  ;;  %v638_v41 = vld [vmem:[%s3453_s3 + $0x88] sm:$0xff]  ;;  %v920_v33 = vld [vmem:[#allocation9 + $0x20] sm:$0xff] }
  0xac   :  { %508 = vmatpush1.msra.mxu0 %v262_v42  ;;  %2470 = vmatpush3.msra.mxu1 %v626_v34  ;;  %v622_v42 = vld [vmem:[%s3453_s3 + $0x8] sm:$0xff] }
  0xad   :  { %509 = vmatprep.subr.mxu0 %v325_v43  ;;  %2471 = vmatprep.subr.mxu1 %v641_v35  ;;  %v637_v43 = vld [vmem:[%s3453_s3 + $0x80] sm:$0xff]  ;;  %v917_v34 = vld [vmem:[#allocation9 + $0x8] sm:$0xff] }
  0xae   :  { %510 = vmatpush2.msra.mxu0 %v324_v44  ;;  %2472 = vmatpush3.msra.mxu1 %v625_v36  ;;  %v621_v44 = vld [vmem:[%s3453_s3] sm:$0xff]  ;;  %v923_v36 = vld [vmem:[#allocation9 + $0x38] sm:$0xff] }
  0xaf   :  { %511 = vmatprep.subr.mxu0 %v323_v45  ;;  %2473 = vmatprep.subr.mxu1 %v640_v37  ;;  %v916_v35 = vld [vmem:[#allocation9] sm:$0xff] }
  0xb0   :  { %512 = vmatpush2.msra.mxu0 %v322_v46  ;;  %2474 = vmatpush3.msra.mxu1 %v624_v38  ;;  %v330_v46 = vstv %s3452_s2 }
  0xb1   :  { %513 = vmatprep.subr.mxu0 %v321_v47  ;;  %2475 = vmatprep.subr.mxu1 %v639_v39 }
  0xb2   :  { %514 = vmatpush2.msra.mxu0 %v320_v48  ;;  %2476 = vmatpush3.msra.mxu1 %v623_v40 }
  0xb3   :  { %515 = vmatprep.subr.mxu0 %v319_v49  ;;  %2477 = vmatprep.subr.mxu1 %v638_v41 }
  0xb4   :  { %516 = vmatpush2.msra.mxu0 %v318_v50  ;;  %2478 = vmatpush3.msra.mxu1 %v622_v42 }
  0xb5   :  { %517 = vmatprep.subr.mxu0 %v317_v51  ;;  %2479 = vmatprep.subr.mxu1 %v637_v43 }
  0xb6   :  { %518 = vmatpush2.msra.mxu0 %v316_v52  ;;  %2480 = vmatpush3.msra.mxu1 %v621_v44  ;;  %v922_v44 = vld [vmem:[#allocation9 + $0x30] sm:$0xff] }
  0xb7   :  { %519 = vmatprep.subr.mxu0 %v315_v53  ;;  %2572 = vmatprep.subr.mxu1 %v2806_v22 }
  0xb8   :  { %520 = vmatpush2.msra.mxu0 %v314_v54 }
  0xb9   :  { %521 = vmatprep.subr.mxu0 %v313_v55 }
  0xba   :  { %522 = vmatpush2.msra.mxu0 %v312_v56 }
  0xbb   :  { %523 = vmatprep.subr.mxu0 %v311_v57 }
  0xbc   :  { %524 = vmatpush2.msra.mxu0 %v310_v58 }
  0xbd   :  { %525 = vmatprep.subr.mxu0 %v309_v59 }
  0xbe   :  { %526 = vmatpush2.msra.mxu0 %v308_v60 }
  0xbf   :  { %527 = vmatprep.subr.mxu0 %v307_v61 }
  0xc0   :  { %528 = vmatpush2.msra.mxu0 %v306_v62 }
  0xc1   :  { %529 = vmatprep.subr.mxu0 %v305_v63 }
  0xc2   :  { %530 = vmatpush2.msra.mxu0 %v304_v0  ;;  %v732_v0 = vld [vmem:[#allocation6 + $0x38] sm:$0xff] }
  0xc3   :  { %531 = vmatprep.subr.mxu0 %v303_v1  ;;  %v731_v1 = vld [vmem:[#allocation6 + $0x30] sm:$0xff] }
  0xc4   :  { %532 = vmatpush2.msra.mxu0 %v302_v2  ;;  %v730_v2 = vld [vmem:[#allocation6 + $0x28] sm:$0xff] }
  0xc5   :  { %533 = vmatprep.subr.mxu0 %v301_v3  ;;  %v729_v3 = vld [vmem:[#allocation6 + $0x20] sm:$0xff] }
  0xc6   :  { %534 = vmatpush2.msra.mxu0 %v300_v4  ;;  %v728_v4 = vld [vmem:[#allocation6 + $0x18] sm:$0xff] }
  0xc7   :  { %535 = vmatprep.subr.mxu0 %v299_v5  ;;  %v727_v5 = vld [vmem:[#allocation6 + $0x10] sm:$0xff] }
  0xc8   :  { %536 = vmatpush2.msra.mxu0 %v298_v6  ;;  %v726_v6 = vld [vmem:[#allocation6 + $0x8] sm:$0xff] }
  0xc9   :  { %537 = vmatprep.subr.mxu0 %v297_v7  ;;  %v725_v7 = vld [vmem:[#allocation6] sm:$0xff] }
  0xca   :  { %538 = vmatpush2.msra.mxu0 %v296_v8 }
  0xcb   :  { %539 = vmatprep.subr.mxu0 %v295_v9  ;;  %v653_v9 = vstv %s3454_s4 }
  0xcc   :  { %540 = vmatpush2.msra.mxu0 %v294_v10 }
  0xcd   :  { %542 = vmatmul.mubr.f32.vlgmr.msra.gmra.mxu0 %v129_v11  ;;  %955 = vmatprep.subr.mxu0 %v921_v32  ;;  %v1661_v32 = vld [vmem:[#allocation11 + $0x60] sm:$0xff] }
  0xce   :  { %991 = vmatprep.mubr.f32.mxu0 %v2806_v22  ;;  %956 = vmatpush1.msra.mxu0 %v920_v33  ;;  %v1822_v33 = vld [vmem:[#allocation11 + $0x568] sm:$0xff] }
  0xcf   :  { %957 = vmatprep.subr.mxu0 %v917_v34  ;;  %v1658_v34 = vld [vmem:[#allocation11 + $0x48] sm:$0xff] }
  0xd0   :  { %958 = vmatpush1.msra.mxu0 %v916_v35  ;;  %v1821_v35 = vld [vmem:[#allocation11 + $0x560] sm:$0xff] }
  0xd1   :  { %1026 = vmatprep.subr.mxu0 %v923_v36  ;;  %v1657_v36 = vld [vmem:[#allocation11 + $0x40] sm:$0xff] }
 0x14c   :  { %v401_v45 = vpop.f32.mrf.mxu0 }
 0x14d   :  { %v402_v49 = vadd.f32 %v401_v45, %v330_v46  ;;  %v919_v45 = vld [vmem:[#allocation9 + $0x18] sm:$0xff] }
 0x14e   :  { %v403_v47 = vpop.f32.mrf.mxu0 }
 0x14f   :  { %v472_v48 = vpop.f32.mrf.mxu1  ;;  %v404_v50 = vadd.f32 %v403_v47, %v330_v46  ;;  %v918_v46 = vld [vmem:[#allocation9 + $0x10] sm:$0xff]  ;;  %v915_v47 = vld [vmem:[#allocation8 + $0xf8] sm:$0xff] }
 0x150   :  { %v473_v52 = vadd.f32 %v472_v48, %v402_v49  ;;  %v914_v48 = vld [vmem:[#allocation8 + $0xf0] sm:$0xff]  ;;  %v911_v49 = vld [vmem:[#allocation8 + $0xd8] sm:$0xff] }
 0x151   :  { %v474_v51 = vpop.f32.mrf.mxu1 }
 0x152   :  { %v475_v55 = vadd.f32 %v474_v51, %v404_v50  ;;  %v910_v50 = vld [vmem:[#allocation8 + $0xd0] sm:$0xff]  ;;  %v907_v51 = vld [vmem:[#allocation8 + $0xb8] sm:$0xff] }
 0x156   :  { %v614_v54 = vpop.f32.mrf.mxu1 }
 0x158   :  { %v616_v60 = vpop.f32.mrf.mxu1 }
 0x18d   :  { %v543_v53 = vpop.f32.mrf.mxu0 }
 0x18e   :  { %v544_v56 = vadd.f32 %v543_v53, %v473_v52  ;;  %v906_v52 = vld [vmem:[#allocation8 + $0xb0] sm:$0xff]  ;;  %v903_v53 = vld [vmem:[#allocation8 + $0x98] sm:$0xff] }
 0x18f   :  { %v545_v57 = vpop.f32.mrf.mxu0 }
 0x190   :  { %v546_v58 = vadd.f32 %v545_v57, %v475_v55  ;;  %v615_v59 = vadd.f32 %v614_v54, %v544_v56  ;;  %v902_v54 = vld [vmem:[#allocation8 + $0x90] sm:$0xff]  ;;  %v899_v55 = vld [vmem:[#allocation8 + $0x78] sm:$0xff] }
 0x191   :  { %v898_v56 = vld [vmem:[#allocation8 + $0x70] sm:$0xff]  ;;  %v895_v57 = vld [vmem:[#allocation8 + $0x58] sm:$0xff] }
 0x192   :  { %v617_v61 = vadd.f32 %v616_v60, %v546_v58  ;;  %v619_v63 = vmax.f32 %v615_v59, 0.0  ;;  %v894_v58 = vld [vmem:[#allocation8 + $0x50] sm:$0xff]  ;;  %v891_v59 = vld [vmem:[#allocation8 + $0x38] sm:$0xff] }
 0x193   :  { %v890_v60 = vld [vmem:[#allocation8 + $0x30] sm:$0xff] }
 0x194   :  { %v620_v62 = vmax.f32 %v617_v61, 0.0  ;;  %v886_v61 = vld [vmem:[#allocation8 + $0x10] sm:$0xff] }
 0x196   :  { %718 = vmatprep.mubr.f32.mxu1 %v620_v62  ;;  %v1710_v62 = vld [vmem:[#allocation11 + $0x1e8] sm:$0xff] }
 0x197   :  { %719 = vmatmul.mubr.f32.vlgmr.msra.gmra.mxu1 %v619_v63  ;;  %v1709_v63 = vld [vmem:[#allocation11 + $0x1e0] sm:$0xff] }
 0x198   :  { %2573 = vmatpush3.msra.mxu1 %v732_v0  ;;  %2588 = vmatprep.mubr.msk.f32.mxu1 %vm2807_vm1, %v2806_v22 }
 0x199   :  { %2574 = vmatprep.subr.mxu1 %v2806_v22 }
 0x19a   :  { %2575 = vmatpush3.msra.mxu1 %v731_v1 }
 0x19b   :  { %2576 = vmatprep.subr.mxu1 %v2806_v22 }
 0x19c   :  { %2577 = vmatpush3.msra.mxu1 %v730_v2 }
 0x19d   :  { %2578 = vmatprep.subr.mxu1 %v2806_v22 }
 0x19e   :  { %2579 = vmatpush3.msra.mxu1 %v729_v3 }
 0x19f   :  { %2580 = vmatprep.subr.mxu1 %v2806_v22 }
 0x1a0   :  { %2581 = vmatpush3.msra.mxu1 %v728_v4 }
 0x1a1   :  { %2582 = vmatprep.subr.mxu1 %v2806_v22 }
 0x1a2   :  { %2583 = vmatpush3.msra.mxu1 %v727_v5 }
 0x1a3   :  { %2584 = vmatprep.subr.mxu1 %v2806_v22 }
 0x1a4   :  { %2585 = vmatpush3.msra.mxu1 %v726_v6 }
 0x1a5   :  { %2586 = vmatprep.subr.mxu1 %v2806_v22 }
 0x1a6   :  { %2587 = vmatpush3.msra.mxu1 %v725_v7 }
 0x1a7   :  { %2591 = vmatprep.subr.mxu1 %v2806_v22 }
 0x257   :  { %v2481_v8 = vpop.f32.mrf.mxu1 }
 0x259   :  { %v2482_v10 = vpop.f32.mrf.mxu1 }
 0x25a   :  { %v2483_v11 = vadd.f32 %v2482_v10, %v2481_v8  ;;  %v1690_v8 = vld [vmem:[#allocation11 + $0x148] sm:$0xff] }
 0x25b   :  { %v1686_v10 = vld [vmem:[#allocation11 + $0x128] sm:$0xff] }
 0x25c   :  { %v721_v12 = vadd.f32 %v2483_v11, %v653_v9  ;;  %v1689_v9 = vld [vmem:[#allocation11 + $0x140] sm:$0xff] }
 0x25d   :  { %v1685_v11 = vld [vmem:[#allocation11 + $0x120] sm:$0xff] }
 0x25e   :  { %v3048_v13 = vmax.f32 %v721_v12, 0.0  ;;  %v1682_v12 = vld [vmem:[#allocation11 + $0x108] sm:$0xff] }
 0x260   :  { %2589 = vmatmul.mubr.msk.f32.vlgmr.msra.gmra.mxu1 %vm733_vm2, %v3048_v13  ;;  %v807_v15 = vmul.f32 %v3048_v13, %v3048_v13 }
 0x261   :  { %2592 = vmatpush3.msra.mxu1 %v732_v0  ;;  %2607 = vmatprep.mubr.msk.f32.mxu1 %vm2807_vm1, %v2806_v22  ;;  %v1706_v0 = vld [vmem:[#allocation11 + $0x1c8] sm:$0xff] }
 0x262   :  { %2593 = vmatprep.subr.mxu1 %v2806_v22 }
 0x263   :  { %2594 = vmatpush3.msra.mxu1 %v731_v1  ;;  %v1705_v1 = vld [vmem:[#allocation11 + $0x1c0] sm:$0xff] }
 0x264   :  { %2595 = vmatprep.subr.mxu1 %v2806_v22 }
 0x265   :  { %2596 = vmatpush3.msra.mxu1 %v730_v2  ;;  %v1702_v2 = vld [vmem:[#allocation11 + $0x1a8] sm:$0xff] }
 0x266   :  { %2597 = vmatprep.subr.mxu1 %v2806_v22 }
 0x267   :  { %2598 = vmatpush3.msra.mxu1 %v729_v3  ;;  %v1701_v3 = vld [vmem:[#allocation11 + $0x1a0] sm:$0xff] }
 0x268   :  { %2599 = vmatprep.subr.mxu1 %v2806_v22 }
 0x269   :  { %2600 = vmatpush3.msra.mxu1 %v728_v4  ;;  %v1698_v4 = vld [vmem:[#allocation11 + $0x188] sm:$0xff] }
 0x26a   :  { %2601 = vmatprep.subr.mxu1 %v2806_v22 }
 0x26b   :  { %2602 = vmatpush3.msra.mxu1 %v727_v5  ;;  %v1697_v5 = vld [vmem:[#allocation11 + $0x180] sm:$0xff] }
 0x26c   :  { %2603 = vmatprep.subr.mxu1 %v2806_v22 }
 0x26d   :  { %2604 = vmatpush3.msra.mxu1 %v726_v6  ;;  %v1694_v6 = vld [vmem:[#allocation11 + $0x168] sm:$0xff] }
 0x26e   :  { %2605 = vmatprep.subr.mxu1 %v2806_v22 }
 0x26f   :  { %2606 = vmatpush3.msra.mxu1 %v725_v7  ;;  %v1693_v7 = vld [vmem:[#allocation11 + $0x160] sm:$0xff] }
 0x270   :  { %2608 = vmatmul.mubr.msk.f32.vlgmr.msra.gmra.mxu1 %vm733_vm2, %v807_v15  ;;  %1085 = vmatprep.subr.mxu1 %v913_v14  ;;  %v1678_v14 = vld [vmem:[#allocation11 + $0xe8] sm:$0xff]  ;;  %v1677_v15 = vld [vmem:[#allocation11 + $0xe0] sm:$0xff] }
 0x271   :  { %1086 = vmatpush1.msra.mxu1 %v912_v16  ;;  %1133 = vmatprep.mubr.f32.mxu1 %v2806_v22  ;;  %v1674_v16 = vld [vmem:[#allocation11 + $0xc8] sm:$0xff] }
 0x272   :  { %1087 = vmatprep.subr.mxu1 %v909_v17  ;;  %v1673_v17 = vld [vmem:[#allocation11 + $0xc0] sm:$0xff] }
 0x273   :  { %1088 = vmatpush1.msra.mxu1 %v908_v18  ;;  %v1838_v18 = vld [vmem:[#allocation11 + $0x5e8] sm:$0xff] }
 0x274   :  { %1089 = vmatprep.subr.mxu1 %v905_v19  ;;  %v1670_v19 = vld [vmem:[#allocation11 + $0xa8] sm:$0xff] }
 0x275   :  { %1090 = vmatpush1.msra.mxu1 %v904_v20  ;;  %v1837_v20 = vld [vmem:[#allocation11 + $0x5e0] sm:$0xff] }
 0x276   :  { %1091 = vmatprep.subr.mxu1 %v901_v21  ;;  %v1834_v21 = vld [vmem:[#allocation11 + $0x5c8] sm:$0xff] }
 0x277   :  { %1092 = vmatpush1.msra.mxu1 %v900_v23  ;;  %v1669_v23 = vld [vmem:[#allocation11 + $0xa0] sm:$0xff] }
 0x278   :  { %1093 = vmatprep.subr.mxu1 %v897_v24  ;;  %v1833_v24 = vld [vmem:[#allocation11 + $0x5c0] sm:$0xff] }
 0x279   :  { %1094 = vmatpush1.msra.mxu1 %v896_v25  ;;  %v1666_v25 = vld [vmem:[#allocation11 + $0x88] sm:$0xff] }
 0x27a   :  { %1095 = vmatprep.subr.mxu1 %v893_v26  ;;  %v1830_v26 = vld [vmem:[#allocation11 + $0x5a8] sm:$0xff] }
 0x27b   :  { %1096 = vmatpush1.msra.mxu1 %v892_v27  ;;  %v1829_v27 = vld [vmem:[#allocation11 + $0x5a0] sm:$0xff] }
 0x27c   :  { %1097 = vmatprep.subr.mxu1 %v889_v28  ;;  %v1665_v28 = vld [vmem:[#allocation11 + $0x80] sm:$0xff] }
 0x27d   :  { %1098 = vmatpush1.msra.mxu1 %v888_v29  ;;  %v1826_v29 = vld [vmem:[#allocation11 + $0x588] sm:$0xff] }
 0x27e   :  { %1099 = vmatprep.subr.mxu1 %v885_v30  ;;  %v1662_v30 = vld [vmem:[#allocation11 + $0x68] sm:$0xff] }
 0x27f   :  { %1100 = vmatpush1.msra.mxu1 %v884_v31  ;;  %v1825_v31 = vld [vmem:[#allocation11 + $0x580] sm:$0xff] }
 0x280   :  { %2430 = vmatmul.mubr.msk.f32.vlgmr.msra.gmra.mxu1 %vm733_vm2, %v3048_v13  ;;  %1905 = vmatprep.subr.mxu1 %v1710_v62  ;;  %v1793_v62 = vld [vmem:[#allocation11 + $0x480] sm:$0xff] }
 0x281   :  { %1906 = vmatpush1.msra.mxu1 %v1709_v63  ;;  %v1757_v63 = vld [vmem:[#allocation11 + $0x360] sm:$0xff] }
 0x282   :  { %1907 = vmatprep.subr.mxu1 %v1706_v0  ;;  %v1790_v0 = vld [vmem:[#allocation11 + $0x468] sm:$0xff] }
 0x283   :  { %1908 = vmatpush1.msra.mxu1 %v1705_v1  ;;  %v1754_v1 = vld [vmem:[#allocation11 + $0x348] sm:$0xff] }
 0x284   :  { %1909 = vmatprep.subr.mxu1 %v1702_v2  ;;  %v1789_v2 = vld [vmem:[#allocation11 + $0x460] sm:$0xff] }
 0x285   :  { %1910 = vmatpush1.msra.mxu1 %v1701_v3  ;;  %v1753_v3 = vld [vmem:[#allocation11 + $0x340] sm:$0xff] }
 0x286   :  { %1911 = vmatprep.subr.mxu1 %v1698_v4  ;;  %v1786_v4 = vld [vmem:[#allocation11 + $0x448] sm:$0xff] }
 0x287   :  { %1912 = vmatpush1.msra.mxu1 %v1697_v5  ;;  %v1750_v5 = vld [vmem:[#allocation11 + $0x328] sm:$0xff] }
 0x288   :  { %1913 = vmatprep.subr.mxu1 %v1694_v6  ;;  %v1785_v6 = vld [vmem:[#allocation11 + $0x440] sm:$0xff] }
 0x289   :  { %1914 = vmatpush1.msra.mxu1 %v1693_v7  ;;  %v1749_v7 = vld [vmem:[#allocation11 + $0x320] sm:$0xff] }
 0x28a   :  { %1915 = vmatprep.subr.mxu1 %v1690_v8  ;;  %v1782_v8 = vld [vmem:[#allocation11 + $0x428] sm:$0xff] }
 0x28b   :  { %1916 = vmatpush1.msra.mxu1 %v1689_v9  ;;  %v1746_v9 = vld [vmem:[#allocation11 + $0x308] sm:$0xff] }
 0x28c   :  { %1917 = vmatprep.subr.mxu1 %v1686_v10  ;;  %v1781_v10 = vld [vmem:[#allocation11 + $0x420] sm:$0xff] }
 0x28d   :  { %1918 = vmatpush1.msra.mxu1 %v1685_v11  ;;  %v1745_v11 = vld [vmem:[#allocation11 + $0x300] sm:$0xff] }
 0x28e   :  { %1919 = vmatprep.subr.mxu1 %v1682_v12  ;;  %v1778_v12 = vld [vmem:[#allocation11 + $0x408] sm:$0xff] }
 0x320   :  { %v803_v37 = vpop.f32.mrf.mxu1 }
 0x321   :  { %v881_v39 = vmul.f32 %v803_v37, %v803_v37  ;;  %v1818_v37 = vld [vmem:[#allocation11 + $0x548] sm:$0xff] }
 0x322   :  { %v2590_v38 = vpop.f32.mrf.mxu1 }
 0x323   :  { %v1654_v38 = vld [vmem:[#allocation11 + $0x28] sm:$0xff] }
 0x330   :  { %v877_v40 = vpop.f32.mrf.mxu1 }
 0x331   :  { %v882_v41 = vsub.f32 %v881_v39, %v877_v40  ;;  %v1817_v39 = vld [vmem:[#allocation11 + $0x540] sm:$0xff] }
 0x332   :  { %v2609_v42 = vpop.f32.mrf.mxu1  ;;  %v1653_v40 = vld [vmem:[#allocation11 + $0x20] sm:$0xff] }
 0x333   :  { %v883_v43 = vmul.f32 0.5, %v882_v41  ;;  %v1814_v41 = vld [vmem:[#allocation11 + $0x528] sm:$0xff] }
 0x334   :  { %v1650_v42 = vld [vmem:[#allocation11 + $0x8] sm:$0xff] }
 0x335   :  { %2428 = vmatmul.mubr.msk.f32.vlgmr.msra.gmra.mxu0 %vm331_vm0, %v883_v43 }
 0x336   :  { %1027 = vmatpush1.msra.mxu0 %v922_v44  ;;  %1062 = vmatprep.mubr.f32.mxu0 %v2806_v22  ;;  %v1649_v44 = vld [vmem:[#allocation11] sm:$0xff] }
 0x337   :  { %1028 = vmatprep.subr.mxu0 %v919_v45  ;;  %v1810_v45 = vld [vmem:[#allocation11 + $0x508] sm:$0xff] }
 0x338   :  { %1029 = vmatpush1.msra.mxu0 %v918_v46  ;;  %v1774_v46 = vld [vmem:[#allocation11 + $0x3e8] sm:$0xff] }
 0x339   :  { %1156 = vmatprep.subr.mxu0 %v915_v47  ;;  %2429 = vmatmul.mubr.msk.f32.vlgmr.msra.gmra.mxu0 %vm331_vm0, %v883_v43  ;;  %v1813_v43 = vld [vmem:[#allocation11 + $0x520] sm:$0xff] }
 0x33a   :  { %1157 = vmatpush1.msra.mxu0 %v914_v48  ;;  %1204 = vmatprep.mubr.f32.mxu0 %v2806_v22  ;;  %v887_v22 = vld [vmem:[#allocation8 + $0x18] sm:$0xff]  ;;  %v1809_v47 = vld [vmem:[#allocation11 + $0x500] sm:$0xff] }
 0x33b   :  { %1158 = vmatprep.subr.mxu0 %v911_v49  ;;  %v1773_v48 = vld [vmem:[#allocation11 + $0x3e0] sm:$0xff]  ;;  %v1806_v49 = vld [vmem:[#allocation11 + $0x4e8] sm:$0xff] }
 0x33c   :  { %1159 = vmatpush1.msra.mxu0 %v910_v50  ;;  %v1770_v50 = vld [vmem:[#allocation11 + $0x3c8] sm:$0xff] }
 0x33d   :  { %1160 = vmatprep.subr.mxu0 %v907_v51  ;;  %v1805_v51 = vld [vmem:[#allocation11 + $0x4e0] sm:$0xff] }
 0x33e   :  { %1161 = vmatpush1.msra.mxu0 %v906_v52  ;;  %v1769_v52 = vld [vmem:[#allocation11 + $0x3c0] sm:$0xff] }
 0x33f   :  { %1162 = vmatprep.subr.mxu0 %v903_v53  ;;  %v1802_v53 = vld [vmem:[#allocation11 + $0x4c8] sm:$0xff] }
 0x340   :  { %1163 = vmatpush1.msra.mxu0 %v902_v54  ;;  %v1766_v54 = vld [vmem:[#allocation11 + $0x3a8] sm:$0xff] }
 0x341   :  { %1164 = vmatprep.subr.mxu0 %v899_v55  ;;  %v1801_v55 = vld [vmem:[#allocation11 + $0x4c0] sm:$0xff] }
 0x342   :  { %1165 = vmatpush1.msra.mxu0 %v898_v56  ;;  %v1765_v56 = vld [vmem:[#allocation11 + $0x3a0] sm:$0xff] }
 0x343   :  { %1166 = vmatprep.subr.mxu0 %v895_v57  ;;  %v1798_v57 = vld [vmem:[#allocation11 + $0x4a8] sm:$0xff] }
 0x344   :  { %1167 = vmatpush1.msra.mxu0 %v894_v58  ;;  %v1762_v58 = vld [vmem:[#allocation11 + $0x388] sm:$0xff] }
 0x345   :  { %1168 = vmatprep.subr.mxu0 %v891_v59  ;;  %v1797_v59 = vld [vmem:[#allocation11 + $0x4a0] sm:$0xff] }
 0x346   :  { %1169 = vmatpush1.msra.mxu0 %v890_v60  ;;  %v1761_v60 = vld [vmem:[#allocation11 + $0x380] sm:$0xff] }
 0x347   :  { %1170 = vmatprep.subr.mxu0 %v887_v22  ;;  %v1794_v22 = vld [vmem:[#allocation11 + $0x488] sm:$0xff] }
 0x348   :  { %1171 = vmatpush1.msra.mxu0 %v886_v61  ;;  %v1758_v61 = vld [vmem:[#allocation11 + $0x368] sm:$0xff] }
 0x349   :  { %2431 = vmatmul.mubr.msk.f32.vlgmr.msra.gmra.mxu0 %vm733_vm2, %v3048_v13  ;;  %v1681_v13 = vld [vmem:[#allocation11 + $0x100] sm:$0xff]  ;;  %1976 = vmatprep.subr.mxu0 %v1838_v18 }
 0x34a   :  { %1920 = vmatpush1.msra.mxu1 %v1681_v13  ;;  %1977 = vmatpush1.msra.mxu0 %v1837_v20  ;;  %v1742_v13 = vld [vmem:[#allocation11 + $0x2e8] sm:$0xff]  ;;  %v1901_v18 = vld [vmem:[#allocation11 + $0x7e0] sm:$0xff] }
 0x34b   :  { %1921 = vmatprep.subr.mxu1 %v1678_v14  ;;  %1978 = vmatprep.subr.mxu0 %v1834_v21  ;;  %v1777_v14 = vld [vmem:[#allocation11 + $0x400] sm:$0xff]  ;;  %v1898_v20 = vld [vmem:[#allocation11 + $0x7c8] sm:$0xff] }
 0x34c   :  { %1922 = vmatpush1.msra.mxu1 %v1677_v15  ;;  %1979 = vmatpush1.msra.mxu0 %v1833_v24  ;;  %v1741_v15 = vld [vmem:[#allocation11 + $0x2e0] sm:$0xff]  ;;  %v1734_v21 = vld [vmem:[#allocation11 + $0x2a8] sm:$0xff] }
 0x34d   :  { %1923 = vmatprep.subr.mxu1 %v1674_v16  ;;  %1980 = vmatprep.subr.mxu0 %v1830_v26  ;;  %v1902_v16 = vld [vmem:[#allocation11 + $0x7e8] sm:$0xff]  ;;  %v1733_v24 = vld [vmem:[#allocation11 + $0x2a0] sm:$0xff] }
 0x34e   :  { %1924 = vmatpush1.msra.mxu1 %v1673_v17  ;;  %1981 = vmatpush1.msra.mxu0 %v1829_v27  ;;  %v1738_v17 = vld [vmem:[#allocation11 + $0x2c8] sm:$0xff]  ;;  %v1893_v27 = vld [vmem:[#allocation11 + $0x7a0] sm:$0xff] }
 0x34f   :  { %1925 = vmatprep.subr.mxu1 %v1670_v19  ;;  %1982 = vmatprep.subr.mxu0 %v1826_v29  ;;  %v1737_v19 = vld [vmem:[#allocation11 + $0x2c0] sm:$0xff]  ;;  %v1730_v26 = vld [vmem:[#allocation11 + $0x288] sm:$0xff] }
 0x350   :  { %1926 = vmatpush1.msra.mxu1 %v1669_v23  ;;  %1983 = vmatpush1.msra.mxu0 %v1825_v31  ;;  %v1897_v23 = vld [vmem:[#allocation11 + $0x7c0] sm:$0xff]  ;;  %v1890_v29 = vld [vmem:[#allocation11 + $0x788] sm:$0xff] }
 0x351   :  { %1927 = vmatprep.subr.mxu1 %v1666_v25  ;;  %1984 = vmatprep.subr.mxu0 %v1822_v33  ;;  %v1894_v25 = vld [vmem:[#allocation11 + $0x7a8] sm:$0xff]  ;;  %v1889_v31 = vld [vmem:[#allocation11 + $0x780] sm:$0xff] }
 0x352   :  { %1928 = vmatpush1.msra.mxu1 %v1665_v28  ;;  %1985 = vmatpush1.msra.mxu0 %v1821_v35  ;;  %v1729_v28 = vld [vmem:[#allocation11 + $0x280] sm:$0xff]  ;;  %v1886_v33 = vld [vmem:[#allocation11 + $0x768] sm:$0xff] }
 0x353   :  { %1929 = vmatprep.subr.mxu1 %v1662_v30  ;;  %1986 = vmatprep.subr.mxu0 %v1818_v37  ;;  %v1726_v30 = vld [vmem:[#allocation11 + $0x268] sm:$0xff]  ;;  %v1885_v35 = vld [vmem:[#allocation11 + $0x760] sm:$0xff] }
 0x354   :  { %1930 = vmatpush1.msra.mxu1 %v1661_v32  ;;  %1987 = vmatpush1.msra.mxu0 %v1817_v39  ;;  %v1725_v32 = vld [vmem:[#allocation11 + $0x260] sm:$0xff]  ;;  %v1882_v37 = vld [vmem:[#allocation11 + $0x748] sm:$0xff] }
 0x355   :  { %1931 = vmatprep.subr.mxu1 %v1658_v34  ;;  %1988 = vmatprep.subr.mxu0 %v1814_v41  ;;  %v1722_v34 = vld [vmem:[#allocation11 + $0x248] sm:$0xff]  ;;  %v1881_v39 = vld [vmem:[#allocation11 + $0x740] sm:$0xff] }
 0x356   :  { %1932 = vmatpush1.msra.mxu1 %v1657_v36  ;;  %1989 = vmatpush1.msra.mxu0 %v1813_v43  ;;  %v1721_v36 = vld [vmem:[#allocation11 + $0x240] sm:$0xff]  ;;  %v1878_v41 = vld [vmem:[#allocation11 + $0x728] sm:$0xff] }
 0x357   :  { %1933 = vmatprep.subr.mxu1 %v1654_v38  ;;  %1990 = vmatprep.subr.mxu0 %v1810_v45  ;;  %v1718_v38 = vld [vmem:[#allocation11 + $0x228] sm:$0xff]  ;;  %v1713_v43 = vld [vmem:[#allocation11 + $0x200] sm:$0xff]  ;;  %v1712_v45 = vld [vmem:[#allocation11 + $0x1f8] sm:$0xff] }
 0x358   :  { %1934 = vmatpush1.msra.mxu1 %v1653_v40  ;;  %1991 = vmatpush1.msra.mxu0 %v1809_v47  ;;  %v1717_v40 = vld [vmem:[#allocation11 + $0x220] sm:$0xff] }
 0x359   :  { %1935 = vmatprep.subr.mxu1 %v1650_v42  ;;  %1992 = vmatprep.subr.mxu0 %v1806_v49  ;;  %v1714_v42 = vld [vmem:[#allocation11 + $0x208] sm:$0xff]  ;;  %v1873_v47 = vld [vmem:[#allocation11 + $0x700] sm:$0xff] }
 0x35a   :  { %1936 = vmatpush1.msra.mxu1 %v1649_v44  ;;  %1993 = vmatpush1.msra.mxu0 %v1805_v51  ;;  %v1877_v44 = vld [vmem:[#allocation11 + $0x720] sm:$0xff] }
 0x35b   :  { %1937 = vmatprep.subr.mxu1 %v1774_v46  ;;  %1994 = vmatprep.subr.mxu0 %v1802_v53  ;;  %v1874_v46 = vld [vmem:[#allocation11 + $0x708] sm:$0xff]  ;;  %v1869_v49 = vld [vmem:[#allocation11 + $0x6e0] sm:$0xff] }
 0x35c   :  { %1938 = vmatpush2.msra.mxu1 %v1773_v48  ;;  %1995 = vmatpush1.msra.mxu0 %v1801_v55  ;;  %v1870_v48 = vld [vmem:[#allocation11 + $0x6e8] sm:$0xff]  ;;  %v1865_v51 = vld [vmem:[#allocation11 + $0x6c0] sm:$0xff] }
 0x35d   :  { %1939 = vmatprep.subr.mxu1 %v1770_v50  ;;  %1996 = vmatprep.subr.mxu0 %v1798_v57  ;;  %v1866_v50 = vld [vmem:[#allocation11 + $0x6c8] sm:$0xff] }
 0x35e   :  { %1940 = vmatpush2.msra.mxu1 %v1769_v52  ;;  %1997 = vmatpush1.msra.mxu0 %v1797_v59  ;;  %v1213_v52 = vlaneseq  ;;  %v1862_v53 = vld [vmem:[#allocation11 + $0x6a8] sm:$0xff]  ;;  %v1853_v59 = vld [vmem:[#allocation11 + $0x660] sm:$0xff] }
 0x35f   :  { %1941 = vmatprep.subr.mxu1 %v1766_v54  ;;  %1998 = vmatprep.subr.mxu0 %v1794_v22  ;;  %v1861_v54 = vld [vmem:[#allocation11 + $0x6a0] sm:$0xff]  ;;  %v1858_v55 = vld [vmem:[#allocation11 + $0x688] sm:$0xff] }
 0x360   :  { %1942 = vmatpush2.msra.mxu1 %v1765_v56  ;;  %1999 = vmatpush1.msra.mxu0 %v1793_v62  ;;  %v1857_v56 = vld [vmem:[#allocation11 + $0x680] sm:$0xff]  ;;  %v1214_v57 = vshrl.u32 %v1213_v52, 7  ;;  %v1846_v62 = vld [vmem:[#allocation11 + $0x628] sm:$0xff] }
 0x361   :  { %1943 = vmatprep.subr.mxu1 %v1762_v58  ;;  %2000 = vmatprep.subr.mxu0 %v1790_v0  ;;  %v1854_v58 = vld [vmem:[#allocation11 + $0x668] sm:$0xff]  ;;  %v1849_v22 = vld [vmem:[#allocation11 + $0x640] sm:$0xff] }
 0x362   :  { %1944 = vmatpush2.msra.mxu1 %v1761_v60  ;;  %2001 = vmatpush1.msra.mxu0 %v1789_v2  ;;  %v1850_v60 = vld [vmem:[#allocation11 + $0x648] sm:$0xff]  ;;  %v1845_v0 = vld [vmem:[#allocation11 + $0x620] sm:$0xff] }
 0x363   :  { %1945 = vmatprep.subr.mxu1 %v1758_v61  ;;  %2002 = vmatprep.subr.mxu0 %v1786_v4  ;;  %v1215_v61 = vsub.s32 0, %v1214_v57  ;;  %v1842_v2 = vld [vmem:[#allocation11 + $0x608] sm:$0xff]  ;;  %v1841_v4 = vld [vmem:[#allocation11 + $0x600] sm:$0xff] }
 0x364   :  { %1946 = vmatpush2.msra.mxu1 %v1757_v63  ;;  %2003 = vmatpush1.msra.mxu0 %v1785_v6  ;;  %v1211_v63 = vld [vmem:[%s3458_s8] sm:$0xf] }
 0x365   :  { %1947 = vmatprep.subr.mxu1 %v1754_v1  ;;  %2004 = vmatprep.subr.mxu0 %v1782_v8  ;;  %v1219_v1 = vsub.s32 1, %v1214_v57 }
 0x366   :  { %1948 = vmatpush2.msra.mxu1 %v1753_v3  ;;  %2005 = vmatpush1.msra.mxu0 %v1781_v10  ;;  %v1135_v3 = vpop.f32.mrf.mxu1 }
 0x367   :  { %1949 = vmatprep.subr.mxu1 %v1750_v5  ;;  %2006 = vmatprep.subr.mxu0 %v1778_v12  ;;  %v1216_v5 = vrot.slane %v1211_v63, %v1215_v61  ;;  %v1220_v8 = vrot.slane %v1211_v63, %v1219_v1 }
 0x368   :  { %1950 = vmatpush2.msra.mxu1 %v1749_v7  ;;  %2007 = vmatpush1.msra.mxu0 %v1777_v14 }
 0x369   :  { %1951 = vmatprep.subr.mxu1 %v1746_v9  ;;  %2008 = vmatprep.subr.mxu0 %v1902_v16  ;;  %v1137_v9 = vpop.f32.mrf.mxu1 }
 0x36a   :  { %1952 = vmatpush2.msra.mxu1 %v1745_v11  ;;  %2009 = vmatpush2.msra.mxu0 %v1901_v18  ;;  %v1840_v11 = vld [vmem:[#allocation11 + $0x5f8] sm:$0xff] }
 0x36b   :  { %1953 = vmatprep.subr.mxu1 %v1742_v13  ;;  %2010 = vmatprep.subr.mxu0 %v1898_v20 }
 0x36c   :  { %1954 = vmatpush2.msra.mxu1 %v1741_v15  ;;  %2011 = vmatpush2.msra.mxu0 %v1897_v23 }
 0x36d   :  { %1955 = vmatprep.subr.mxu1 %v1738_v17  ;;  %2012 = vmatprep.subr.mxu0 %v1894_v25 }
 0x36e   :  { %1956 = vmatpush2.msra.mxu1 %v1737_v19  ;;  %2013 = vmatpush2.msra.mxu0 %v1893_v27 }
 0x36f   :  { %1957 = vmatprep.subr.mxu1 %v1734_v21  ;;  %2014 = vmatprep.subr.mxu0 %v1890_v29  ;;  %v1223_v29 = vsub.s32 2, %v1214_v57 }
 0x370   :  { %1958 = vmatpush2.msra.mxu1 %v1733_v24  ;;  %2015 = vmatpush2.msra.mxu0 %v1889_v31 }
 0x371   :  { %1959 = vmatprep.subr.mxu1 %v1730_v26  ;;  %2016 = vmatprep.subr.mxu0 %v1886_v33 }
 0x372   :  { %1960 = vmatpush2.msra.mxu1 %v1729_v28  ;;  %2017 = vmatpush2.msra.mxu0 %v1885_v35 }
 0x373   :  { %1961 = vmatprep.subr.mxu1 %v1726_v30  ;;  %2018 = vmatprep.subr.mxu0 %v1882_v37  ;;  %v1227_v30 = vsub.s32 3, %v1214_v57  ;;  %v1224_v37 = vrot.slane %v1211_v63, %v1223_v29  ;;  %v2812_v57 = vmov 920167782  }
 0x374   :  { %1962 = vmatpush2.msra.mxu1 %v1725_v32  ;;  %2019 = vmatpush2.msra.mxu0 %v1881_v39  ;;  %v2808_v39 = vmov 2102212464  }
 0x375   :  { %1963 = vmatprep.subr.mxu1 %v1722_v34  ;;  %2020 = vmatprep.subr.mxu0 %v1878_v41 }
 0x376   :  { %1964 = vmatpush2.msra.mxu1 %v1721_v36  ;;  %2021 = vmatpush2.msra.mxu0 %v1877_v44 }
 0x377   :  { %1965 = vmatprep.subr.mxu1 %v1718_v38  ;;  %2022 = vmatprep.subr.mxu0 %v1874_v46  ;;  %v1228_v38 = vrot.slane %v1211_v63, %v1227_v30 }
 0x378   :  { %1966 = vmatpush2.msra.mxu1 %v1717_v40  ;;  %2023 = vmatpush2.msra.mxu0 %v1873_v47  ;;  %v2809_v47 = vmov 683565275  }
 0x379   :  { %1967 = vmatprep.subr.mxu1 %v1714_v42  ;;  %2024 = vmatprep.subr.mxu0 %v1870_v48 }
 0x37a   :  { %1968 = vmatpush2.msra.mxu1 %v1713_v43  ;;  %2025 = vmatpush2.msra.mxu0 %v1869_v49  ;;  %v2810_v49 = vmov 2475754826  }
 0x37b   :  { %2047 = vmatprep.subr.mxu1 %v1712_v45  ;;  %2026 = vmatprep.subr.mxu0 %v1866_v50 }
 0x37c   :  { %2027 = vmatpush2.msra.mxu0 %v1865_v51 }
 0x37d   :  { %2028 = vmatprep.subr.mxu0 %v1862_v53  ;;  %v2811_v53 = vmov 2131351028  }
 0x37e   :  { %2029 = vmatpush2.msra.mxu0 %v1861_v54 }
 0x37f   :  { %2030 = vmatprep.subr.mxu0 %v1858_v55 }
 0x380   :  { %2031 = vmatpush2.msra.mxu0 %v1857_v56 }
 0x381   :  { %2032 = vmatprep.subr.mxu0 %v1854_v58 }
 0x382   :  { %2033 = vmatpush2.msra.mxu0 %v1853_v59 }
 0x383   :  { %2034 = vmatprep.subr.mxu0 %v1850_v60 }
 0x384   :  { %2035 = vmatpush2.msra.mxu0 %v1849_v22 }
 0x385   :  { %2036 = vmatprep.subr.mxu0 %v1846_v62 }
 0x386   :  { %2037 = vmatpush2.msra.mxu0 %v1845_v0 }
 0x387   :  { %2038 = vmatprep.subr.mxu0 %v1842_v2 }
 0x388   :  { %2039 = vmatpush2.msra.mxu0 %v1841_v4  ;;  %v2813_v4 = vmov 1326507024  }
 0x389   :  { %2118 = vmatprep.subr.mxu0 %v1840_v11 }
 0x3f5   :  { %v993_v6 = vpop.f32.mrf.mxu0 }
 0x3f6   :  { %v1136_v7 = vadd.f32 %v1135_v3, %v993_v6 }
 0x3f7   :  { %v995_v10 = vpop.f32.mrf.mxu0 }
 0x3f8   :  { %v3075_v12 = vadd.f32 %v1216_v5, %v1136_v7  ;;  %v1138_v13 = vadd.f32 %v1137_v9, %v995_v10 }
 0x3f9   :  { %v1064_v27 = vpop.f32.mrf.mxu0 }
 0x3fa   :  { %v1240_v14 = vand.u32 2139095040, %v3075_v12  ;;  %v3078_v15 = vadd.f32 %v1220_v8, %v1138_v13  ;;  %v1237_v33 = vand.u32 2147483647, %v3075_v12 }
 0x3fb   :  { %v1066_v35 = vpop.f32.mrf.mxu0 }
 0x3fc   :  { %v1241_v16 = vshrl.u32 %v1240_v14, 23  ;;  %v1343_v17 = vand.u32 2139095040, %v3078_v15  ;;  %v1340_v18 = vand.u32 2147483647, %v3078_v15  ;;  %v3101_v44 = vand.u32 8388607, %v1237_v33 }
 0x3fe   :  { %v2432_v19 = vadd.s32 4294967169, %v1241_v16  ;;  %v1344_v20 = vshrl.u32 %v1343_v17, 23  ;;  %v1347_v24 = vand.u32 8388607, %v1340_v18 }
 0x400   :  { %v1247_v21 = vadd.s32 1, %v2432_v19  ;;  %v2436_v23 = vadd.s32 4294967169, %v1344_v20  ;;  %v1348_v32 = vor.u32 8388608, %v1347_v24 }
 0x402   :  { %vm1248_vm3 = vcmp.gt.s32.totalorder %v1247_v21, 0  ;;  %v1350_v25 = vadd.s32 1, %v2436_v23  ;;  %v3097_v43 = vshll.u32 %v1348_v32, 8 }
 0x403   :  { %v3084_v26 = vsel %vm1248_vm3, %v1247_v21, 0 }
 0x404   :  { %v3087_v28 = vand.u32 31, %v3084_v26  ;;  %vm1351_vm4 = vcmp.gt.s32.totalorder %v1350_v25, 0 }
 0x405   :  { %v1352_v31 = vsel %vm1351_vm4, %v1350_v25, 0 }
 0x406   :  { %v1354_v34 = vand.u32 31, %v1352_v31  ;;  %v3091_v36 = vsub.s32 32, %v3087_v28  ;;  %v3095_v40 = vshll.u32 %v2808_v39, %v3087_v28  ;;  %v3103_v45 = vshrl.u32 %v1352_v31, 5 }
 0x408   :  { %v1355_v41 = vsub.s32 32, %v1354_v34  ;;  %v1357_v48 = vshll.u32 %v2809_v47, %v1354_v34  ;;  %v1360_v50 = vshll.u32 %v2810_v49, %v1354_v34  ;;  %v1363_v55 = vshll.u32 %v2811_v53, %v1354_v34 }
 0x409   :  { %v1206_v42 = vpop.f32.mrf.mxu0  ;;  %v1264_v58 = vshrl.u32 %v2812_v57, %v3091_v36  ;;  %v1366_v22 = vshll.u32 %v2808_v39, %v1354_v34  ;;  %v1369_v3 = vshll.u32 %v2812_v57, %v1354_v34  ;;  %v1267_v6 = vshrl.u32 %v2813_v4, %v3091_v36 }
 0x40a   :  { %v1207_v46 = vadd.f32 %v1206_v42, %v1064_v27  ;;  %v1358_v52 = vshrl.u32 %v2810_v49, %v1355_v41  ;;  %v1361_v54 = vshrl.u32 %v2811_v53, %v1355_v41  ;;  %v1364_v56 = vshrl.u32 %v2808_v39, %v1355_v41 }
 0x40b   :  { %v1208_v51 = vpop.f32.mrf.mxu0  ;;  %v1367_v0 = vshrl.u32 %v2812_v57, %v1355_v41  ;;  %v1370_v5 = vshrl.u32 %v2813_v4, %v1355_v41  ;;  %v1356_v7 = vshrl.u32 %v2809_v47, %v1355_v41  ;;  %vm1372_vm5 = vcmp.lt.s32.totalorder %v3103_v45, 1 }
 0x40c   :  { %v3113_v59 = vadd.f32 %v1224_v37, %v1207_v46  ;;  %v1209_v60 = vadd.f32 %v1208_v51, %v1066_v35  ;;  %v1359_v61 = vor.u32 %v1358_v52, %v1357_v48  ;;  %v1362_v62 = vor.u32 %v1361_v54, %v1360_v50 }
 0x40d   :  { %v1365_v63 = vor.u32 %v1364_v56, %v1363_v55  ;;  %v1368_v8 = vor.u32 %v1367_v0, %v1366_v22  ;;  %v1371_v11 = vor.u32 %v1370_v5, %v1369_v3  ;;  %vm1375_vm6 = vcmp.lt.s32.totalorder %v3103_v45, 4 }
 0x40e   :  { %v1446_v1 = vand.u32 2139095040, %v3113_v59  ;;  %v3118_v2 = vadd.f32 %v1228_v38, %v1209_v60  ;;  %vm1373_vm7 = vcmp.lt.s32.totalorder %v3103_v45, 2  ;;  %vm1374_vm8 = vcmp.lt.s32.totalorder %v3103_v45, 3 }
 0x40f   :  { %v1380_v13 = vsel %vm1372_vm5, %v1359_v61, %v1362_v62  ;;  %v1381_v14 = vsel %vm1375_vm6, %v1368_v8, 920167782  ;;  %v1377_v19 = vsel %vm1375_vm6, %v1365_v63, 2102212464  ;;  %v1384_v23 = vsel %vm1372_vm5, %v1362_v62, %v1365_v63 }
 0x410   :  { %v1447_v9 = vshrl.u32 %v1446_v1, 23  ;;  %v1549_v10 = vand.u32 2139095040, %v3118_v2  ;;  %v1382_v20 = vsel %vm1374_vm8, %v1365_v63, %v1381_v14  ;;  %v1385_v24 = vsel %vm1375_vm6, %v1371_v11, 1326507024 }
 0x411   :  { %v1383_v21 = vsel %vm1373_vm7, %v1380_v13, %v1382_v20  ;;  %v1255_v25 = vshrl.u32 %v2810_v49, %v3091_v36  ;;  %v1376_v30 = vsel %vm1372_vm5, %v1356_v7, %v1359_v61  ;;  %v1386_v31 = vsel %vm1374_vm8, %v1368_v8, %v1385_v24 }
 0x412   :  { %v2440_v16 = vadd.s32 4294967169, %v1447_v9  ;;  %v1550_v17 = vshrl.u32 %v1549_v10, 23  ;;  %v1378_v32 = vsel %vm1374_vm8, %v1362_v62, %v1377_v19  ;;  %v1387_v34 = vsel %vm1373_vm7, %v1384_v23, %v1386_v31 }
 0x413   :  { %v3143_v35 = vmul.u32.u64.low %v3097_v43, %v1383_v21  ;;  %v3144_v37 = vmul.u32.u64.high %v3097_v43, %v1383_v21, %v3143_v35  ;;  %v3148_v41 = vmul.u32.u64.low %v3097_v43, %v1387_v34  ;;  %v3149_v42 = vmul.u32.u64.high %v3097_v43, %v1387_v34, %v3148_v41 }
 0x414   :  { %v1453_v27 = vadd.s32 1, %v2440_v16  ;;  %v2444_v29 = vadd.s32 4294967169, %v1550_v17  ;;  %v1250_v46 = vshrl.u32 %v3084_v26, 5  ;;  %v1266_v48 = vshll.u32 %v2812_v57, %v3087_v28 }
 0x415   :  { %v1258_v50 = vshrl.u32 %v2811_v53, %v3091_v36  ;;  %v1261_v51 = vshrl.u32 %v2808_v39, %v3091_v36  ;;  %v1265_v52 = vor.u32 %v1264_v58, %v3095_v40  ;;  %v1379_v54 = vsel %vm1373_vm7, %v1376_v30, %v1378_v32 }
 0x416   :  { %vm1454_vm9 = vcmp.gt.s32.totalorder %v1453_v27, 0  ;;  %v1556_v38 = vadd.s32 1, %v2444_v29  ;;  %v1254_v55 = vshll.u32 %v2809_v47, %v3087_v28  ;;  %v1257_v26 = vshll.u32 %v2810_v49, %v3087_v28 }
 0x417   :  { %v1455_v56 = vsel %vm1454_vm9, %v1453_v27, 0  ;;  %v1398_v60 = vadd.s32 1, %v3144_v37  ;;  %v1245_v22 = vor.u32 8388608, %v3101_v44  ;;  %v1260_v61 = vshll.u32 %v2811_v53, %v3087_v28 }
 0x418   :  { %v1268_v62 = vor.u32 %v1267_v6, %v1266_v48  ;;  %vm1557_vm10 = vcmp.gt.s32.totalorder %v1556_v38, 0  ;;  %v1256_v40 = vor.u32 %v1255_v25, %v1254_v55  ;;  %v1259_v58 = vor.u32 %v1258_v50, %v1257_v26 }
 0x419   :  { %vm1272_vm11 = vcmp.lt.s32.totalorder %v1250_v46, 4  ;;  %v1395_v45 = vmul.u32 %v3097_v43, %v1379_v54  ;;  %vm1397_vm12 = vc.u32 %v3149_v42, %v3143_v35  ;;  %v1262_v63 = vor.u32 %v1261_v51, %v1260_v61 }
 0x41a   :  { %v1278_v0 = vsel %vm1272_vm11, %v1265_v52, 920167782  ;;  %v3173_v1 = vand.u32 31, %v1455_v56  ;;  %v1399_v44 = vsel %vm1397_vm12, %v1398_v60, %v3144_v37  ;;  %v1558_v3 = vsel %vm1557_vm10, %v1556_v38, 0 }
 0x41b   :  { %v1400_v5 = vadd.s32 %v1399_v44, %v1395_v45  ;;  %vm1269_vm13 = vcmp.lt.s32.totalorder %v1250_v46, 1  ;;  %v1285_v28 = vshll.u32 %v1245_v22, 8  ;;  %v1282_v6 = vsel %vm1272_vm11, %v1268_v62, 1326507024 }
 0x41c   :  { %vm1270_vm14 = vcmp.lt.s32.totalorder %v1250_v46, 2  ;;  %vm1271_vm15 = vcmp.lt.s32.totalorder %v1250_v46, 3  ;;  %v1277_v43 = vsel %vm1269_vm13, %v1256_v40, %v1259_v58  ;;  %v1274_v8 = vsel %vm1272_vm11, %v1262_v63, 2102212464 }
 0x41d   :  { %v1401_v7 = vadd.s32 536870912, %v1400_v5  ;;  %v1279_v9 = vsel %vm1271_vm15, %v1262_v63, %v1278_v0  ;;  %v1281_v10 = vsel %vm1269_vm13, %v1259_v58, %v1262_v63  ;;  %v3181_v11 = vsub.s32 32, %v3173_v1 }
 0x41e   :  { %v1560_v13 = vand.u32 31, %v1558_v3  ;;  %v1253_v14 = vshrl.u32 %v2809_v47, %v3091_v36  ;;  %v1280_v16 = vsel %vm1270_vm14, %v1277_v43, %v1279_v9  ;;  %v1283_v19 = vsel %vm1271_vm15, %v1265_v52, %v1282_v6 }
 0x41f   :  { %v3186_v17 = vshrl.u32 %v1401_v7, 30  ;;  %v3188_v20 = vmul.u32.u64.low %v1285_v28, %v1280_v16  ;;  %v3189_v21 = vmul.u32.u64.high %v1285_v28, %v1280_v16, %v3188_v20  ;;  %v1275_v24 = vsel %vm1271_vm15, %v1259_v58, %v1274_v8 }
 0x420   :  { %v1273_v23 = vsel %vm1269_vm13, %v1253_v14, %v1256_v40  ;;  %v1284_v25 = vsel %vm1270_vm14, %v1281_v10, %v1283_v19  ;;  %v1470_v36 = vshrl.u32 %v2812_v57, %v3181_v11  ;;  %v3202_v31 = vshrl.u32 %v2813_v4, %v3181_v11 }
 0x421   :  { %v1403_v27 = vshll.u32 %v3186_v17, 30  ;;  %v3195_v29 = vmul.u32.u64.low %v1285_v28, %v1284_v25  ;;  %v3196_v30 = vmul.u32.u64.high %v1285_v28, %v1284_v25, %v3195_v29  ;;  %v1561_v32 = vsub.s32 32, %v1560_v13 }
 0x422   :  { %v1276_v37 = vsel %vm1270_vm14, %v1273_v23, %v1275_v24  ;;  %v1295_v38 = vadd.s32 1, %v3189_v21  ;;  %v1546_v41 = vand.u32 2147483647, %v3118_v2  ;;  %v3209_v48 = vshrl.u32 %v1455_v56, 5 }
 0x423   :  { %v3204_v34 = vsub.s32 %v1400_v5, %v1403_v27  ;;  %v1469_v50 = vshll.u32 %v2808_v39, %v3173_v1  ;;  %v3215_v51 = vshll.u32 %v2812_v57, %v3173_v1  ;;  %v3217_v52 = vshrl.u32 %v1558_v3, 5 }
 0x424   :  { %v1396_v54 = vadd.s32 %v3143_v35, %v3149_v42  ;;  %vm1294_vm0 = vc.u32 %v3196_v30, %v3188_v20  ;;  %v1292_v56 = vmul.u32 %v1285_v28, %v1276_v37  ;;  %v1553_v61 = vand.u32 8388607, %v1546_v41 }
 0x425   :  { %v1406_v46 = vsub.s32 0, %v3204_v34  ;;  %v3224_v55 = vor.u32 %v1470_v36, %v1469_v50  ;;  %v1474_v26 = vor.u32 %v3202_v31, %v3215_v51  ;;  %v1296_v60 = vsel %vm1294_vm0, %v1295_v38, %v3189_v21 }
 0x426   :  { %v1564_v35 = vshrl.u32 %v2810_v49, %v1561_v32  ;;  %v1567_v42 = vshrl.u32 %v2811_v53, %v1561_v32  ;;  %v1297_v62 = vadd.s32 %v1296_v60, %v1292_v56  ;;  %v1570_v40 = vshrl.u32 %v2808_v39, %v1561_v32 }
 0x427   :  { %v2437_v22 = vmin.u32 %v1406_v46, %v3204_v34  ;;  %v1572_v58 = vshll.u32 %v2808_v39, %v1560_v13  ;;  %v1573_v45 = vshrl.u32 %v2812_v57, %v1561_v32  ;;  %v1566_v0 = vshll.u32 %v2810_v49, %v1560_v13 }
 0x428   :  { %v1569_v44 = vshll.u32 %v2811_v53, %v1560_v13  ;;  %v1576_v3 = vshrl.u32 %v2813_v4, %v1561_v32  ;;  %v1298_v5 = vadd.s32 536870912, %v1297_v62  ;;  %v1563_v28 = vshll.u32 %v2809_v47, %v1560_v13 }
 0x429   :  { %v1408_v63 = vclz %v2437_v22  ;;  %v1574_v6 = vor.u32 %v1573_v45, %v1572_v58  ;;  %v1575_v43 = vshll.u32 %v2812_v57, %v1560_v13  ;;  %v1562_v8 = vshrl.u32 %v2809_v47, %v1561_v32 }
 0x42a   :  { %v1568_v9 = vor.u32 %v1567_v42, %v1566_v0  ;;  %v1571_v10 = vor.u32 %v1570_v40, %v1569_v44  ;;  %v3243_v14 = vshrl.u32 %v1298_v5, 30  ;;  %v1565_v16 = vor.u32 %v1564_v35, %v1563_v28 }
 0x42b   :  { %v2438_v7 = vadd.s32 4294967294, %v1408_v63  ;;  %v1577_v19 = vor.u32 %v1576_v3, %v1575_v43  ;;  %vm1581_vm1 = vcmp.lt.s32.totalorder %v3217_v52, 4  ;;  %v1554_v21 = vor.u32 8388608, %v1553_v61 }
 0x42c   :  { %vm1578_vm3 = vcmp.lt.s32.totalorder %v3217_v52, 1  ;;  %v1587_v4 = vsel %vm1581_vm1, %v1574_v6, 920167782  ;;  %v1300_v57 = vshll.u32 %v3243_v14, 30  ;;  %vm1579_vm4 = vcmp.lt.s32.totalorder %v3217_v52, 2 }
 0x42d   :  { %vm2439_vm2 = vcmp.lt.s32.totalorder %v2438_v7, 0  ;;  %vm1580_vm5 = vcmp.lt.s32.totalorder %v3217_v52, 3  ;;  %v1583_v25 = vsel %vm1581_vm1, %v1571_v10, 2102212464  ;;  %v1590_v27 = vsel %vm1578_vm3, %v1568_v9, %v1571_v10 }
 0x42e   :  { %v1411_v23 = vsel %vm2439_vm2, 0, %v2438_v7  ;;  %v3256_v29 = vsub.s32 %v1297_v62, %v1300_v57  ;;  %v1586_v36 = vsel %vm1578_vm3, %v1565_v16, %v1568_v9  ;;  %v1588_v32 = vsel %vm1580_vm5, %v1571_v10, %v1587_v4 }
 0x42f   :  { %v1412_v13 = vsub.s32 32, %v1411_v23  ;;  %v1416_v24 = vsub.s32 4294967266, %v1411_v23  ;;  %v1591_v37 = vsel %vm1581_vm1, %v1577_v19, 1326507024  ;;  %v1413_v38 = vshll.u32 %v3204_v34, %v1411_v23 }
 0x430   :  { %v1592_v56 = vsel %vm1580_vm5, %v1574_v6, %v1591_v37  ;;  %v1303_v60 = vsub.s32 0, %v3256_v29  ;;  %v1582_v22 = vsel %vm1578_vm3, %v1562_v8, %v1565_v16  ;;  %v1584_v61 = vsel %vm1580_vm5, %v1568_v9, %v1583_v25 }
 0x431   :  { %v1414_v50 = vshrl.u32 %v1396_v54, %v1412_v13  ;;  %v1417_v46 = vadd.s32 127, %v1416_v24  ;;  %v1593_v35 = vsel %vm1579_vm4, %v1590_v27, %v1592_v56  ;;  %v1589_v40 = vsel %vm1579_vm4, %v1586_v36, %v1588_v32 }
 0x432   :  { %v1594_v58 = vshll.u32 %v1554_v21, 8  ;;  %vm1478_vm6 = vcmp.lt.s32.totalorder %v3209_v48, 4  ;;  %vm1342_vm7 = vcmp.lt.s32.totalorder %v3078_v15, 0  ;;  %v2433_v34 = vmin.u32 %v1303_v60, %v3256_v29 }
 0x433   :  { %v1415_v42 = vor.u32 %v1414_v50, %v1413_v38  ;;  %v1418_v62 = vshll.u32 %v1417_v46, 23  ;;  %vm3275_vm8 = vcmp.le.f32.partialorder %v1340_v18, 0.7853982  ;;  %v1585_v63 = vsel %vm1579_vm4, %v1582_v22, %v1584_v61 }
 0x434   :  { %v3281_v0 = vmul.u32.u64.low %v1594_v58, %v1593_v35  ;;  %v3282_v44 = vmul.u32.u64.high %v1594_v58, %v1593_v35, %v3281_v0  ;;  %v1305_v3 = vclz %v2433_v34  ;;  %v1443_v6 = vand.u32 2147483647, %v3113_v59 }
 0x435   :  { %v1419_v45 = vor.u32 4788187, %v1418_v62  ;;  %v3284_v5 = vmul.u32.u64.low %v1594_v58, %v1589_v40  ;;  %v3285_v28 = vmul.u32.u64.high %v1594_v58, %v1589_v40, %v3284_v5  ;;  %v1484_v18 = vsel %vm1478_vm6, %v3224_v55, 920167782 }
 0x436   :  { %v1488_v52 = vsel %vm1478_vm6, %v1474_v26, 1326507024  ;;  %v1422_v7 = vcvt.s32.f32 %v1415_v42  ;;  %v1426_v8 = vsub.s32 4, %v3186_v17  ;;  %v1293_v9 = vadd.s32 %v3188_v20, %v3196_v30 }
 0x437   :  { %v1420_v43 = vand.u32 2147483647, %v1419_v45  ;;  %v2434_v10 = vadd.s32 4294967294, %v1305_v3  ;;  %v1461_v16 = vshrl.u32 %v2810_v49, %v3181_v11  ;;  %v1601_v21 = vmul.u32 %v1594_v58, %v1585_v63 }
 0x438   :  { %vm1603_vm9 = vc.u32 %v3282_v44, %v3284_v5  ;;  %v1460_v31 = vshll.u32 %v2809_v47, %v3173_v1  ;;  %v1604_v51 = vadd.s32 1, %v3285_v28  ;;  %v1450_v26 = vand.u32 8388607, %v1443_v6 }
 0x439   :  { %v1423_v19 = vmul.f32 %v1422_v7, %v1420_v43  ;;  %vm2435_vm10 = vcmp.lt.s32.totalorder %v2434_v10, 0  ;;  %v1463_v20 = vshll.u32 %v2810_v49, %v3173_v1  ;;  %v1464_v57 = vshrl.u32 %v2811_v53, %v3181_v11 }
 0x43a   :  { %v1308_v4 = vsel %vm2435_vm10, 0, %v2434_v10  ;;  %v1462_v23 = vor.u32 %v1461_v16, %v1460_v31  ;;  %v1605_v25 = vsel %vm1603_vm9, %v1604_v51, %v3285_v28  ;;  %v1466_v27 = vshll.u32 %v2811_v53, %v3173_v1 }
 0x43b   :  { %v1424_v30 = vxor.u32 2147483648, %v1423_v19  ;;  %v1309_v13 = vsub.s32 32, %v1308_v4  ;;  %v1313_v24 = vsub.s32 4294967266, %v1308_v4  ;;  %v1606_v32 = vadd.s32 %v1605_v25, %v1601_v21 }
 0x43c   :  { %v1465_v37 = vor.u32 %v1464_v57, %v1463_v20  ;;  %v1467_v49 = vshrl.u32 %v2808_v39, %v3181_v11  ;;  %v1310_v50 = vshll.u32 %v3256_v29, %v1308_v4  ;;  %v1451_v22 = vor.u32 8388608, %v1450_v26  ;;  %v1704_v26 = vld [vmem:[#allocation11 + $0x1b8] sm:$0xff] }
 0x43d   :  { %v1425_v36 = vsel %vm1342_vm7, %v1424_v30, %v1423_v19  ;;  %v1311_v46 = vshrl.u32 %v1293_v9, %v1309_v13  ;;  %v1314_v56 = vadd.s32 127, %v1313_v24  ;;  %v1607_v60 = vadd.s32 536870912, %v1606_v32 }
 0x43e   :  { %v1428_v38 = vsel %vm3275_vm8, %v3078_v15, %v1425_v36  ;;  %v1468_v53 = vor.u32 %v1467_v49, %v1466_v27  ;;  %vm1475_vm11 = vcmp.lt.s32.totalorder %v3209_v48, 1  ;;  %v1427_v39 = vsel %vm1342_vm7, %v1426_v8, %v3186_v17 }
 0x43f   :  { %2646 = vcosq.f32 %v1428_v38  ;;  %v1312_v1 = vor.u32 %v1311_v46, %v1310_v50  ;;  %v1315_v61 = vshll.u32 %v1314_v56, 23  ;;  %v3328_v35 = vshrl.u32 %v1607_v60, 30 }
 0x440   :  { %2648 = vsinq.f32 %v1428_v38  ;;  %vm1477_vm12 = vcmp.lt.s32.totalorder %v3209_v48, 3  ;;  %v1483_v29 = vsel %vm1475_vm11, %v1462_v23, %v1465_v37  ;;  %v1459_v62 = vshrl.u32 %v2809_v47, %v3181_v11 }
 0x441   :  { %v1316_v42 = vor.u32 4788187, %v1315_v61  ;;  %vm1476_vm13 = vcmp.lt.s32.totalorder %v3209_v48, 2  ;;  %v1485_v40 = vsel %vm1477_vm12, %v1468_v53, %v1484_v18  ;;  %v1319_v58 = vcvt.s32.f32 %v1312_v1 }
 0x442   :  { %v1609_v34 = vshll.u32 %v3328_v35, 30  ;;  %v1480_v17 = vsel %vm1478_vm6, %v1468_v53, 2102212464  ;;  %v1486_v45 = vsel %vm1476_vm13, %v1483_v29, %v1485_v40  ;;  %v1487_v0 = vsel %vm1475_vm11, %v1465_v37, %v1468_v53 }
 0x443   :  { %v1317_v63 = vand.u32 2147483647, %v1316_v42  ;;  %v1489_v47 = vsel %vm1477_vm12, %v3224_v55, %v1488_v52  ;;  %v1491_v11 = vshll.u32 %v1451_v22, 8  ;;  %v1479_v28 = vsel %vm1475_vm11, %v1459_v62, %v1462_v23 }
 0x444   :  { %v1610_v3 = vsub.s32 %v1606_v32, %v1609_v34  ;;  %v1490_v18 = vsel %vm1476_vm13, %v1487_v0, %v1489_v47  ;;  %v1481_v7 = vsel %vm1477_vm12, %v1465_v37, %v1480_v17  ;;  %v1429_v10 = vsel %vm3275_vm8, 0, %v1427_v39 }
 0x445   :  { %v1320_v43 = vmul.f32 %v1319_v58, %v1317_v63  ;;  %v3354_v8 = vmul.u32.u64.low %v1491_v11, %v1490_v18  ;;  %v3355_v9 = vmul.u32.u64.high %v1491_v11, %v1490_v18, %v3354_v8  ;;  %vm1239_vm14 = vcmp.lt.s32.totalorder %v3075_v12, 0 }
 0x446   :  { %v1612_v16 = vsub.s32 0, %v1610_v3  ;;  %v3359_v55 = vmul.u32.u64.low %v1491_v11, %v1486_v45  ;;  %v3360_v52 = vmul.u32.u64.high %v1491_v11, %v1486_v45, %v3359_v55  ;;  %v1482_v31 = vsel %vm1476_vm13, %v1479_v28, %v1481_v7 }
 0x447   :  { %v1321_v19 = vxor.u32 2147483648, %v1320_v43  ;;  %v1433_v51 = vand.u32 3, %v1429_v10  ;;  %vm3368_vm15 = vcmp.le.f32.partialorder %v1237_v33, 0.7853982  ;;  %v1323_v23 = vsub.s32 4, %v3243_v14  ;;  %v1711_v10 = vld [vmem:[#allocation11 + $0x1f0] sm:$0xff] }
 0x448   :  { %v2445_v21 = vmin.u32 %v1612_v16, %v1610_v3  ;;  %vm1500_vm0 = vc.u32 %v3355_v9, %v3359_v55  ;;  %v1501_v48 = vadd.s32 1, %v3360_v52  ;;  %v1498_v33 = vmul.u32 %v1491_v11, %v1482_v31 }
 0x449   :  { %v1322_v54 = vsel %vm1239_vm14, %v1321_v19, %v1320_v43  ;;  %vm1432_vm1 = vweird.f32 %v3078_v15  ;;  %vm1438_vm2 = vcmp.eq.s32.totalorder %v1433_v51, 2  ;;  %vm1434_vm3 = vcmp.lt.s32.totalorder %v1433_v51, 2  ;;  %v1708_v19 = vld [vmem:[#allocation11 + $0x1d8] sm:$0xff] }
 0x44a   :  { %v1325_v20 = vsel %vm3368_vm15, %v3075_v12, %v1322_v54  ;;  %v1614_v30 = vclz %v2445_v21  ;;  %v1502_v25 = vsel %vm1500_vm0, %v1501_v48, %v3360_v52  ;;  %vm1435_vm4 = vcmp.eq.s32.totalorder %v1433_v51, 0  ;;  %v1655_v21 = vld [vmem:[#allocation11 + $0x30] sm:$0xff] }
 0x44b   :  { %2650 = vcosq.f32 %v1325_v20  ;;  %v1503_v36 = vadd.s32 %v1502_v25, %v1498_v33  ;;  %v1324_v49 = vsel %vm1239_vm14, %v1323_v23, %v3243_v14  ;;  %v1602_v56 = vadd.s32 %v3284_v5, %v3282_v44  ;;  %v1700_v23 = vld [vmem:[#allocation11 + $0x198] sm:$0xff]  ;;  %v1699_v33 = vld [vmem:[#allocation11 + $0x190] sm:$0xff] }
 0x44c   :  { %v2647_v4 = vpop.eup %2646  ;;  %2652 = vsinq.f32 %v1325_v20  ;;  %v2446_v24 = vadd.s32 4294967294, %v1614_v30  ;;  %v1326_v14 = vsel %vm3368_vm15, 0, %v1324_v49  ;;  %vm1329_vm9 = vweird.f32 %v3075_v12  ;;  %v1707_v12 = vld [vmem:[#allocation11 + $0x1d0] sm:$0xff]  ;;  %v1696_v25 = vld [vmem:[#allocation11 + $0x178] sm:$0xff] }
 0x44d   :  { %v2649_v57 = vpop.eup %2648  ;;  %v1439_v13 = vxor.u32 2147483648, %v2647_v4  ;;  %v1504_v50 = vadd.s32 536870912, %v1503_v36  ;;  %v1330_v44 = vand.u32 3, %v1326_v14  ;;  %vm1548_vm10 = vcmp.lt.s32.totalorder %v3118_v2, 0  ;;  %v1703_v20 = vld [vmem:[#allocation11 + $0x1b0] sm:$0xff] }
 0x44e   :  { %v1436_v27 = vxor.u32 2147483648, %v2649_v57  ;;  %vm2447_vm5 = vcmp.lt.s32.totalorder %v2446_v24, 0  ;;  %vm3401_vm11 = vcmp.le.f32.partialorder %v1546_v41, 0.7853982  ;;  %v1632_v54 = vsub.s32 4, %v3328_v35  ;;  %v1679_v14 = vld [vmem:[#allocation11 + $0xf0] sm:$0xff] }
 0x44f   :  { %v1440_v32 = vsel %vm1438_vm2, %v1439_v13, %v2649_v57  ;;  %v1617_v38 = vsel %vm2447_vm5, 0, %v2446_v24  ;;  %v3390_v1 = vshrl.u32 %v1504_v50, 30  ;;  %vm1335_vm6 = vcmp.eq.s32.totalorder %v1330_v44, 2 }
 0x450   :  { %v1437_v37 = vsel %vm1435_vm4, %v2647_v4, %v1436_v27  ;;  %v1618_v60 = vsub.s32 32, %v1617_v38  ;;  %v1622_v22 = vsub.s32 4294967266, %v1617_v38  ;;  %v1619_v61 = vshll.u32 %v1610_v3, %v1617_v38  ;;  %v1695_v27 = vld [vmem:[#allocation11 + $0x170] sm:$0xff]  ;;  %v1688_v38 = vld [vmem:[#allocation11 + $0x138] sm:$0xff] }
 0x451   :  { %v1441_v46 = vsel %vm1434_vm3, %v1437_v37, %v1440_v32  ;;  %v1506_v42 = vshll.u32 %v3390_v1, 30  ;;  %vm1332_vm7 = vcmp.eq.s32.totalorder %v1330_v44, 0  ;;  %vm1331_vm8 = vcmp.lt.s32.totalorder %v1330_v44, 2 }
 0x452   :  { %v1442_v53 = vsel %vm1432_vm1, nan, %v1441_v46  ;;  %v1620_v39 = vshrl.u32 %v1602_v56, %v1618_v60  ;;  %v1623_v29 = vadd.s32 127, %v1622_v22  ;;  %v1499_v30 = vadd.s32 %v3359_v55, %v3355_v9  ;;  %v1692_v9 = vld [vmem:[#allocation11 + $0x158] sm:$0xff]  ;;  %v1691_v55 = vld [vmem:[#allocation11 + $0x150] sm:$0xff] }
 0x453   :  { %1969 = vmatprep.mubr.f32.mxu1 %v1442_v53  ;;  %v1507_v58 = vsub.s32 %v1503_v36, %v1506_v42  ;;  %v1633_v36 = vsel %vm1548_vm10, %v1632_v54, %v3328_v35  ;;  %v1687_v46 = vld [vmem:[#allocation11 + $0x130] sm:$0xff]  ;;  %v1684_v22 = vld [vmem:[#allocation11 + $0x118] sm:$0xff]  ;;  %vm1445_vm13 = vcmp.lt.s32.totalorder %v3113_v59, 0  ;;  %vm3422_vm15 = vcmp.le.f32.partialorder %v1443_v6, 0.7853982 }
 0x454   :  { %v1621_v62 = vor.u32 %v1620_v39, %v1619_v61  ;;  %v1624_v40 = vshll.u32 %v1623_v29, 23  ;;  %v1635_v50 = vsel %vm3401_vm11, 0, %v1633_v36  ;;  %v1683_v35 = vld [vmem:[#allocation11 + $0x110] sm:$0xff]  ;;  %v1680_v39 = vld [vmem:[#allocation11 + $0xf8] sm:$0xff]  ;;  %vm1638_vm2 = vweird.f32 %v3118_v2 }
 0x455   :  { %v1509_v34 = vsub.s32 0, %v1507_v58 }
 0x456   :  { %v1625_v5 = vor.u32 4788187, %v1624_v40  ;;  %v1628_v45 = vcvt.s32.f32 %v1621_v62  ;;  %v1676_v40 = vld [vmem:[#allocation11 + $0xd8] sm:$0xff] }
 0x457   :  { %v2441_v47 = vmin.u32 %v1509_v34, %v1507_v58  ;;  %v1812_v34 = vld [vmem:[#allocation11 + $0x518] sm:$0xff] }
 0x458   :  { %v2651_v17 = vpop.eup %2650  ;;  %v1626_v15 = vand.u32 2147483647, %v1625_v5  ;;  %v1675_v5 = vld [vmem:[#allocation11 + $0xd0] sm:$0xff] }
 0x459   :  { %v2653_v63 = vpop.eup %2652  ;;  %v1336_v0 = vxor.u32 2147483648, %v2651_v17  ;;  %v1511_v18 = vclz %v2441_v47  ;;  %v1671_v47 = vld [vmem:[#allocation11 + $0xb0] sm:$0xff] }
 0x45a   :  { %v1333_v11 = vxor.u32 2147483648, %v2653_v63  ;;  %v1629_v3 = vmul.f32 %v1628_v45, %v1626_v15 }
 0x45b   :  { %v1337_v28 = vsel %vm1335_vm6, %v1336_v0, %v2653_v63  ;;  %v2442_v16 = vadd.s32 4294967294, %v1511_v18  ;;  %v1672_v63 = vld [vmem:[#allocation11 + $0xb8] sm:$0xff]  ;;  %v1667_v18 = vld [vmem:[#allocation11 + $0x90] sm:$0xff]  ;;  %vm1535_vm6 = vweird.f32 %v3113_v59 }
 0x45c   :  { %v1334_v43 = vsel %vm1332_vm7, %v2651_v17, %v1333_v11  ;;  %v1630_v7 = vxor.u32 2147483648, %v1629_v3  ;;  %v1529_v11 = vsub.s32 4, %v3390_v1  ;;  %vm2404_vm7 = vcmask 80896  }
 0x45d   :  { %v1338_v8 = vsel %vm1331_vm8, %v1334_v43, %v1337_v28  ;;  %vm2443_vm12 = vcmp.lt.s32.totalorder %v2442_v16, 0  ;;  %v1664_v43 = vld [vmem:[#allocation11 + $0x78] sm:$0xff] }
 0x45e   :  { %v3397_v52 = vsel %vm1329_vm9, nan, %v1338_v8  ;;  %v1631_v31 = vsel %vm1548_vm10, %v1630_v7, %v1629_v3  ;;  %v1514_v41 = vsel %vm2443_vm12, 0, %v2442_v16  ;;  %v1668_v3 = vld [vmem:[#allocation11 + $0x98] sm:$0xff]  ;;  %v1663_v7 = vld [vmem:[#allocation11 + $0x70] sm:$0xff]  ;;  %v1530_v8 = vsel %vm1445_vm13, %v1529_v11, %v3390_v1 }
 0x45f   :  { %1970 = vmatmul.mubr.f32.vlgmr.msra.gmra.mxu1 %v3397_v52  ;;  %v1634_v51 = vsel %vm3401_vm11, %v3118_v2, %v1631_v31  ;;  %v1515_v48 = vsub.s32 32, %v1514_v41  ;;  %v1519_v4 = vsub.s32 4294967266, %v1514_v41  ;;  %v1516_v57 = vshll.u32 %v1507_v58, %v1514_v41  ;;  %v1660_v2 = vld [vmem:[#allocation11 + $0x58] sm:$0xff]  ;;  %v1775_v1 = vld [vmem:[#allocation11 + $0x3f0] sm:$0xff] }
 0x460   :  { %2048 = vmatpush1.msra.mxu1 %v1711_v10  ;;  %2111 = vmatprep.mubr.f32.mxu1 %v1442_v53  ;;  %2654 = vcosq.f32 %v1634_v51  ;;  %v1639_v53 = vand.u32 3, %v1635_v50  ;;  %v1659_v10 = vld [vmem:[#allocation11 + $0x50] sm:$0xff]  ;;  %v1656_v16 = vld [vmem:[#allocation11 + $0x38] sm:$0xff] }
 0x461   :  { %2049 = vmatprep.subr.mxu1 %v1708_v19  ;;  %2656 = vsinq.f32 %v1634_v51  ;;  %v1517_v13 = vshrl.u32 %v1499_v30, %v1515_v48  ;;  %v1520_v24 = vadd.s32 127, %v1519_v4  ;;  %v1532_v19 = vsel %vm3422_vm15, 0, %v1530_v8  ;;  %v1652_v31 = vld [vmem:[#allocation11 + $0x18] sm:$0xff]  ;;  %v1771_v48 = vld [vmem:[#allocation11 + $0x3d0] sm:$0xff] }
 0x462   :  { %2050 = vmatpush1.msra.mxu1 %v1707_v12  ;;  %vm1644_vm14 = vcmp.eq.s32.totalorder %v1639_v53, 2  ;;  %vm1641_vm0 = vcmp.eq.s32.totalorder %v1639_v53, 0  ;;  %vm1640_vm1 = vcmp.lt.s32.totalorder %v1639_v53, 2  ;;  %v1651_v12 = vld [vmem:[#allocation11 + $0x10] sm:$0xff]  ;;  %v1536_v51 = vand.u32 3, %v1532_v19  ;;  %v1772_v41 = vld [vmem:[#allocation11 + $0x3d8] sm:$0xff] }
 0x463   :  { %2051 = vmatprep.subr.mxu1 %v1704_v26  ;;  %v1518_v32 = vor.u32 %v1517_v13, %v1516_v57  ;;  %v1521_v37 = vshll.u32 %v1520_v24, 23  ;;  %v1776_v26 = vld [vmem:[#allocation11 + $0x3f8] sm:$0xff]  ;;  %v1767_v57 = vld [vmem:[#allocation11 + $0x3b0] sm:$0xff] }
 0x464   :  { %2052 = vmatpush1.msra.mxu1 %v1703_v20  ;;  %vm1541_vm3 = vcmp.eq.s32.totalorder %v1536_v51, 2  ;;  %vm1538_vm4 = vcmp.eq.s32.totalorder %v1536_v51, 0  ;;  %vm1537_vm5 = vcmp.lt.s32.totalorder %v1536_v51, 2  ;;  %v1764_v24 = vld [vmem:[#allocation11 + $0x398] sm:$0xff]  ;;  %v1831_v50 = vld [vmem:[#allocation11 + $0x5b0] sm:$0xff] }
 0x465   :  { %2053 = vmatprep.subr.mxu1 %v1700_v23  ;;  %v1522_v49 = vor.u32 4788187, %v1521_v37  ;;  %v1525_v60 = vcvt.s32.f32 %v1518_v32  ;;  %v1768_v23 = vld [vmem:[#allocation11 + $0x3b8] sm:$0xff]  ;;  %v1763_v37 = vld [vmem:[#allocation11 + $0x390] sm:$0xff] }
 0x466   :  { %2054 = vmatpush1.msra.mxu1 %v1699_v33  ;;  %v1836_v32 = vld [vmem:[#allocation11 + $0x5d8] sm:$0xff]  ;;  %v1751_v53 = vld [vmem:[#allocation11 + $0x330] sm:$0xff] }
 0x467   :  { %2055 = vmatprep.subr.mxu1 %v1696_v25  ;;  %v1523_v56 = vand.u32 2147483647, %v1522_v49  ;;  %v1832_v49 = vld [vmem:[#allocation11 + $0x5b8] sm:$0xff]  ;;  %v1799_v8 = vld [vmem:[#allocation11 + $0x4b0] sm:$0xff] }
 0x468   :  { %2056 = vmatpush1.msra.mxu1 %v1695_v27  ;;  %v1839_v27 = vld [vmem:[#allocation11 + $0x5f0] sm:$0xff]  ;;  %v1804_v11 = vld [vmem:[#allocation11 + $0x4d8] sm:$0xff] }
 0x469   :  { %2057 = vmatprep.subr.mxu1 %v1692_v9  ;;  %v1526_v61 = vmul.f32 %v1525_v60, %v1523_v56  ;;  %v1835_v9 = vld [vmem:[#allocation11 + $0x5d0] sm:$0xff] }
 0x46a   :  { %2058 = vmatpush1.msra.mxu1 %v1691_v55  ;;  %v1760_v55 = vld [vmem:[#allocation11 + $0x378] sm:$0xff]  ;;  %v1755_v56 = vld [vmem:[#allocation11 + $0x350] sm:$0xff] }
 0x46b   :  { %2059 = vmatprep.subr.mxu1 %v1688_v38  ;;  %v1527_v42 = vxor.u32 2147483648, %v1526_v61  ;;  %v1759_v38 = vld [vmem:[#allocation11 + $0x370] sm:$0xff] }
 0x46c   :  { %2060 = vmatpush1.msra.mxu1 %v1687_v46  ;;  %v1828_v46 = vld [vmem:[#allocation11 + $0x598] sm:$0xff]  ;;  %v1827_v60 = vld [vmem:[#allocation11 + $0x590] sm:$0xff] }
 0x46d   :  { %v2655_v29 = vpop.eup %2654  ;;  %2061 = vmatprep.subr.mxu1 %v1684_v22  ;;  %v1528_v17 = vsel %vm1445_vm13, %v1527_v42, %v1526_v61  ;;  %v1752_v22 = vld [vmem:[#allocation11 + $0x338] sm:$0xff]  ;;  %v1823_v61 = vld [vmem:[#allocation11 + $0x570] sm:$0xff] }
 0x46e   :  { %v2657_v62 = vpop.eup %2656  ;;  %2062 = vmatpush1.msra.mxu1 %v1683_v35  ;;  %v1645_v58 = vxor.u32 2147483648, %v2655_v29  ;;  %v1531_v45 = vsel %vm3422_vm15, %v3113_v59, %v1528_v17  ;;  %v1756_v59 = vld [vmem:[#allocation11 + $0x358] sm:$0xff]  ;;  %v1819_v42 = vld [vmem:[#allocation11 + $0x550] sm:$0xff] }
 0x46f   :  { %2063 = vmatprep.subr.mxu1 %v1680_v39  ;;  %v1642_v44 = vxor.u32 2147483648, %v2657_v62  ;;  %2658 = vcosq.f32 %v1531_v45  ;;  %v1824_v35 = vld [vmem:[#allocation11 + $0x578] sm:$0xff]  ;;  %v1739_v17 = vld [vmem:[#allocation11 + $0x2d0] sm:$0xff] }
 0x470   :  { %2064 = vmatpush1.msra.mxu1 %v1679_v14  ;;  %v1646_v15 = vsel %vm1644_vm14, %v1645_v58, %v2657_v62  ;;  %2660 = vsinq.f32 %v1531_v45  ;;  %v1748_v39 = vld [vmem:[#allocation11 + $0x318] sm:$0xff]  ;;  %v1747_v14 = vld [vmem:[#allocation11 + $0x310] sm:$0xff] }
 0x471   :  { %2065 = vmatprep.subr.mxu1 %v1676_v40  ;;  %v1643_v0 = vsel %vm1641_vm0, %v2655_v29, %v1642_v44  ;;  %v1820_v29 = vld [vmem:[#allocation11 + $0x558] sm:$0xff]  ;;  %v1743_v58 = vld [vmem:[#allocation11 + $0x2f0] sm:$0xff] }
 0x472   :  { %v1647_v6 = vsel %vm1640_vm1, %v1643_v0, %v1646_v15  ;;  %2066 = vmatpush1.msra.mxu1 %v1675_v5  ;;  %v1744_v62 = vld [vmem:[#allocation11 + $0x2f8] sm:$0xff]  ;;  %v1815_v44 = vld [vmem:[#allocation11 + $0x530] sm:$0xff] }
 0x473   :  { %v1648_v28 = vsel %vm1638_vm2, nan, %v1647_v6  ;;  %2067 = vmatprep.subr.mxu1 %v1672_v63  ;;  %v1816_v40 = vld [vmem:[#allocation11 + $0x538] sm:$0xff]  ;;  %v1811_v15 = vld [vmem:[#allocation11 + $0x510] sm:$0xff] }
 0x474   :  { %2040 = vmatprep.mubr.f32.mxu0 %v1648_v28  ;;  %2068 = vmatpush1.msra.mxu1 %v1671_v47  ;;  %v1740_v5 = vld [vmem:[#allocation11 + $0x2d8] sm:$0xff]  ;;  %v1735_v0 = vld [vmem:[#allocation11 + $0x2b0] sm:$0xff] }
 0x475   :  { %2069 = vmatprep.subr.mxu1 %v1668_v3  ;;  %v1736_v45 = vld [vmem:[#allocation11 + $0x2b8] sm:$0xff]  ;;  %v1807_v47 = vld [vmem:[#allocation11 + $0x4f0] sm:$0xff] }
 0x476   :  { %2070 = vmatpush1.msra.mxu1 %v1667_v18  ;;  %v1808_v63 = vld [vmem:[#allocation11 + $0x4f8] sm:$0xff]  ;;  %v1731_v3 = vld [vmem:[#allocation11 + $0x290] sm:$0xff] }
 0x477   :  { %2071 = vmatprep.subr.mxu1 %v1664_v43  ;;  %v1732_v6 = vld [vmem:[#allocation11 + $0x298] sm:$0xff]  ;;  %v1795_v19 = vld [vmem:[#allocation11 + $0x490] sm:$0xff] }
 0x478   :  { %2072 = vmatpush1.msra.mxu1 %v1663_v7  ;;  %v1728_v18 = vld [vmem:[#allocation11 + $0x278] sm:$0xff]  ;;  %v1727_v7 = vld [vmem:[#allocation11 + $0x270] sm:$0xff] }
 0x479   :  { %2073 = vmatprep.subr.mxu1 %v1660_v2  ;;  %v1800_v43 = vld [vmem:[#allocation11 + $0x4b8] sm:$0xff]  ;;  %v1791_v51 = vld [vmem:[#allocation11 + $0x470] sm:$0xff] }
 0x47a   :  { %2074 = vmatpush1.msra.mxu1 %v1659_v10  ;;  %v1724_v2 = vld [vmem:[#allocation11 + $0x258] sm:$0xff] }
 0x47b   :  { %2075 = vmatprep.subr.mxu1 %v1656_v16  ;;  %v1796_v10 = vld [vmem:[#allocation11 + $0x498] sm:$0xff]  ;;  %v1723_v16 = vld [vmem:[#allocation11 + $0x250] sm:$0xff] }
 0x47c   :  { %2076 = vmatpush1.msra.mxu1 %v1655_v21  ;;  %v2659_v54 = vpop.eup %2658  ;;  %v1720_v21 = vld [vmem:[#allocation11 + $0x238] sm:$0xff] }
 0x47d   :  { %2077 = vmatprep.subr.mxu1 %v1652_v31  ;;  %v2661_v20 = vpop.eup %2660  ;;  %v1542_v30 = vxor.u32 2147483648, %v2659_v54  ;;  %v1792_v31 = vld [vmem:[#allocation11 + $0x478] sm:$0xff] }
 0x47e   :  { %2078 = vmatpush1.msra.mxu1 %v1651_v12  ;;  %v1539_v4 = vxor.u32 2147483648, %v2661_v20  ;;  %v1719_v12 = vld [vmem:[#allocation11 + $0x230] sm:$0xff] }
 0x47f   :  { %2079 = vmatprep.subr.mxu1 %v1776_v26  ;;  %v1543_v33 = vsel %vm1541_vm3, %v1542_v30, %v2661_v20  ;;  %v1716_v26 = vld [vmem:[#allocation11 + $0x218] sm:$0xff] }
 0x480   :  { %2080 = vmatpush2.msra.mxu1 %v1775_v1  ;;  %v1540_v13 = vsel %vm1538_vm4, %v2659_v54, %v1539_v4  ;;  %v1788_v1 = vld [vmem:[#allocation11 + $0x458] sm:$0xff]  ;;  %v1715_v54 = vld [vmem:[#allocation11 + $0x210] sm:$0xff] }
 0x481   :  { %2081 = vmatprep.subr.mxu1 %v1772_v41  ;;  %v1544_v25 = vsel %vm1537_vm5, %v1540_v13, %v1543_v33  ;;  %v1787_v41 = vld [vmem:[#allocation11 + $0x450] sm:$0xff]  ;;  %v1784_v20 = vld [vmem:[#allocation11 + $0x438] sm:$0xff] }
 0x482   :  { %2082 = vmatpush2.msra.mxu1 %v1771_v48  ;;  %v3439_v36 = vsel %vm1535_vm6, nan, %v1544_v25  ;;  %v2224_v30 = vld [vmem:[#allocation12 + $0xf8] sm:$0xff]  ;;  %v1783_v48 = vld [vmem:[#allocation11 + $0x430] sm:$0xff]  ;;  %v2222_v25 = vld [vmem:[#allocation12 + $0xe8] sm:$0xff] }
 0x483   :  { %2083 = vmatprep.subr.mxu1 %v1768_v23  ;;  %2041 = vmatmul.mubr.f32.vlgmr.msra.gmra.mxu0 %v3439_v36  ;;  %v2208_v4 = vld [vmem:[#allocation12 + $0x78] sm:$0xff]  ;;  %v2223_v33 = vld [vmem:[#allocation12 + $0xf0] sm:$0xff] }
 0x484   :  { %2084 = vmatpush2.msra.mxu1 %v1767_v57  ;;  %2119 = vmatpush1.msra.mxu0 %v1839_v27  ;;  %v1780_v23 = vld [vmem:[#allocation11 + $0x418] sm:$0xff]  ;;  %v1779_v57 = vld [vmem:[#allocation11 + $0x410] sm:$0xff] }
 0x485   :  { %2085 = vmatprep.subr.mxu1 %v1764_v24  ;;  %2182 = vmatprep.mubr.f32.mxu0 %v1648_v28  ;;  %v1803_v28 = vld [vmem:[#allocation11 + $0x4d0] sm:$0xff]  ;;  %v1904_v24 = vld [vmem:[#allocation11 + $0x7f8] sm:$0xff] }
 0x486   :  { %2120 = vmatprep.subr.mxu0 %v1836_v32  ;;  %2086 = vmatpush2.msra.mxu1 %v1763_v37  ;;  %v2207_v13 = vld [vmem:[#allocation12 + $0x70] sm:$0xff]  ;;  %v2206_v32 = vld [vmem:[#allocation12 + $0x68] sm:$0xff]  ;;  %v1900_v37 = vld [vmem:[#allocation11 + $0x7d8] sm:$0xff] }
 0x487   :  { %2121 = vmatpush1.msra.mxu0 %v1835_v9  ;;  %2087 = vmatprep.subr.mxu1 %v1760_v55  ;;  %v1903_v27 = vld [vmem:[#allocation11 + $0x7f0] sm:$0xff]  ;;  %v2221_v9 = vld [vmem:[#allocation12 + $0xe0] sm:$0xff] }
 0x488   :  { %2122 = vmatprep.subr.mxu0 %v1832_v49  ;;  %2088 = vmatpush2.msra.mxu1 %v1759_v38  ;;  %v1899_v55 = vld [vmem:[#allocation11 + $0x7d0] sm:$0xff]  ;;  %v1896_v49 = vld [vmem:[#allocation11 + $0x7b8] sm:$0xff] }
 0x489   :  { %2123 = vmatpush1.msra.mxu0 %v1831_v50  ;;  %2089 = vmatprep.subr.mxu1 %v1756_v59  ;;  %v2220_v38 = vld [vmem:[#allocation12 + $0xd8] sm:$0xff]  ;;  %v1895_v50 = vld [vmem:[#allocation11 + $0x7b0] sm:$0xff] }
 0x48a   :  { %2124 = vmatprep.subr.mxu0 %v1828_v46  ;;  %2090 = vmatpush2.msra.mxu1 %v1755_v56  ;;  %v2204_v59 = vld [vmem:[#allocation12 + $0x58] sm:$0xff]  ;;  %v2219_v56 = vld [vmem:[#allocation12 + $0xd0] sm:$0xff] }
 0x48b   :  { %2125 = vmatpush1.msra.mxu0 %v1827_v60  ;;  %2091 = vmatprep.subr.mxu1 %v1752_v22  ;;  %v1892_v46 = vld [vmem:[#allocation11 + $0x798] sm:$0xff]  ;;  %v1891_v60 = vld [vmem:[#allocation11 + $0x790] sm:$0xff] }
 0x48c   :  { %2126 = vmatprep.subr.mxu0 %v1824_v35  ;;  %2092 = vmatpush2.msra.mxu1 %v1751_v53  ;;  %v2203_v22 = vld [vmem:[#allocation12 + $0x50] sm:$0xff]  ;;  %v1888_v35 = vld [vmem:[#allocation11 + $0x778] sm:$0xff]  ;;  %v2218_v53 = vld [vmem:[#allocation12 + $0xc8] sm:$0xff] }
 0x48d   :  { %2127 = vmatpush1.msra.mxu0 %v1823_v61  ;;  %2093 = vmatprep.subr.mxu1 %v1748_v39  ;;  %v1887_v61 = vld [vmem:[#allocation11 + $0x770] sm:$0xff]  ;;  %v2202_v39 = vld [vmem:[#allocation12 + $0x48] sm:$0xff] }
 0x48e   :  { %2128 = vmatprep.subr.mxu0 %v1820_v29  ;;  %2094 = vmatpush2.msra.mxu1 %v1747_v14  ;;  %v1884_v29 = vld [vmem:[#allocation11 + $0x758] sm:$0xff]  ;;  %v2217_v14 = vld [vmem:[#allocation12 + $0xc0] sm:$0xff] }
 0x48f   :  { %2129 = vmatpush1.msra.mxu0 %v1819_v42  ;;  %2095 = vmatprep.subr.mxu1 %v1744_v62  ;;  %v1883_v42 = vld [vmem:[#allocation11 + $0x750] sm:$0xff]  ;;  %v2201_v62 = vld [vmem:[#allocation12 + $0x40] sm:$0xff] }
 0x490   :  { %2130 = vmatprep.subr.mxu0 %v1816_v40  ;;  %2096 = vmatpush2.msra.mxu1 %v1743_v58  ;;  %v1880_v40 = vld [vmem:[#allocation11 + $0x738] sm:$0xff] }
 0x491   :  { %2131 = vmatpush1.msra.mxu0 %v1815_v44  ;;  %2097 = vmatprep.subr.mxu1 %v1740_v5  ;;  %v2216_v58 = vld [vmem:[#allocation12 + $0xb8] sm:$0xff]  ;;  %v1879_v44 = vld [vmem:[#allocation11 + $0x730] sm:$0xff] }
 0x492   :  { %2132 = vmatprep.subr.mxu0 %v1812_v34  ;;  %2098 = vmatpush2.msra.mxu1 %v1739_v17  ;;  %v2200_v5 = vld [vmem:[#allocation12 + $0x38] sm:$0xff]  ;;  %v2215_v17 = vld [vmem:[#allocation12 + $0xb0] sm:$0xff] }
 0x493   :  { %2133 = vmatpush1.msra.mxu0 %v1811_v15  ;;  %2099 = vmatprep.subr.mxu1 %v1736_v45  ;;  %v1876_v34 = vld [vmem:[#allocation11 + $0x718] sm:$0xff]  ;;  %v1875_v15 = vld [vmem:[#allocation11 + $0x710] sm:$0xff] }
 0x494   :  { %2134 = vmatprep.subr.mxu0 %v1808_v63  ;;  %2100 = vmatpush2.msra.mxu1 %v1735_v0  ;;  %v2199_v45 = vld [vmem:[#allocation12 + $0x30] sm:$0xff]  ;;  %v1872_v63 = vld [vmem:[#allocation11 + $0x6f8] sm:$0xff]  ;;  %v2214_v0 = vld [vmem:[#allocation12 + $0xa8] sm:$0xff] }
 0x495   :  { %2135 = vmatpush1.msra.mxu0 %v1807_v47  ;;  %2101 = vmatprep.subr.mxu1 %v1732_v6  ;;  %v1871_v47 = vld [vmem:[#allocation11 + $0x6f0] sm:$0xff]  ;;  %v2198_v6 = vld [vmem:[#allocation12 + $0x28] sm:$0xff] }
 0x496   :  { %2136 = vmatprep.subr.mxu0 %v1804_v11  ;;  %2102 = vmatpush2.msra.mxu1 %v1731_v3  ;;  %v1868_v11 = vld [vmem:[#allocation11 + $0x6d8] sm:$0xff]  ;;  %v2213_v3 = vld [vmem:[#allocation12 + $0xa0] sm:$0xff] }
 0x497   :  { %2137 = vmatpush1.msra.mxu0 %v1803_v28  ;;  %2103 = vmatprep.subr.mxu1 %v1728_v18  ;;  %v1867_v28 = vld [vmem:[#allocation11 + $0x6d0] sm:$0xff]  ;;  %v2197_v18 = vld [vmem:[#allocation12 + $0x20] sm:$0xff] }
 0x498   :  { %2138 = vmatprep.subr.mxu0 %v1800_v43  ;;  %2104 = vmatpush2.msra.mxu1 %v1727_v7  ;;  %v1864_v43 = vld [vmem:[#allocation11 + $0x6b8] sm:$0xff]  ;;  %v1863_v7 = vld [vmem:[#allocation11 + $0x6b0] sm:$0xff] }
 0x499   :  { %2139 = vmatpush1.msra.mxu0 %v1799_v8  ;;  %2105 = vmatprep.subr.mxu1 %v1724_v2  ;;  %v1860_v8 = vld [vmem:[#allocation11 + $0x698] sm:$0xff]  ;;  %v1859_v2 = vld [vmem:[#allocation11 + $0x690] sm:$0xff] }
 0x49a   :  { %2140 = vmatprep.subr.mxu0 %v1796_v10  ;;  %2106 = vmatpush2.msra.mxu1 %v1723_v16  ;;  %v1856_v10 = vld [vmem:[#allocation11 + $0x678] sm:$0xff]  ;;  %v1855_v16 = vld [vmem:[#allocation11 + $0x670] sm:$0xff] }
 0x49b   :  { %2141 = vmatpush1.msra.mxu0 %v1795_v19  ;;  %2107 = vmatprep.subr.mxu1 %v1720_v21  ;;  %v1852_v19 = vld [vmem:[#allocation11 + $0x658] sm:$0xff]  ;;  %v1851_v21 = vld [vmem:[#allocation11 + $0x650] sm:$0xff] }
 0x49c   :  { %2142 = vmatprep.subr.mxu0 %v1792_v31  ;;  %2108 = vmatpush2.msra.mxu1 %v1719_v12  ;;  %v1848_v31 = vld [vmem:[#allocation11 + $0x638] sm:$0xff]  ;;  %v1847_v12 = vld [vmem:[#allocation11 + $0x630] sm:$0xff] }
 0x49d   :  { %2143 = vmatpush1.msra.mxu0 %v1791_v51  ;;  %2109 = vmatprep.subr.mxu1 %v1716_v26  ;;  %v1844_v51 = vld [vmem:[#allocation11 + $0x618] sm:$0xff]  ;;  %v1843_v26 = vld [vmem:[#allocation11 + $0x610] sm:$0xff] }
 0x49e   :  { %2144 = vmatprep.subr.mxu0 %v1788_v1  ;;  %2110 = vmatpush2.msra.mxu1 %v1715_v54  ;;  %v2212_v1 = vld [vmem:[#allocation12 + $0x98] sm:$0xff] }
 0x49f   :  { %2145 = vmatpush1.msra.mxu0 %v1787_v41  ;;  %2112 = vmatmul.mubr.f32.vlgmr.msra.gmra.mxu1 %v3397_v52  ;;  %v2205_v52 = vld [vmem:[#allocation12 + $0x60] sm:$0xff]  ;;  %v2196_v54 = vld [vmem:[#allocation12 + $0x18] sm:$0xff]  ;;  %v2211_v41 = vld [vmem:[#allocation12 + $0x90] sm:$0xff] }
 0x4a0   :  { %2146 = vmatprep.subr.mxu0 %v1784_v20  ;;  %2502 = vmatprep.subr.mxu1 %v2224_v30  ;;  %v2195_v20 = vld [vmem:[#allocation12 + $0x10] sm:$0xff]  ;;  %v2210_v30 = vld [vmem:[#allocation12 + $0x88] sm:$0xff] }
 0x4a1   :  { %2147 = vmatpush1.msra.mxu0 %v1783_v48  ;;  %2503 = vmatpush3.msra.mxu1 %v2208_v4  ;;  %v2194_v48 = vld [vmem:[#allocation12 + $0x8] sm:$0xff]  ;;  %v2209_v4 = vld [vmem:[#allocation12 + $0x80] sm:$0xff] }
 0x4a2   :  { %2148 = vmatprep.subr.mxu0 %v1780_v23  ;;  %2504 = vmatprep.subr.mxu1 %v2223_v33  ;;  %v2193_v23 = vld [vmem:[#allocation12] sm:$0xff]  ;;  %v2256_v33 = vld [vmem:[#allocation12 + $0x1f8] sm:$0xff] }
 0x4a3   :  { %2149 = vmatpush1.msra.mxu0 %v1779_v57  ;;  %2505 = vmatpush3.msra.mxu1 %v2207_v13  ;;  %v2240_v57 = vld [vmem:[#allocation12 + $0x178] sm:$0xff]  ;;  %v2255_v13 = vld [vmem:[#allocation12 + $0x1f0] sm:$0xff] }
 0x4a4   :  { %2150 = vmatprep.subr.mxu0 %v1904_v24  ;;  %2506 = vmatprep.subr.mxu1 %v2222_v25  ;;  %v2239_v24 = vld [vmem:[#allocation12 + $0x170] sm:$0xff]  ;;  %v2238_v25 = vld [vmem:[#allocation12 + $0x168] sm:$0xff] }
 0x4a5   :  { %2151 = vmatpush2.msra.mxu0 %v1903_v27  ;;  %2507 = vmatpush3.msra.mxu1 %v2206_v32  ;;  %v2253_v27 = vld [vmem:[#allocation12 + $0x1e0] sm:$0xff] }
 0x4a6   :  { %2152 = vmatprep.subr.mxu0 %v1900_v37  ;;  %2508 = vmatprep.subr.mxu1 %v2221_v9  ;;  %v2237_v32 = vld [vmem:[#allocation12 + $0x160] sm:$0xff]  ;;  %v2252_v37 = vld [vmem:[#allocation12 + $0x1d8] sm:$0xff] }
 0x4a7   :  { %2153 = vmatpush2.msra.mxu0 %v1899_v55  ;;  %2509 = vmatpush3.msra.mxu1 %v2205_v52  ;;  %v2236_v9 = vld [vmem:[#allocation12 + $0x158] sm:$0xff]  ;;  %v2251_v55 = vld [vmem:[#allocation12 + $0x1d0] sm:$0xff] }
 0x4a8   :  { %2154 = vmatprep.subr.mxu0 %v1896_v49  ;;  %2510 = vmatprep.subr.mxu1 %v2220_v38  ;;  %v2235_v52 = vld [vmem:[#allocation12 + $0x150] sm:$0xff]  ;;  %v2250_v49 = vld [vmem:[#allocation12 + $0x1c8] sm:$0xff] }
 0x4a9   :  { %2155 = vmatpush2.msra.mxu0 %v1895_v50  ;;  %2511 = vmatpush3.msra.mxu1 %v2204_v59  ;;  %v2234_v38 = vld [vmem:[#allocation12 + $0x148] sm:$0xff]  ;;  %v2249_v50 = vld [vmem:[#allocation12 + $0x1c0] sm:$0xff] }
 0x4aa   :  { %2156 = vmatprep.subr.mxu0 %v1892_v46  ;;  %2512 = vmatprep.subr.mxu1 %v2219_v56  ;;  %v2233_v59 = vld [vmem:[#allocation12 + $0x140] sm:$0xff]  ;;  %v2248_v46 = vld [vmem:[#allocation12 + $0x1b8] sm:$0xff] }
 0x4ab   :  { %2157 = vmatpush2.msra.mxu0 %v1891_v60  ;;  %2513 = vmatpush3.msra.mxu1 %v2203_v22  ;;  %v2232_v56 = vld [vmem:[#allocation12 + $0x138] sm:$0xff]  ;;  %v2247_v60 = vld [vmem:[#allocation12 + $0x1b0] sm:$0xff] }
 0x4ac   :  { %2158 = vmatprep.subr.mxu0 %v1888_v35  ;;  %2514 = vmatprep.subr.mxu1 %v2218_v53  ;;  %v2231_v22 = vld [vmem:[#allocation12 + $0x130] sm:$0xff]  ;;  %v2246_v35 = vld [vmem:[#allocation12 + $0x1a8] sm:$0xff] }
 0x4ad   :  { %2159 = vmatpush2.msra.mxu0 %v1887_v61  ;;  %2515 = vmatpush3.msra.mxu1 %v2202_v39  ;;  %v2230_v53 = vld [vmem:[#allocation12 + $0x128] sm:$0xff]  ;;  %v2245_v61 = vld [vmem:[#allocation12 + $0x1a0] sm:$0xff] }
 0x4ae   :  { %2160 = vmatprep.subr.mxu0 %v1884_v29  ;;  %2516 = vmatprep.subr.mxu1 %v2217_v14  ;;  %v2229_v39 = vld [vmem:[#allocation12 + $0x120] sm:$0xff]  ;;  %v2244_v29 = vld [vmem:[#allocation12 + $0x198] sm:$0xff] }
 0x4af   :  { %2161 = vmatpush2.msra.mxu0 %v1883_v42  ;;  %2517 = vmatpush3.msra.mxu1 %v2201_v62  ;;  %v2228_v14 = vld [vmem:[#allocation12 + $0x118] sm:$0xff]  ;;  %v2243_v42 = vld [vmem:[#allocation12 + $0x190] sm:$0xff] }
 0x4b0   :  { %2162 = vmatprep.subr.mxu0 %v1880_v40  ;;  %2518 = vmatprep.subr.mxu1 %v2216_v58  ;;  %v2227_v62 = vld [vmem:[#allocation12 + $0x110] sm:$0xff]  ;;  %v2242_v40 = vld [vmem:[#allocation12 + $0x188] sm:$0xff] }
 0x4b1   :  { %2163 = vmatpush2.msra.mxu0 %v1879_v44  ;;  %2519 = vmatpush3.msra.mxu1 %v2200_v5  ;;  %v2226_v58 = vld [vmem:[#allocation12 + $0x108] sm:$0xff]  ;;  %v2241_v44 = vld [vmem:[#allocation12 + $0x180] sm:$0xff] }
 0x4b2   :  { %2164 = vmatprep.subr.mxu0 %v1876_v34  ;;  %2520 = vmatprep.subr.mxu1 %v2215_v17  ;;  %v2225_v5 = vld [vmem:[#allocation12 + $0x100] sm:$0xff] }
 0x4b3   :  { %2165 = vmatpush2.msra.mxu0 %v1875_v15  ;;  %2521 = vmatpush3.msra.mxu1 %v2199_v45 }
 0x4b4   :  { %2166 = vmatprep.subr.mxu0 %v1872_v63  ;;  %2522 = vmatprep.subr.mxu1 %v2214_v0 }
 0x4b5   :  { %2167 = vmatpush2.msra.mxu0 %v1871_v47  ;;  %2523 = vmatpush3.msra.mxu1 %v2198_v6 }
 0x4b6   :  { %2168 = vmatprep.subr.mxu0 %v1868_v11  ;;  %2524 = vmatprep.subr.mxu1 %v2213_v3 }
 0x4b7   :  { %2169 = vmatpush2.msra.mxu0 %v1867_v28  ;;  %2525 = vmatpush3.msra.mxu1 %v2197_v18 }
 0x4b8   :  { %2170 = vmatprep.subr.mxu0 %v1864_v43  ;;  %2526 = vmatprep.subr.mxu1 %v2212_v1 }
 0x4b9   :  { %2171 = vmatpush2.msra.mxu0 %v1863_v7  ;;  %2527 = vmatpush3.msra.mxu1 %v2196_v54 }
 0x4ba   :  { %2172 = vmatprep.subr.mxu0 %v1860_v8  ;;  %2528 = vmatprep.subr.mxu1 %v2211_v41 }
 0x4bb   :  { %2173 = vmatpush2.msra.mxu0 %v1859_v2  ;;  %2529 = vmatpush3.msra.mxu1 %v2195_v20 }
 0x4bc   :  { %2174 = vmatprep.subr.mxu0 %v1856_v10  ;;  %2530 = vmatprep.subr.mxu1 %v2210_v30 }
 0x4bd   :  { %2175 = vmatpush2.msra.mxu0 %v1855_v16  ;;  %2531 = vmatpush3.msra.mxu1 %v2194_v48 }
 0x4be   :  { %2176 = vmatprep.subr.mxu0 %v1852_v19  ;;  %2532 = vmatprep.subr.mxu1 %v2209_v4 }
 0x4bf   :  { %2177 = vmatpush2.msra.mxu0 %v1851_v21  ;;  %2533 = vmatpush3.msra.mxu1 %v2193_v23  ;;  %v2448_v21 = vld [vmem:[%s3461_s11] ss:$0 sm:$0xff] }
 0x4c0   :  { %2178 = vmatprep.subr.mxu0 %v1848_v31 }
 0x4c1   :  { %2179 = vmatpush2.msra.mxu0 %v1847_v12 }
 0x4c2   :  { %2180 = vmatprep.subr.mxu0 %v1844_v51 }
 0x4c3   :  { %2181 = vmatpush2.msra.mxu0 %v1843_v26 }
 0x4c4   :  { %2183 = vmatmul.mubr.f32.vlgmr.msra.gmra.mxu0 %v3439_v36  ;;  %2537 = vmatprep.subr.mxu0 %v2256_v33  ;;  %v2254_v36 = vld [vmem:[#allocation12 + $0x1e8] sm:$0xff] }
 0x4c5   :  { %2538 = vmatpush3.msra.mxu0 %v2240_v57 }
 0x4c6   :  { %2539 = vmatprep.subr.mxu0 %v2255_v13 }
 0x4c7   :  { %2540 = vmatpush3.msra.mxu0 %v2239_v24 }
 0x4c8   :  { %2541 = vmatprep.subr.mxu0 %v2254_v36 }
 0x4c9   :  { %2542 = vmatpush3.msra.mxu0 %v2238_v25 }
 0x4ca   :  { %2543 = vmatprep.subr.mxu0 %v2253_v27 }
 0x4cb   :  { %2544 = vmatpush3.msra.mxu0 %v2237_v32 }
 0x4cc   :  { %2545 = vmatprep.subr.mxu0 %v2252_v37 }
 0x4cd   :  { %2546 = vmatpush3.msra.mxu0 %v2236_v9 }
 0x4ce   :  { %2547 = vmatprep.subr.mxu0 %v2251_v55 }
 0x4cf   :  { %2548 = vmatpush3.msra.mxu0 %v2235_v52 }
 0x4d0   :  { %2549 = vmatprep.subr.mxu0 %v2250_v49 }
 0x4d1   :  { %2550 = vmatpush3.msra.mxu0 %v2234_v38 }
 0x4d2   :  { %2551 = vmatprep.subr.mxu0 %v2249_v50 }
 0x4d3   :  { %2552 = vmatpush3.msra.mxu0 %v2233_v59 }
 0x4d4   :  { %2553 = vmatprep.subr.mxu0 %v2248_v46 }
 0x4d5   :  { %2554 = vmatpush3.msra.mxu0 %v2232_v56 }
 0x4d6   :  { %2555 = vmatprep.subr.mxu0 %v2247_v60 }
 0x4d7   :  { %2556 = vmatpush3.msra.mxu0 %v2231_v22 }
 0x4d8   :  { %2557 = vmatprep.subr.mxu0 %v2246_v35 }
 0x4d9   :  { %2558 = vmatpush3.msra.mxu0 %v2230_v53 }
 0x4da   :  { %2559 = vmatprep.subr.mxu0 %v2245_v61 }
 0x4db   :  { %2560 = vmatpush3.msra.mxu0 %v2229_v39 }
 0x4dc   :  { %2561 = vmatprep.subr.mxu0 %v2244_v29 }
 0x4dd   :  { %2562 = vmatpush3.msra.mxu0 %v2228_v14 }
 0x4de   :  { %2563 = vmatprep.subr.mxu0 %v2243_v42 }
 0x4df   :  { %2564 = vmatpush3.msra.mxu0 %v2227_v62 }
 0x4e0   :  { %2565 = vmatprep.subr.mxu0 %v2242_v40 }
 0x4e1   :  { %2566 = vmatpush3.msra.mxu0 %v2226_v58 }
 0x4e2   :  { %2567 = vmatprep.subr.mxu0 %v2241_v44 }
 0x4e3   :  { %2568 = vmatpush3.msra.mxu0 %v2225_v5 }
 0x51f   :  { %v1971_v34 = vpop.f32.mrf.mxu1 }
 0x521   :  { %v1973_v15 = vpop.f32.mrf.mxu1 }
 0x543   :  { %v2042_v17 = vpop.f32.mrf.mxu0 }
 0x544   :  { %v2043_v45 = vadd.f32 %v2042_v17, %v1971_v34 }
 0x545   :  { %v2044_v63 = vpop.f32.mrf.mxu0 }
 0x546   :  { %v2045_v0 = vadd.f32 %v2044_v63, %v1973_v15  ;;  %v2189_v6 = vmul.f32 %v2043_v45, %v2043_v45 }
 0x548   :  { %v2190_v47 = vmul.f32 %v2045_v0, %v2045_v0 }
 0x54a   :  { %2328 = vmatprep.mubr.f32.mxu1 %v2190_v47 }
 0x54b   :  { %2329 = vmatmul.mubr.f32.vlgmr.msra.gmra.mxu1 %v2189_v6 }
 0x55f   :  { %v2113_v11 = vpop.f32.mrf.mxu1 }
 0x561   :  { %v2115_v28 = vpop.f32.mrf.mxu1 }
 0x584   :  { %v2184_v3 = vpop.f32.mrf.mxu0 }
 0x585   :  { %v2185_v18 = vadd.f32 %v2184_v3, %v2113_v11 }
 0x586   :  { %v2186_v43 = vpop.f32.mrf.mxu0 }
 0x587   :  { %v2187_v7 = vadd.f32 %v2186_v43, %v2115_v28  ;;  %v2191_v2 = vmul.f32 %v2185_v18, %v2185_v18 }
 0x589   :  { %v2192_v8 = vmul.f32 %v2187_v7, %v2187_v7 }
 0x58b   :  { %2398 = vmatprep.mubr.f32.mxu0 %v2192_v8 }
 0x58c   :  { %2399 = vmatmul.mubr.f32.vlgmr.msra.gmra.mxu0 %v2191_v2 }
 0x60b   :  { %v2534_v10 = vpop.f32.mrf.mxu1 }
 0x60d   :  { %v2535_v16 = vpop.f32.mrf.mxu1 }
 0x60e   :  { %v2536_v19 = vadd.f32 %v2535_v16, %v2534_v10 }
 0x610   :  { %v2331_v51 = vadd.f32 %v2536_v19, %v2448_v21 }
 0x64c   :  { %v2569_v31 = vpop.f32.mrf.mxu0 }
 0x64e   :  { %v2570_v12 = vpop.f32.mrf.mxu0 }
 0x64f   :  { %v2571_v26 = vadd.f32 %v2570_v12, %v2569_v31 }
 0x651   :  { %v2401_v1 = vadd.f32 %v2571_v26, %v2331_v51 }
 0x653   :  { %v2405_v54 = vsel %vm2404_vm7, %v2401_v1, -inf }
 0x654   :  { %2406 = vmax.xlane.f32.xlu0 %v2405_v54 }
 0x6dd   :  { %v2407_v41 = vpop.xlane.xlu0 %2406 }
 0x6de   :  { %v2408_v20 = vsub.f32 %v2401_v1, %v2407_v41 }
 0x6e0   :  { %v2409_v30 = vmul.f32 1.442695, %v2408_v20 }
 0x6e2   :  { %2662 = vpow2.f32 %v2409_v30 }
 0x6ef   :  { %v2663_v48 = vpop.eup %2662 }
 0x6f0   :  { %v2411_v4 = vsel %vm2404_vm7, %v2663_v48, 0.0 }
 0x6f1   :  { %2412 = vadd.xlane.f32.xlu0 %v2411_v4 }
 0x77a   :  { %v2413_v23 = vpop.xlane.xlu0 %2412 }
 0x77b   :  { %2664 = vrcp.f32 %v2413_v23 }
 0x788   :  { %v2665_v33 = vpop.eup %2664 }
 0x789   :  { %v2415_v57 = vmul.f32 %v2665_v33, %v2663_v48 }
 0x78b   :  { %2416 = vst.msk [vmem:[%s3462_s12] sm:$0xff] %vm2404_vm7, %v2415_v57 }
 0x78c   :  { %2421 = vsyncpa [#allocation5], 1 }
 0x78d   :  { %2422 = vsyncpa [#allocation7], 1 }
 0x78e   :  { %2423 = vsyncpa [#allocation10], 1 }
 0x78f   :  { %2424 = vsyncpa [#allocation13], 1 }

</bundles_post_ra>
